<compile_context>
chip_gen: v5e
topology: v5e:2x2
jax: 0.10.0
libtpu: 0.0.40
codegen_flags: <defaults>
</compile_context>

<pallas_src>
import math
import functools

import jax
import jax.numpy as jnp
from jax.experimental import pallas as pl
from jax.experimental.pallas import tpu as pltpu

NEG_INF = -1e9  # finite stand-in for float('-inf') masks (avoids NaN rows)

PARAM_NAMES = (
    'sa_w3', 'sa_b3', 'sa_ow', 'sa_ob',
    'ca_w3', 'ca_b3', 'ca_ow', 'ca_ob',
    'ln_g', 'ln_b', 'ff_w1', 'ff_b1', 'ff_w2', 'ff_b2',
)


# ----------------------------------------------------------------------------
# Shared math (used inside the Pallas kernel and by the pure-JAX reference)
# ----------------------------------------------------------------------------
def _layer_norm(v, g, b, eps=1e-5):
    mu = jnp.mean(v, axis=-1, keepdims=True)
    var = jnp.mean(jnp.square(v - mu), axis=-1, keepdims=True)
    return (v - mu) * jax.lax.rsqrt(var + eps) * g + b


def _softmax_last(x, in_kernel):
    m = jnp.max(x, axis=-1, keepdims=True)
    e = jnp.exp(x - m)
    s = jnp.sum(e, axis=-1, keepdims=True)
    if in_kernel:
        return e * pl.reciprocal(s, approx=True)   # EUP slot, frees the VALU
    return e / s


def _split_heads(x, num_heads):
    """[N, H*hd] -> [H, N, hd] (leading batch dim for the batched dots)."""
    n, d = x.shape
    hd = d // num_heads
    return jnp.swapaxes(x.reshape(n, num_heads, hd), 0, 1)


def _merge_heads(x):
    """[H, N, hd] -> [N, H*hd]."""
    h, n, hd = x.shape
    return jnp.swapaxes(x, 0, 1).reshape(n, h * hd)


def _mha_core(q, k, v, mask, num_heads, in_kernel):
    """q: [Nq, D] (bias + 1/sqrt(hd) already applied), k/v: [Nk, D].
    mask: additive [Nq, Nk] or None.
    Returns (out [Nq, D] f32, attn weights [H, Nq, Nk] f32)."""
    bf16 = jnp.bfloat16
    f32 = jnp.float32
    qh = _split_heads(q, num_heads).astype(bf16)
    kh = _split_heads(k, num_heads).astype(bf16)
    vh = _split_heads(v, num_heads).astype(bf16)
    s = jnp.einsum('hqe,hke->hqk', qh, kh, preferred_element_type=f32)
    if mask is not None:
        s = s + mask[None, :, :]
    w = _softmax_last(s, in_kernel)
    o = jnp.einsum('hqk,hke->hqe', w.astype(bf16), vh, preferred_element_type=f32)
    return _merge_heads(o), w


# ----------------------------------------------------------------------------
# Pallas kernel: grid = (batch_tile, layer); activations resident in VMEM
# ----------------------------------------------------------------------------
def _decoder_kernel(num_heads, bt, seq_l, src_s,
                    sa_mask_ref, ca_mask_ref, x_ref, enc_ref,
                    sa_w3, sa_b3, sa_ow, sa_ob,
                    ca_w3, ca_b3, ca_ow, ca_ob,
                    ln_g_ref, ln_b_ref, ff_w1, ff_b1, ff_w2, ff_b2,
                    out_ref, attn_ref, x_res):
    f32 = jnp.float32
    bf16 = jnp.bfloat16
    H = num_heads
    D = x_res.shape[-1]
    hd = D // H
    scale = 1.0 / math.sqrt(hd)
    layer = pl.program_id(1)

    # load the decoder inputs into the layer-resident scratch at layer 0
    @pl.when(layer == 0)
    def _load_inputs():
        x_res[...] = x_ref[0]

    xf = x_res[...]                 # [BT*L, D] f32 residual stream
    enc = enc_ref[0]                # [BT*S, D] bf16
    ln_g = ln_g_ref[0]              # [3, D]
    ln_b = ln_b_ref[0]

    # ---- masked self-attention (batch tile flattened; block-diagonal mask) ----
    xb = xf.astype(bf16)
    q = (jnp.dot(xb, sa_w3[0, 0], preferred_element_type=f32) + sa_b3[0, 0]) * scale
    k = jnp.dot(xb, sa_w3[0, 1], preferred_element_type=f32) + sa_b3[0, 1]
    v = jnp.dot(xb, sa_w3[0, 2], preferred_element_type=f32) + sa_b3[0, 2]
    o_sa, _ = _mha_core(q, k, v, sa_mask_ref[0], H, in_kernel=True)
    sa_out = jnp.dot(o_sa.astype(bf16), sa_ow[0], preferred_element_type=f32) + sa_ob[0]
    h1 = _layer_norm(xf + sa_out, ln_g[0:1], ln_b[0:1])

    # ---- cross attention over encoder outputs (block-diag mask only blocks
    #      cross-batch mixing; the module itself applies no mask here) ----
    h1b = h1.astype(bf16)
    q = (jnp.dot(h1b, ca_w3[0, 0], preferred_element_type=f32) + ca_b3[0, 0]) * scale
    k = jnp.dot(enc, ca_w3[0, 1], preferred_element_type=f32) + ca_b3[0, 1]
    v = jnp.dot(enc, ca_w3[0, 2], preferred_element_type=f32) + ca_b3[0, 2]
    o_ca, w_ca = _mha_core(q, k, v, ca_mask_ref[...], H, in_kernel=True)
    ca_out = jnp.dot(o_ca.astype(bf16), ca_ow[0], preferred_element_type=f32) + ca_ob[0]
    h2 = _layer_norm(h1 + ca_out, ln_g[1:2], ln_b[1:2])

    # ---- feed-forward ----
    ff_h = jnp.maximum(
        jnp.dot(h2.astype(bf16), ff_w1[0], preferred_element_type=f32) + ff_b1[0], 0.0)
    ff_o = jnp.dot(ff_h.astype(bf16), ff_w2[0], preferred_element_type=f32) + ff_b2[0]
    new_x = _layer_norm(h2 + ff_o, ln_g[2:3], ln_b[2:3])
    x_res[...] = new_x

    # ---- per-element cross-attn weights, stored lane-dense as [H, L*S] ----
    for b in range(bt):
        blk = w_ca[:, b * seq_l:(b + 1) * seq_l, b * src_s:(b + 1) * src_s]  # [H, L, S]
        attn_ref[0, b] = blk.reshape(H, seq_l * src_s)

    # final activations: block index is layer-invariant; only the last-layer
    # write is flushed to HBM (writeback on batch-tile advance / grid end).
    @pl.when(layer == pl.num_programs(1) - 1)
    def _store_out():
        out_ref[0] = new_x


# ----------------------------------------------------------------------------
# Wrapper-side parameter prep (free): pre-split QKV, cast weights to bf16
# ----------------------------------------------------------------------------
def _prep_params(layer_params, d_model):
    D = d_model
    bf16 = jnp.bfloat16
    f32 = jnp.float32

    def split3_w(w):   # [D, 3D] -> [3, D, D]
        return jnp.stack([w[:, 0:D], w[:, D:2 * D], w[:, 2 * D:3 * D]], axis=0)

    def split3_b(b):   # [1, 3D] -> [3, 1, D]
        return jnp.stack([b[:, 0:D], b[:, D:2 * D], b[:, 2 * D:3 * D]], axis=0)

    per_layer = []
    for p in layer_params:
        per_layer.append(dict(
            sa_w3=split3_w(p['sa_in_w']).astype(bf16),
            sa_b3=split3_b(p['sa_in_b']).astype(f32),
            sa_ow=p['sa_out_w'].astype(bf16),
            sa_ob=p['sa_out_b'].astype(f32),
            ca_w3=split3_w(p['ca_in_w']).astype(bf16),
            ca_b3=split3_b(p['ca_in_b']).astype(f32),
            ca_ow=p['ca_out_w'].astype(bf16),
            ca_ob=p['ca_out_b'].astype(f32),
            ln_g=p['ln_g'].astype(f32),
            ln_b=p['ln_b'].astype(f32),
            ff_w1=p['ff_w1'].astype(bf16),
            ff_b1=p['ff_b1'].astype(f32),
            ff_w2=p['ff_w2'].astype(bf16),
            ff_b2=p['ff_b2'].astype(f32),
        ))
    return {name: jnp.stack([lp[name] for lp in per_layer], axis=0)
            for name in PARAM_NAMES}


def _build_masks(tgt_mask, tgt_pad_mask, num_bt, bt, L, S):
    """Block-diagonal additive masks for the flattened batch tile.
    sa_mask: [num_bt, BT*L, BT*L] (causal + key padding on diag blocks,
             NEG_INF off-diagonal).  ca_mask: [BT*L, BT*S] (0 on diag blocks)."""
    f32 = jnp.float32
    pad_add = jnp.where(tgt_pad_mask, NEG_INF, 0.0).astype(f32)              # [B, L]
    per_elem = tgt_mask.astype(f32)[None, :, :] + pad_add[:, None, :]        # [B, L, L]
    base = per_elem.reshape(num_bt, bt, L, L)
    b5 = jnp.broadcast_to(base[:, :, :, None, :], (num_bt, bt, L, bt, L))
    diag = jnp.arange(bt)[:, None] == jnp.arange(bt)[None, :]
    sa_mask = jnp.where(diag[None, :, None, :, None], b5, NEG_INF)
    sa_mask = sa_mask.reshape(num_bt, bt * L, bt * L)

    qb = jnp.arange(bt * L) // L
    kb = jnp.arange(bt * S) // S
    ca_mask = jnp.where(qb[:, None] == kb[None, :], 0.0, NEG_INF).astype(f32)
    return sa_mask, ca_mask


def _vmem_bytes_estimate(bt, L, S, D, FF, H):
    """Rough per-grid-step VMEM footprint (double-buffered blocks + temps)."""
    rq, rk = bt * L, bt * S
    f32, bf = 4, 2
    w_bytes = (3 * D * D + D * D) * 2 * bf + (D * FF + FF * D) * bf
    b_bytes = (3 * D + D) * 2 * f32 + (FF + D) * f32 + 2 * 3 * D * f32
    blocks = ((rq * rq + rq * rk) * f32            # masks
              + rq * D * f32 + rk * D * bf         # x, enc
              + rq * D * f32 + bt * H * L * S * f32  # outputs
              + w_bytes + b_bytes)
    scratch = rq * D * f32
    inter = (H * rq * rq + H * rq * rk) * f32 * 2 + rq * max(3 * D, FF) * f32 * 8
    return 2 * blocks + scratch + inter


def _vmem_capacity_bytes():
    try:
        info = pltpu.get_tpu_info()
        return int(getattr(info, 'vmem_capacity_bytes', 64 << 20))
    except Exception:
        return 64 << 20


def _pick_batch_tile(B, L, S, D, FF, H, budget_bytes,
                     rows_target=256, rows_max=1024):
    """Largest divisor of B whose batch tile fits the VMEM budget; stop growing
    once BT*L reaches rows_target so the parallel grid axis keeps some extent."""
    best = 1
    for bt in range(1, B + 1):
        if B % bt:
            continue
        if bt * L > rows_max:
            break
        if _vmem_bytes_estimate(bt, L, S, D, FF, H) > budget_bytes:
            break
        best = bt
        if bt * L >= rows_target:
            break
    return best


@functools.partial(jax.jit, static_argnames=('num_heads',))
def decoder_forward_pallas(tgt_emb, src_img, tgt_mask, tgt_pad_mask,
                           layer_params, num_heads):
    """tgt_emb: [L, B, D]; src_img: [S, B, D]; tgt_mask: [L, L] additive float;
    tgt_pad_mask: [B, L] bool.  Returns (out [L, B, D], attns [layers, B, H, L, S])."""
    L, B, D = tgt_emb.shape
    S = src_img.shape[0]
    NL = len(layer_params)
    H = num_heads
    FF = int(layer_params[0]['ff_w1'].shape[-1])

    cap = _vmem_capacity_bytes()
    bt = _pick_batch_tile(B, L, S, D, FF, H, budget_bytes=int(cap * 0.5))
    num_bt = B // bt

    x_t = jnp.transpose(tgt_emb, (1, 0, 2)).astype(jnp.float32).reshape(num_bt, bt * L, D)
    enc_t = jnp.transpose(src_img, (1, 0, 2)).astype(jnp.bfloat16).reshape(num_bt, bt * S, D)
    sa_mask, ca_mask = _build_masks(tgt_mask, tgt_pad_mask, num_bt, bt, L, S)
    stacked = _prep_params(layer_params, D)

    def _wspec(arr):
        ndim = arr.ndim
        return pl.BlockSpec((1,) + tuple(arr.shape[1:]),
                            lambda b, l: (l,) + (0,) * (ndim - 1))

    in_specs = [
        pl.BlockSpec((1, bt * L, bt * L), lambda b, l: (b, 0, 0)),   # self-attn mask
        pl.BlockSpec((bt * L, bt * S), lambda b, l: (0, 0)),         # cross block-diag mask
        pl.BlockSpec((1, bt * L, D), lambda b, l: (b, 0, 0)),        # decoder inputs
        pl.BlockSpec((1, bt * S, D), lambda b, l: (b, 0, 0)),        # encoder outputs
    ] + [_wspec(stacked[n]) for n in PARAM_NAMES]

    out_specs = (
        pl.BlockSpec((1, bt * L, D), lambda b, l: (b, 0, 0)),                    # final acts
        pl.BlockSpec((1, bt, H, L * S), lambda b, l: (l * num_bt + b, 0, 0, 0)),  # attn (lane-dense)
    )
    out_shape = (
        jax.ShapeDtypeStruct((num_bt, bt * L, D), jnp.float32),
        jax.ShapeDtypeStruct((NL * num_bt, bt, H, L * S), jnp.float32),
    )

    est = _vmem_bytes_estimate(bt, L, S, D, FF, H)
    vmem_limit = int(min(max(2 * est, 16 << 20), cap * 3 // 4))

    out_t, attn_t = pl.pallas_call(
        functools.partial(_decoder_kernel, H, bt, L, S),
        grid=(num_bt, NL),
        in_specs=in_specs,
        out_specs=out_specs,
        out_shape=out_shape,
        scratch_shapes=[pltpu.VMEM((bt * L, D), jnp.float32)],   # layer-resident activations
        compiler_params=pltpu.CompilerParams(
            dimension_semantics=("parallel", "arbitrary"),
            vmem_limit_bytes=vmem_limit),
    )(sa_mask, ca_mask, x_t, enc_t, *[stacked[n] for n in PARAM_NAMES])

    out = jnp.transpose(out_t.reshape(B, L, D), (1, 0, 2))                 # [L, B, D]
    attns = attn_t.reshape(NL, num_bt, bt, H, L, S).reshape(NL, B, H, L, S)
    return out, attns


# ----------------------------------------------------------------------------
# Pure-JAX reference (conventional per-batch-element attention, same numerics)
# ----------------------------------------------------------------------------
def _ref_one_layer(x, enc, mask_sa, p, num_heads):
    f32 = jnp.float32
    bf16 = jnp.bfloat16
    D = x.shape[-1]
    scale = 1.0 / math.sqrt(D // num_heads)

    xb = x.astype(bf16)
    q = (jnp.dot(xb, p['sa_w3'][0], preferred_element_type=f32) + p['sa_b3'][0]) * scale
    k = jnp.dot(xb, p['sa_w3'][1], preferred_element_type=f32) + p['sa_b3'][1]
    v = jnp.dot(xb, p['sa_w3'][2], preferred_element_type=f32) + p['sa_b3'][2]
    o, _ = _mha_core(q, k, v, mask_sa, num_heads, in_kernel=False)
    sa_out = jnp.dot(o.astype(bf16), p['sa_ow'], preferred_element_type=f32) + p['sa_ob']
    h1 = _layer_norm(x + sa_out, p['ln_g'][0:1], p['ln_b'][0:1])

    h1b = h1.astype(bf16)
    q = (jnp.dot(h1b, p['ca_w3'][0], preferred_element_type=f32) + p['ca_b3'][0]) * scale
    k = jnp.dot(enc, p['ca_w3'][1], preferred_element_type=f32) + p['ca_b3'][1]
    v = jnp.dot(enc, p['ca_w3'][2], preferred_element_type=f32) + p['ca_b3'][2]
    o, attn = _mha_core(q, k, v, None, num_heads, in_kernel=False)
    ca_out = jnp.dot(o.astype(bf16), p['ca_ow'], preferred_element_type=f32) + p['ca_ob']
    h2 = _layer_norm(h1 + ca_out, p['ln_g'][1:2], p['ln_b'][1:2])

    ff_h = jnp.maximum(
        jnp.dot(h2.astype(bf16), p['ff_w1'], preferred_element_type=f32) + p['ff_b1'], 0.0)
    ff_o = jnp.dot(ff_h.astype(bf16), p['ff_w2'], preferred_element_type=f32) + p['ff_b2']
    out = _layer_norm(h2 + ff_o, p['ln_g'][2:3], p['ln_b'][2:3])
    return out, attn


def decoder_forward_ref(tgt_emb, src_img, tgt_mask, tgt_pad_mask,
                        layer_params, num_heads):
    L, B, D = tgt_emb.shape
    NL = len(layer_params)
    x = jnp.transpose(tgt_emb, (1, 0, 2)).astype(jnp.float32)       # [B, L, D]
    enc = jnp.transpose(src_img, (1, 0, 2)).astype(jnp.bfloat16)    # [B, S, D]
    pad_add = jnp.where(tgt_pad_mask, NEG_INF, 0.0).astype(jnp.float32)
    mask = tgt_mask.astype(jnp.float32)[None, :, :] + pad_add[:, None, :]   # [B, L, L]
    stacked = _prep_params(layer_params, D)
    attns = []
    for li in range(NL):
        p = {k: v[li] for k, v in stacked.items()}
        x, attn = jax.vmap(
            lambda xb, eb, mb, p=p: _ref_one_layer(xb, eb, mb, p, num_heads))(x, enc, mask)
        attns.append(attn)
    return jnp.transpose(x, (1, 0, 2)), jnp.stack(attns, axis=0)


# ----------------------------------------------------------------------------
# Deterministic parameter init (shapes match DecoderLayer.__init__)
# ----------------------------------------------------------------------------
def init_layer_params(key, d_model, ff_dim):
    ks = jax.random.split(key, 6)

    def xavier(k, shape):
        lim = math.sqrt(6.0 / (shape[0] + shape[1]))
        return jax.random.uniform(k, shape, jnp.float32, -lim, lim)

    return dict(
        sa_in_w=xavier(ks[0], (d_model, 3 * d_model)),
        sa_in_b=jnp.zeros((1, 3 * d_model), jnp.float32),
        sa_out_w=xavier(ks[1], (d_model, d_model)),
        sa_out_b=jnp.zeros((1, d_model), jnp.float32),
        ca_in_w=xavier(ks[2], (d_model, 3 * d_model)),
        ca_in_b=jnp.zeros((1, 3 * d_model), jnp.float32),
        ca_out_w=xavier(ks[3], (d_model, d_model)),
        ca_out_b=jnp.zeros((1, d_model), jnp.float32),
        ln_g=jnp.ones((3, d_model), jnp.float32),
        ln_b=jnp.zeros((3, d_model), jnp.float32),
        ff_w1=xavier(ks[4], (d_model, ff_dim)),
        ff_b1=jnp.full((1, ff_dim), 0.01, jnp.float32),
        ff_w2=xavier(ks[5], (ff_dim, d_model)),
        ff_b2=jnp.full((1, d_model), 0.01, jnp.float32),
    )


if __name__ == "__main__":
    key = jax.random.PRNGKey(0)
    num_layers = 2
    L, B, D = 8, 2, 32          # max_len, batch, d_model
    H = 4                       # num_heads
    FF = 64                     # feedforward_dim
    S = 16                      # encode_size^2

    k1, k2, kp = jax.random.split(key, 3)
    tgt_emb = jax.random.normal(k1, (L, B, D), jnp.float32)   # decoder inputs [L,B,D]
    src_img = jax.random.normal(k2, (S, B, D), jnp.float32)   # encoded image  [S,B,D]

    # get_attn_subsequent_mask: upper-triangular -inf (finite NEG_INF used here)
    causal = jnp.where(jnp.triu(jnp.ones((L, L), jnp.bool_), k=1),
                       NEG_INF, 0.0).astype(jnp.float32)
    # pad mask: batch element 1 has its last 2 positions padded
    tgt_pad_mask = jnp.zeros((B, L), jnp.bool_).at[1, L - 2:].set(True)

    layer_params = [init_layer_params(k, D, FF)
                    for k in jax.random.split(kp, num_layers)]

    out, attns = decoder_forward_pallas(tgt_emb, src_img, causal, tgt_pad_mask,
                                        layer_params, num_heads=H)
    out = jax.block_until_ready(out)
    attns = jax.block_until_ready(attns)

    assert out.shape == (L, B, D)
    assert attns.shape == (num_layers, B, H, L, S)

    ref_out, ref_attns = decoder_forward_ref(tgt_emb, src_img, causal, tgt_pad_mask,
                                             layer_params, H)
    assert jnp.allclose(out, ref_out, rtol=2e-2, atol=2e-2), "output mismatch"
    assert jnp.allclose(attns, ref_attns, rtol=2e-2, atol=2e-2), "attn mismatch"

    print("KERNEL_OK")
</pallas_src>

<mosaic_0001>
module attributes {stable_mosaic.version = 11 : i64} {
  func.func @_decoder_kernel(%arg0: i32, %arg1: i32, %arg2: memref<1x16x16xf32, #tpu.memory_space<vmem>>, %arg3: memref<16x32xf32, #tpu.memory_space<vmem>>, %arg4: memref<1x16x32xf32, #tpu.memory_space<vmem>>, %arg5: memref<1x32x32xbf16, #tpu.memory_space<vmem>>, %arg6: memref<1x3x32x32xbf16, #tpu.memory_space<vmem>>, %arg7: memref<1x3x1x32xf32, #tpu.memory_space<vmem>>, %arg8: memref<1x32x32xbf16, #tpu.memory_space<vmem>>, %arg9: memref<1x1x32xf32, #tpu.memory_space<vmem>>, %arg10: memref<1x3x32x32xbf16, #tpu.memory_space<vmem>>, %arg11: memref<1x3x1x32xf32, #tpu.memory_space<vmem>>, %arg12: memref<1x32x32xbf16, #tpu.memory_space<vmem>>, %arg13: memref<1x1x32xf32, #tpu.memory_space<vmem>>, %arg14: memref<1x3x32xf32, #tpu.memory_space<vmem>>, %arg15: memref<1x3x32xf32, #tpu.memory_space<vmem>>, %arg16: memref<1x32x64xbf16, #tpu.memory_space<vmem>>, %arg17: memref<1x1x64xf32, #tpu.memory_space<vmem>>, %arg18: memref<1x64x32xbf16, #tpu.memory_space<vmem>>, %arg19: memref<1x1x32xf32, #tpu.memory_space<vmem>>, %arg20: memref<1x16x32xf32, #tpu.memory_space<vmem>>, %arg21: memref<1x2x4x128xf32, #tpu.memory_space<vmem>>, %arg22: memref<16x32xf32, #tpu.memory_space<vmem>>) attributes {dimension_semantics = [#tpu.dimension_semantics<parallel>, #tpu.dimension_semantics<arbitrary>], iteration_bounds = array<i64: 1, 2>, scalar_prefetch = 0 : i64, scratch_operands = 1 : i64, tpu.core_type = #tpu.core_type<tc>, window_params = [{transform_indices = @transform_0, window_bounds = array<i64: 1, 16, 16>}, {pipeline_mode = #tpu.pipeline_mode<synchronous>, transform_indices = @transform_1, window_bounds = array<i64: 16, 32>}, {transform_indices = @transform_2, window_bounds = array<i64: 1, 16, 32>}, {transform_indices = @transform_3, window_bounds = array<i64: 1, 32, 32>}, {transform_indices = @transform_4, window_bounds = array<i64: 1, 3, 32, 32>}, {transform_indices = @transform_5, window_bounds = array<i64: 1, 3, 1, 32>}, {transform_indices = @transform_6, window_bounds = array<i64: 1, 32, 32>}, {transform_indices = @transform_7, window_bounds = array<i64: 1, 1, 32>}, {transform_indices = @transform_8, window_bounds = array<i64: 1, 3, 32, 32>}, {transform_indices = @transform_9, window_bounds = array<i64: 1, 3, 1, 32>}, {transform_indices = @transform_10, window_bounds = array<i64: 1, 32, 32>}, {transform_indices = @transform_11, window_bounds = array<i64: 1, 1, 32>}, {transform_indices = @transform_12, window_bounds = array<i64: 1, 3, 32>}, {transform_indices = @transform_13, window_bounds = array<i64: 1, 3, 32>}, {transform_indices = @transform_14, window_bounds = array<i64: 1, 32, 64>}, {transform_indices = @transform_15, window_bounds = array<i64: 1, 1, 64>}, {transform_indices = @transform_16, window_bounds = array<i64: 1, 64, 32>}, {transform_indices = @transform_17, window_bounds = array<i64: 1, 1, 32>}, {transform_indices = @transform_18, window_bounds = array<i64: 1, 16, 32>}, {transform_indices = @transform_19, window_bounds = array<i64: 1, 2, 4, 128>}]} {
    %c0_i32 = arith.constant 0 : i32
    %0 = arith.cmpi eq, %arg1, %c0_i32 : i32
    %1 = arith.extui %0 : i1 to i32
    %c0_i32_0 = arith.constant 0 : i32
    %2 = arith.cmpi ne, %1, %c0_i32_0 : i32
    scf.if %2 {
      %c0_132 = arith.constant 0 : index
      %c0_133 = arith.constant 0 : index
      %c0_134 = arith.constant 0 : index
      %238 = vector.load %arg4[%c0_132, %c0_133, %c0_134] : memref<1x16x32xf32, #tpu.memory_space<vmem>>, vector<1x16x32xf32>
      %239 = vector.shape_cast %238 : vector<1x16x32xf32> to vector<16x32xf32>
      %c0_135 = arith.constant 0 : index
      %c0_136 = arith.constant 0 : index
      %240 = vector.load %arg22[%c0_135, %c0_136] : memref<16x32xf32, #tpu.memory_space<vmem>>, vector<16x32xf32>
      tpu.vector_store %arg22[%c0_135, %c0_136], %239 {strides = array<i32>} : memref<16x32xf32, #tpu.memory_space<vmem>>, vector<16x32xf32>,
    } else {
    }
    %c0 = arith.constant 0 : index
    %c0_1 = arith.constant 0 : index
    %3 = vector.load %arg22[%c0, %c0_1] : memref<16x32xf32, #tpu.memory_space<vmem>>, vector<16x32xf32>
    %c0_2 = arith.constant 0 : index
    %c0_3 = arith.constant 0 : index
    %c0_4 = arith.constant 0 : index
    %4 = vector.load %arg5[%c0_2, %c0_3, %c0_4] : memref<1x32x32xbf16, #tpu.memory_space<vmem>>, vector<1x32x32xbf16>
    %5 = vector.shape_cast %4 : vector<1x32x32xbf16> to vector<32x32xbf16>
    %c0_5 = arith.constant 0 : index
    %c0_6 = arith.constant 0 : index
    %c0_7 = arith.constant 0 : index
    %6 = vector.load %arg14[%c0_5, %c0_6, %c0_7] : memref<1x3x32xf32, #tpu.memory_space<vmem>>, vector<1x3x32xf32>
    %7 = vector.shape_cast %6 : vector<1x3x32xf32> to vector<3x32xf32>
    %c0_8 = arith.constant 0 : index
    %c0_9 = arith.constant 0 : index
    %c0_10 = arith.constant 0 : index
    %8 = vector.load %arg15[%c0_8, %c0_9, %c0_10] : memref<1x3x32xf32, #tpu.memory_space<vmem>>, vector<1x3x32xf32>
    %9 = vector.shape_cast %8 : vector<1x3x32xf32> to vector<3x32xf32>
    %10 = arith.truncf %3 : vector<16x32xf32> to vector<16x32xbf16>
    %c0_11 = arith.constant 0 : index
    %c0_12 = arith.constant 0 : index
    %c0_13 = arith.constant 0 : index
    %c0_14 = arith.constant 0 : index
    %11 = vector.load %arg6[%c0_11, %c0_12, %c0_13, %c0_14] : memref<1x3x32x32xbf16, #tpu.memory_space<vmem>>, vector<1x1x32x32xbf16>
    %12 = vector.shape_cast %11 : vector<1x1x32x32xbf16> to vector<32x32xbf16>
    %cst = arith.constant dense<0.000000e+00> : vector<16x32xf32>
    %13 = tpu.matmul %10, %12, %cst {dimension_numbers = #tpu.dot_dimension_numbers<[1], [0], [0], [1], [0, 0, 1, 1], [], []>} : vector<16x32xbf16>, vector<32x32xbf16>, vector<16x32xf32> -> vector<16x32xf32>
    %c0_15 = arith.constant 0 : index
    %c0_16 = arith.constant 0 : index
    %c0_17 = arith.constant 0 : index
    %c0_18 = arith.constant 0 : index
    %14 = vector.load %arg7[%c0_15, %c0_16, %c0_17, %c0_18] : memref<1x3x1x32xf32, #tpu.memory_space<vmem>>, vector<1x1x1x32xf32>
    %15 = vector.shape_cast %14 : vector<1x1x1x32xf32> to vector<1x32xf32>
    %16 = vector.broadcast %15 : vector<1x32xf32> to vector<16x32xf32>
    %17 = arith.addf %13, %16 : vector<16x32xf32>
    %cst_19 = arith.constant 0.353553385 : f32
    %18 = vector.broadcast %cst_19 : f32 to vector<16x32xf32>
    %19 = arith.mulf %17, %18 : vector<16x32xf32>
    %c0_20 = arith.constant 0 : index
    %c1 = arith.constant 1 : index
    %c0_21 = arith.constant 0 : index
    %c0_22 = arith.constant 0 : index
    %20 = vector.load %arg6[%c0_20, %c1, %c0_21, %c0_22] : memref<1x3x32x32xbf16, #tpu.memory_space<vmem>>, vector<1x1x32x32xbf16>
    %21 = vector.shape_cast %20 : vector<1x1x32x32xbf16> to vector<32x32xbf16>
    %cst_23 = arith.constant dense<0.000000e+00> : vector<16x32xf32>
    %22 = tpu.matmul %10, %21, %cst_23 {dimension_numbers = #tpu.dot_dimension_numbers<[1], [0], [0], [1], [0, 0, 1, 1], [], []>} : vector<16x32xbf16>, vector<32x32xbf16>, vector<16x32xf32> -> vector<16x32xf32>
    %c0_24 = arith.constant 0 : index
    %c1_25 = arith.constant 1 : index
    %c0_26 = arith.constant 0 : index
    %c0_27 = arith.constant 0 : index
    %23 = vector.load %arg7[%c0_24, %c1_25, %c0_26, %c0_27] : memref<1x3x1x32xf32, #tpu.memory_space<vmem>>, vector<1x1x1x32xf32>
    %24 = vector.shape_cast %23 : vector<1x1x1x32xf32> to vector<1x32xf32>
    %25 = vector.broadcast %24 : vector<1x32xf32> to vector<16x32xf32>
    %26 = arith.addf %22, %25 : vector<16x32xf32>
    %c0_28 = arith.constant 0 : index
    %c2 = arith.constant 2 : index
    %c0_29 = arith.constant 0 : index
    %c0_30 = arith.constant 0 : index
    %27 = vector.load %arg6[%c0_28, %c2, %c0_29, %c0_30] : memref<1x3x32x32xbf16, #tpu.memory_space<vmem>>, vector<1x1x32x32xbf16>
    %28 = vector.shape_cast %27 : vector<1x1x32x32xbf16> to vector<32x32xbf16>
    %cst_31 = arith.constant dense<0.000000e+00> : vector<16x32xf32>
    %29 = tpu.matmul %10, %28, %cst_31 {dimension_numbers = #tpu.dot_dimension_numbers<[1], [0], [0], [1], [0, 0, 1, 1], [], []>} : vector<16x32xbf16>, vector<32x32xbf16>, vector<16x32xf32> -> vector<16x32xf32>
    %c0_32 = arith.constant 0 : index
    %c2_33 = arith.constant 2 : index
    %c0_34 = arith.constant 0 : index
    %c0_35 = arith.constant 0 : index
    %30 = vector.load %arg7[%c0_32, %c2_33, %c0_34, %c0_35] : memref<1x3x1x32xf32, #tpu.memory_space<vmem>>, vector<1x1x1x32xf32>
    %31 = vector.shape_cast %30 : vector<1x1x1x32xf32> to vector<1x32xf32>
    %32 = vector.broadcast %31 : vector<1x32xf32> to vector<16x32xf32>
    %33 = arith.addf %29, %32 : vector<16x32xf32>
    %c0_36 = arith.constant 0 : index
    %c0_37 = arith.constant 0 : index
    %c0_38 = arith.constant 0 : index
    %34 = vector.load %arg2[%c0_36, %c0_37, %c0_38] : memref<1x16x16xf32, #tpu.memory_space<vmem>>, vector<1x16x16xf32>
    %35 = vector.shape_cast %34 : vector<1x16x16xf32> to vector<16x16xf32>
    %36 = vector.shape_cast %19 : vector<16x32xf32> to vector<16x4x8xf32>
    %37 = tpu.transpose %36, [1, 0, 2] : vector<16x4x8xf32> -> vector<4x16x8xf32>
    %38 = arith.truncf %37 : vector<4x16x8xf32> to vector<4x16x8xbf16>
    %39 = vector.shape_cast %26 : vector<16x32xf32> to vector<16x4x8xf32>
    %40 = tpu.transpose %39, [1, 0, 2] : vector<16x4x8xf32> -> vector<4x16x8xf32>
    %41 = arith.truncf %40 : vector<4x16x8xf32> to vector<4x16x8xbf16>
    %42 = vector.shape_cast %33 : vector<16x32xf32> to vector<16x4x8xf32>
    %43 = tpu.transpose %42, [1, 0, 2] : vector<16x4x8xf32> -> vector<4x16x8xf32>
    %44 = arith.truncf %43 : vector<4x16x8xf32> to vector<4x16x8xbf16>
    "tpu.trace_start"() <{level = 10 : i32, message = "hqe,hke->hqk"}> : () -> ()
    %cst_39 = arith.constant dense<0.000000e+00> : vector<4x16x16xf32>
    %45 = tpu.matmul %38, %41, %cst_39 {dimension_numbers = #tpu.dot_dimension_numbers<[2], [2], [1], [1], [0, 0, 0, 1, 1, 1], [0], [0]>} : vector<4x16x8xbf16>, vector<4x16x8xbf16>, vector<4x16x16xf32> -> vector<4x16x16xf32>
    "tpu.trace_stop"() : () -> ()
    %46 = vector.shape_cast %35 : vector<16x16xf32> to vector<1x16x16xf32>
    %47 = vector.broadcast %46 : vector<1x16x16xf32> to vector<4x16x16xf32>
    %48 = arith.addf %45, %47 : vector<4x16x16xf32>
    %cst_40 = arith.constant dense<0xFF800000> : vector<4x16xf32>
    %49 = vector.multi_reduction <maximumf>, %48, %cst_40 [2] : vector<4x16x16xf32> to vector<4x16xf32>
    %50 = vector.shape_cast %49 : vector<4x16xf32> to vector<4x16x1xf32>
    %51 = vector.broadcast %50 : vector<4x16x1xf32> to vector<4x16x16xf32>
    %52 = arith.subf %48, %51 : vector<4x16x16xf32>
    %53 = math.exp %52 : vector<4x16x16xf32>
    %cst_41 = arith.constant dense<0.000000e+00> : vector<4x16xf32>
    %54 = vector.multi_reduction <add>, %53, %cst_41 [2] : vector<4x16x16xf32> to vector<4x16xf32>
    %55 = vector.shape_cast %54 : vector<4x16xf32> to vector<4x16x1xf32>
    %56 = tpu.reciprocal %55 {approx = true} : vector<4x16x1xf32> -> vector<4x16x1xf32>
    %57 = vector.broadcast %56 : vector<4x16x1xf32> to vector<4x16x16xf32>
    %58 = arith.mulf %53, %57 : vector<4x16x16xf32>
    %59 = arith.truncf %58 : vector<4x16x16xf32> to vector<4x16x16xbf16>
    "tpu.trace_start"() <{level = 10 : i32, message = "hqk,hke->hqe"}> : () -> ()
    %cst_42 = arith.constant dense<0.000000e+00> : vector<4x16x8xf32>
    %60 = tpu.matmul %59, %44, %cst_42 {dimension_numbers = #tpu.dot_dimension_numbers<[2], [1], [1], [2], [0, 0, 0, 1, 1, 2], [0], [0]>} : vector<4x16x16xbf16>, vector<4x16x8xbf16>, vector<4x16x8xf32> -> vector<4x16x8xf32>
    "tpu.trace_stop"() : () -> ()
    %61 = tpu.transpose %60, [1, 0, 2] : vector<4x16x8xf32> -> vector<16x4x8xf32>
    %62 = vector.shape_cast %61 : vector<16x4x8xf32> to vector<16x32xf32>
    %63 = arith.truncf %62 : vector<16x32xf32> to vector<16x32xbf16>
    %c0_43 = arith.constant 0 : index
    %c0_44 = arith.constant 0 : index
    %c0_45 = arith.constant 0 : index
    %64 = vector.load %arg8[%c0_43, %c0_44, %c0_45] : memref<1x32x32xbf16, #tpu.memory_space<vmem>>, vector<1x32x32xbf16>
    %65 = vector.shape_cast %64 : vector<1x32x32xbf16> to vector<32x32xbf16>
    %cst_46 = arith.constant dense<0.000000e+00> : vector<16x32xf32>
    %66 = tpu.matmul %63, %65, %cst_46 {dimension_numbers = #tpu.dot_dimension_numbers<[1], [0], [0], [1], [0, 0, 1, 1], [], []>} : vector<16x32xbf16>, vector<32x32xbf16>, vector<16x32xf32> -> vector<16x32xf32>
    %c0_47 = arith.constant 0 : index
    %c0_48 = arith.constant 0 : index
    %c0_49 = arith.constant 0 : index
    %67 = vector.load %arg9[%c0_47, %c0_48, %c0_49] : memref<1x1x32xf32, #tpu.memory_space<vmem>>, vector<1x1x32xf32>
    %68 = vector.shape_cast %67 : vector<1x1x32xf32> to vector<1x32xf32>
    %69 = vector.broadcast %68 : vector<1x32xf32> to vector<16x32xf32>
    %70 = arith.addf %66, %69 : vector<16x32xf32>
    %71 = arith.addf %3, %70 : vector<16x32xf32>
    %72 = vector.extract_strided_slice %7 {offsets = [0, 0], sizes = [1, 32], strides = [1, 1]} : vector<3x32xf32> to vector<1x32xf32>
    %73 = vector.extract_strided_slice %9 {offsets = [0, 0], sizes = [1, 32], strides = [1, 1]} : vector<3x32xf32> to vector<1x32xf32>
    %cst_50 = arith.constant dense<0.000000e+00> : vector<16xf32>
    %74 = vector.multi_reduction <add>, %71, %cst_50 [1] : vector<16x32xf32> to vector<16xf32>
    %75 = vector.shape_cast %74 : vector<16xf32> to vector<16x1xf32>
    %cst_51 = arith.constant 3.200000e+01 : f32
    %76 = vector.broadcast %cst_51 : f32 to vector<16x1xf32>
    %77 = arith.divf %75, %76 : vector<16x1xf32>
    %78 = vector.broadcast %77 : vector<16x1xf32> to vector<16x32xf32>
    %79 = arith.subf %71, %78 : vector<16x32xf32>
    %80 = arith.mulf %79, %79 : vector<16x32xf32>
    %cst_52 = arith.constant dense<0.000000e+00> : vector<16xf32>
    %81 = vector.multi_reduction <add>, %80, %cst_52 [1] : vector<16x32xf32> to vector<16xf32>
    %82 = vector.shape_cast %81 : vector<16xf32> to vector<16x1xf32>
    %cst_53 = arith.constant 3.200000e+01 : f32
    %83 = vector.broadcast %cst_53 : f32 to vector<16x1xf32>
    %84 = arith.divf %82, %83 : vector<16x1xf32>
    %85 = vector.broadcast %77 : vector<16x1xf32> to vector<16x32xf32>
    %86 = arith.subf %71, %85 : vector<16x32xf32>
    %cst_54 = arith.constant 9.99999974E-6 : f32
    %87 = vector.broadcast %cst_54 : f32 to vector<16x1xf32>
    %88 = arith.addf %84, %87 : vector<16x1xf32>
    %89 = math.rsqrt %88 : vector<16x1xf32>
    %90 = vector.broadcast %89 : vector<16x1xf32> to vector<16x32xf32>
    %91 = arith.mulf %86, %90 : vector<16x32xf32>
    %92 = vector.broadcast %72 : vector<1x32xf32> to vector<16x32xf32>
    %93 = arith.mulf %91, %92 : vector<16x32xf32>
    %94 = vector.broadcast %73 : vector<1x32xf32> to vector<16x32xf32>
    %95 = arith.addf %93, %94 : vector<16x32xf32>
    %96 = arith.truncf %95 : vector<16x32xf32> to vector<16x32xbf16>
    %c0_55 = arith.constant 0 : index
    %c0_56 = arith.constant 0 : index
    %c0_57 = arith.constant 0 : index
    %c0_58 = arith.constant 0 : index
    %97 = vector.load %arg10[%c0_55, %c0_56, %c0_57, %c0_58] : memref<1x3x32x32xbf16, #tpu.memory_space<vmem>>, vector<1x1x32x32xbf16>
    %98 = vector.shape_cast %97 : vector<1x1x32x32xbf16> to vector<32x32xbf16>
    %cst_59 = arith.constant dense<0.000000e+00> : vector<16x32xf32>
    %99 = tpu.matmul %96, %98, %cst_59 {dimension_numbers = #tpu.dot_dimension_numbers<[1], [0], [0], [1], [0, 0, 1, 1], [], []>} : vector<16x32xbf16>, vector<32x32xbf16>, vector<16x32xf32> -> vector<16x32xf32>
    %c0_60 = arith.constant 0 : index
    %c0_61 = arith.constant 0 : index
    %c0_62 = arith.constant 0 : index
    %c0_63 = arith.constant 0 : index
    %100 = vector.load %arg11[%c0_60, %c0_61, %c0_62, %c0_63] : memref<1x3x1x32xf32, #tpu.memory_space<vmem>>, vector<1x1x1x32xf32>
    %101 = vector.shape_cast %100 : vector<1x1x1x32xf32> to vector<1x32xf32>
    %102 = vector.broadcast %101 : vector<1x32xf32> to vector<16x32xf32>
    %103 = arith.addf %99, %102 : vector<16x32xf32>
    %cst_64 = arith.constant 0.353553385 : f32
    %104 = vector.broadcast %cst_64 : f32 to vector<16x32xf32>
    %105 = arith.mulf %103, %104 : vector<16x32xf32>
    %c0_65 = arith.constant 0 : index
    %c1_66 = arith.constant 1 : index
    %c0_67 = arith.constant 0 : index
    %c0_68 = arith.constant 0 : index
    %106 = vector.load %arg10[%c0_65, %c1_66, %c0_67, %c0_68] : memref<1x3x32x32xbf16, #tpu.memory_space<vmem>>, vector<1x1x32x32xbf16>
    %107 = vector.shape_cast %106 : vector<1x1x32x32xbf16> to vector<32x32xbf16>
    %cst_69 = arith.constant dense<0.000000e+00> : vector<32x32xf32>
    %108 = tpu.matmul %5, %107, %cst_69 {dimension_numbers = #tpu.dot_dimension_numbers<[1], [0], [0], [1], [0, 0, 1, 1], [], []>} : vector<32x32xbf16>, vector<32x32xbf16>, vector<32x32xf32> -> vector<32x32xf32>
    %c0_70 = arith.constant 0 : index
    %c1_71 = arith.constant 1 : index
    %c0_72 = arith.constant 0 : index
    %c0_73 = arith.constant 0 : index
    %109 = vector.load %arg11[%c0_70, %c1_71, %c0_72, %c0_73] : memref<1x3x1x32xf32, #tpu.memory_space<vmem>>, vector<1x1x1x32xf32>
    %110 = vector.shape_cast %109 : vector<1x1x1x32xf32> to vector<1x32xf32>
    %111 = vector.broadcast %110 : vector<1x32xf32> to vector<32x32xf32>
    %112 = arith.addf %108, %111 : vector<32x32xf32>
    %c0_74 = arith.constant 0 : index
    %c2_75 = arith.constant 2 : index
    %c0_76 = arith.constant 0 : index
    %c0_77 = arith.constant 0 : index
    %113 = vector.load %arg10[%c0_74, %c2_75, %c0_76, %c0_77] : memref<1x3x32x32xbf16, #tpu.memory_space<vmem>>, vector<1x1x32x32xbf16>
    %114 = vector.shape_cast %113 : vector<1x1x32x32xbf16> to vector<32x32xbf16>
    %cst_78 = arith.constant dense<0.000000e+00> : vector<32x32xf32>
    %115 = tpu.matmul %5, %114, %cst_78 {dimension_numbers = #tpu.dot_dimension_numbers<[1], [0], [0], [1], [0, 0, 1, 1], [], []>} : vector<32x32xbf16>, vector<32x32xbf16>, vector<32x32xf32> -> vector<32x32xf32>
    %c0_79 = arith.constant 0 : index
    %c2_80 = arith.constant 2 : index
    %c0_81 = arith.constant 0 : index
    %c0_82 = arith.constant 0 : index
    %116 = vector.load %arg11[%c0_79, %c2_80, %c0_81, %c0_82] : memref<1x3x1x32xf32, #tpu.memory_space<vmem>>, vector<1x1x1x32xf32>
    %117 = vector.shape_cast %116 : vector<1x1x1x32xf32> to vector<1x32xf32>
    %118 = vector.broadcast %117 : vector<1x32xf32> to vector<32x32xf32>
    %119 = arith.addf %115, %118 : vector<32x32xf32>
    %c0_83 = arith.constant 0 : index
    %c0_84 = arith.constant 0 : index
    %120 = vector.load %arg3[%c0_83, %c0_84] : memref<16x32xf32, #tpu.memory_space<vmem>>, vector<16x32xf32>
    %121 = vector.shape_cast %105 : vector<16x32xf32> to vector<16x4x8xf32>
    %122 = tpu.transpose %121, [1, 0, 2] : vector<16x4x8xf32> -> vector<4x16x8xf32>
    %123 = arith.truncf %122 : vector<4x16x8xf32> to vector<4x16x8xbf16>
    %124 = vector.shape_cast %112 : vector<32x32xf32> to vector<32x4x8xf32>
    %125 = tpu.transpose %124, [1, 0, 2] : vector<32x4x8xf32> -> vector<4x32x8xf32>
    %126 = arith.truncf %125 : vector<4x32x8xf32> to vector<4x32x8xbf16>
    %127 = vector.shape_cast %119 : vector<32x32xf32> to vector<32x4x8xf32>
    %128 = tpu.transpose %127, [1, 0, 2] : vector<32x4x8xf32> -> vector<4x32x8xf32>
    %129 = arith.truncf %128 : vector<4x32x8xf32> to vector<4x32x8xbf16>
    "tpu.trace_start"() <{level = 10 : i32, message = "hqe,hke->hqk"}> : () -> ()
    %cst_85 = arith.constant dense<0.000000e+00> : vector<4x16x32xf32>
    %130 = tpu.matmul %123, %126, %cst_85 {dimension_numbers = #tpu.dot_dimension_numbers<[2], [2], [1], [1], [0, 0, 0, 1, 1, 1], [0], [0]>} : vector<4x16x8xbf16>, vector<4x32x8xbf16>, vector<4x16x32xf32> -> vector<4x16x32xf32>
    "tpu.trace_stop"() : () -> ()
    %131 = vector.shape_cast %120 : vector<16x32xf32> to vector<1x16x32xf32>
    %132 = vector.broadcast %131 : vector<1x16x32xf32> to vector<4x16x32xf32>
    %133 = arith.addf %130, %132 : vector<4x16x32xf32>
    %cst_86 = arith.constant dense<0xFF800000> : vector<4x16xf32>
    %134 = vector.multi_reduction <maximumf>, %133, %cst_86 [2] : vector<4x16x32xf32> to vector<4x16xf32>
    %135 = vector.shape_cast %134 : vector<4x16xf32> to vector<4x16x1xf32>
    %136 = vector.broadcast %135 : vector<4x16x1xf32> to vector<4x16x32xf32>
    %137 = arith.subf %133, %136 : vector<4x16x32xf32>
    %138 = math.exp %137 : vector<4x16x32xf32>
    %cst_87 = arith.constant dense<0.000000e+00> : vector<4x16xf32>
    %139 = vector.multi_reduction <add>, %138, %cst_87 [2] : vector<4x16x32xf32> to vector<4x16xf32>
    %140 = vector.shape_cast %139 : vector<4x16xf32> to vector<4x16x1xf32>
    %141 = tpu.reciprocal %140 {approx = true} : vector<4x16x1xf32> -> vector<4x16x1xf32>
    %142 = vector.broadcast %141 : vector<4x16x1xf32> to vector<4x16x32xf32>
    %143 = arith.mulf %138, %142 : vector<4x16x32xf32>
    %144 = arith.truncf %143 : vector<4x16x32xf32> to vector<4x16x32xbf16>
    "tpu.trace_start"() <{level = 10 : i32, message = "hqk,hke->hqe"}> : () -> ()
    %cst_88 = arith.constant dense<0.000000e+00> : vector<4x16x8xf32>
    %145 = tpu.matmul %144, %129, %cst_88 {dimension_numbers = #tpu.dot_dimension_numbers<[2], [1], [1], [2], [0, 0, 0, 1, 1, 2], [0], [0]>} : vector<4x16x32xbf16>, vector<4x32x8xbf16>, vector<4x16x8xf32> -> vector<4x16x8xf32>
    "tpu.trace_stop"() : () -> ()
    %146 = tpu.transpose %145, [1, 0, 2] : vector<4x16x8xf32> -> vector<16x4x8xf32>
    %147 = vector.shape_cast %146 : vector<16x4x8xf32> to vector<16x32xf32>
    %148 = arith.truncf %147 : vector<16x32xf32> to vector<16x32xbf16>
    %c0_89 = arith.constant 0 : index
    %c0_90 = arith.constant 0 : index
    %c0_91 = arith.constant 0 : index
    %149 = vector.load %arg12[%c0_89, %c0_90, %c0_91] : memref<1x32x32xbf16, #tpu.memory_space<vmem>>, vector<1x32x32xbf16>
    %150 = vector.shape_cast %149 : vector<1x32x32xbf16> to vector<32x32xbf16>
    %cst_92 = arith.constant dense<0.000000e+00> : vector<16x32xf32>
    %151 = tpu.matmul %148, %150, %cst_92 {dimension_numbers = #tpu.dot_dimension_numbers<[1], [0], [0], [1], [0, 0, 1, 1], [], []>} : vector<16x32xbf16>, vector<32x32xbf16>, vector<16x32xf32> -> vector<16x32xf32>
    %c0_93 = arith.constant 0 : index
    %c0_94 = arith.constant 0 : index
    %c0_95 = arith.constant 0 : index
    %152 = vector.load %arg13[%c0_93, %c0_94, %c0_95] : memref<1x1x32xf32, #tpu.memory_space<vmem>>, vector<1x1x32xf32>
    %153 = vector.shape_cast %152 : vector<1x1x32xf32> to vector<1x32xf32>
    %154 = vector.broadcast %153 : vector<1x32xf32> to vector<16x32xf32>
    %155 = arith.addf %151, %154 : vector<16x32xf32>
    %156 = arith.addf %95, %155 : vector<16x32xf32>
    %157 = vector.extract_strided_slice %7 {offsets = [1, 0], sizes = [1, 32], strides = [1, 1]} : vector<3x32xf32> to vector<1x32xf32>
    %158 = vector.extract_strided_slice %9 {offsets = [1, 0], sizes = [1, 32], strides = [1, 1]} : vector<3x32xf32> to vector<1x32xf32>
    %cst_96 = arith.constant dense<0.000000e+00> : vector<16xf32>
    %159 = vector.multi_reduction <add>, %156, %cst_96 [1] : vector<16x32xf32> to vector<16xf32>
    %160 = vector.shape_cast %159 : vector<16xf32> to vector<16x1xf32>
    %cst_97 = arith.constant 3.200000e+01 : f32
    %161 = vector.broadcast %cst_97 : f32 to vector<16x1xf32>
    %162 = arith.divf %160, %161 : vector<16x1xf32>
    %163 = vector.broadcast %162 : vector<16x1xf32> to vector<16x32xf32>
    %164 = arith.subf %156, %163 : vector<16x32xf32>
    %165 = arith.mulf %164, %164 : vector<16x32xf32>
    %cst_98 = arith.constant dense<0.000000e+00> : vector<16xf32>
    %166 = vector.multi_reduction <add>, %165, %cst_98 [1] : vector<16x32xf32> to vector<16xf32>
    %167 = vector.shape_cast %166 : vector<16xf32> to vector<16x1xf32>
    %cst_99 = arith.constant 3.200000e+01 : f32
    %168 = vector.broadcast %cst_99 : f32 to vector<16x1xf32>
    %169 = arith.divf %167, %168 : vector<16x1xf32>
    %170 = vector.broadcast %162 : vector<16x1xf32> to vector<16x32xf32>
    %171 = arith.subf %156, %170 : vector<16x32xf32>
    %cst_100 = arith.constant 9.99999974E-6 : f32
    %172 = vector.broadcast %cst_100 : f32 to vector<16x1xf32>
    %173 = arith.addf %169, %172 : vector<16x1xf32>
    %174 = math.rsqrt %173 : vector<16x1xf32>
    %175 = vector.broadcast %174 : vector<16x1xf32> to vector<16x32xf32>
    %176 = arith.mulf %171, %175 : vector<16x32xf32>
    %177 = vector.broadcast %157 : vector<1x32xf32> to vector<16x32xf32>
    %178 = arith.mulf %176, %177 : vector<16x32xf32>
    %179 = vector.broadcast %158 : vector<1x32xf32> to vector<16x32xf32>
    %180 = arith.addf %178, %179 : vector<16x32xf32>
    %181 = arith.truncf %180 : vector<16x32xf32> to vector<16x32xbf16>
    %c0_101 = arith.constant 0 : index
    %c0_102 = arith.constant 0 : index
    %c0_103 = arith.constant 0 : index
    %182 = vector.load %arg16[%c0_101, %c0_102, %c0_103] : memref<1x32x64xbf16, #tpu.memory_space<vmem>>, vector<1x32x64xbf16>
    %183 = vector.shape_cast %182 : vector<1x32x64xbf16> to vector<32x64xbf16>
    %cst_104 = arith.constant dense<0.000000e+00> : vector<16x64xf32>
    %184 = tpu.matmul %181, %183, %cst_104 {dimension_numbers = #tpu.dot_dimension_numbers<[1], [0], [0], [1], [0, 0, 1, 1], [], []>} : vector<16x32xbf16>, vector<32x64xbf16>, vector<16x64xf32> -> vector<16x64xf32>
    %c0_105 = arith.constant 0 : index
    %c0_106 = arith.constant 0 : index
    %c0_107 = arith.constant 0 : index
    %185 = vector.load %arg17[%c0_105, %c0_106, %c0_107] : memref<1x1x64xf32, #tpu.memory_space<vmem>>, vector<1x1x64xf32>
    %186 = vector.shape_cast %185 : vector<1x1x64xf32> to vector<1x64xf32>
    %187 = vector.broadcast %186 : vector<1x64xf32> to vector<16x64xf32>
    %188 = arith.addf %184, %187 : vector<16x64xf32>
    %cst_108 = arith.constant 0.000000e+00 : f32
    %189 = vector.broadcast %cst_108 : f32 to vector<16x64xf32>
    %190 = arith.maximumf %188, %189 : vector<16x64xf32>
    %191 = arith.truncf %190 : vector<16x64xf32> to vector<16x64xbf16>
    %c0_109 = arith.constant 0 : index
    %c0_110 = arith.constant 0 : index
    %c0_111 = arith.constant 0 : index
    %192 = vector.load %arg18[%c0_109, %c0_110, %c0_111] : memref<1x64x32xbf16, #tpu.memory_space<vmem>>, vector<1x64x32xbf16>
    %193 = vector.shape_cast %192 : vector<1x64x32xbf16> to vector<64x32xbf16>
    %cst_112 = arith.constant dense<0.000000e+00> : vector<16x32xf32>
    %194 = tpu.matmul %191, %193, %cst_112 {dimension_numbers = #tpu.dot_dimension_numbers<[1], [0], [0], [1], [0, 0, 1, 1], [], []>} : vector<16x64xbf16>, vector<64x32xbf16>, vector<16x32xf32> -> vector<16x32xf32>
    %c0_113 = arith.constant 0 : index
    %c0_114 = arith.constant 0 : index
    %c0_115 = arith.constant 0 : index
    %195 = vector.load %arg19[%c0_113, %c0_114, %c0_115] : memref<1x1x32xf32, #tpu.memory_space<vmem>>, vector<1x1x32xf32>
    %196 = vector.shape_cast %195 : vector<1x1x32xf32> to vector<1x32xf32>
    %197 = vector.broadcast %196 : vector<1x32xf32> to vector<16x32xf32>
    %198 = arith.addf %194, %197 : vector<16x32xf32>
    %199 = arith.addf %180, %198 : vector<16x32xf32>
    %200 = vector.extract_strided_slice %7 {offsets = [2, 0], sizes = [1, 32], strides = [1, 1]} : vector<3x32xf32> to vector<1x32xf32>
    %201 = vector.extract_strided_slice %9 {offsets = [2, 0], sizes = [1, 32], strides = [1, 1]} : vector<3x32xf32> to vector<1x32xf32>
    %cst_116 = arith.constant dense<0.000000e+00> : vector<16xf32>
    %202 = vector.multi_reduction <add>, %199, %cst_116 [1] : vector<16x32xf32> to vector<16xf32>
    %203 = vector.shape_cast %202 : vector<16xf32> to vector<16x1xf32>
    %cst_117 = arith.constant 3.200000e+01 : f32
    %204 = vector.broadcast %cst_117 : f32 to vector<16x1xf32>
    %205 = arith.divf %203, %204 : vector<16x1xf32>
    %206 = vector.broadcast %205 : vector<16x1xf32> to vector<16x32xf32>
    %207 = arith.subf %199, %206 : vector<16x32xf32>
    %208 = arith.mulf %207, %207 : vector<16x32xf32>
    %cst_118 = arith.constant dense<0.000000e+00> : vector<16xf32>
    %209 = vector.multi_reduction <add>, %208, %cst_118 [1] : vector<16x32xf32> to vector<16xf32>
    %210 = vector.shape_cast %209 : vector<16xf32> to vector<16x1xf32>
    %cst_119 = arith.constant 3.200000e+01 : f32
    %211 = vector.broadcast %cst_119 : f32 to vector<16x1xf32>
    %212 = arith.divf %210, %211 : vector<16x1xf32>
    %213 = vector.broadcast %205 : vector<16x1xf32> to vector<16x32xf32>
    %214 = arith.subf %199, %213 : vector<16x32xf32>
    %cst_120 = arith.constant 9.99999974E-6 : f32
    %215 = vector.broadcast %cst_120 : f32 to vector<16x1xf32>
    %216 = arith.addf %212, %215 : vector<16x1xf32>
    %217 = math.rsqrt %216 : vector<16x1xf32>
    %218 = vector.broadcast %217 : vector<16x1xf32> to vector<16x32xf32>
    %219 = arith.mulf %214, %218 : vector<16x32xf32>
    %220 = vector.broadcast %200 : vector<1x32xf32> to vector<16x32xf32>
    %221 = arith.mulf %219, %220 : vector<16x32xf32>
    %222 = vector.broadcast %201 : vector<1x32xf32> to vector<16x32xf32>
    %223 = arith.addf %221, %222 : vector<16x32xf32>
    %c0_121 = arith.constant 0 : index
    %c0_122 = arith.constant 0 : index
    %224 = vector.load %arg22[%c0_121, %c0_122] : memref<16x32xf32, #tpu.memory_space<vmem>>, vector<16x32xf32>
    tpu.vector_store %arg22[%c0_121, %c0_122], %223 {strides = array<i32>} : memref<16x32xf32, #tpu.memory_space<vmem>>, vector<16x32xf32>,
    %225 = vector.extract_strided_slice %143 {offsets = [0, 0, 0], sizes = [4, 8, 16], strides = [1, 1, 1]} : vector<4x16x32xf32> to vector<4x8x16xf32>
    %226 = vector.shape_cast %225 : vector<4x8x16xf32> to vector<4x128xf32>
    %c0_123 = arith.constant 0 : index
    %c0_124 = arith.constant 0 : index
    %c0_125 = arith.constant 0 : index
    %c0_126 = arith.constant 0 : index
    %227 = vector.load %arg21[%c0_123, %c0_124, %c0_125, %c0_126] : memref<1x2x4x128xf32, #tpu.memory_space<vmem>>, vector<1x1x4x128xf32>
    %228 = vector.shape_cast %227 : vector<1x1x4x128xf32> to vector<4x128xf32>
    %229 = vector.shape_cast %226 : vector<4x128xf32> to vector<1x1x4x128xf32>
    tpu.vector_store %arg21[%c0_123, %c0_124, %c0_125, %c0_126], %229 {strides = array<i32>} : memref<1x2x4x128xf32, #tpu.memory_space<vmem>>, vector<1x1x4x128xf32>,
    %230 = vector.extract_strided_slice %143 {offsets = [0, 8, 16], sizes = [4, 8, 16], strides = [1, 1, 1]} : vector<4x16x32xf32> to vector<4x8x16xf32>
    %231 = vector.shape_cast %230 : vector<4x8x16xf32> to vector<4x128xf32>
    %c0_127 = arith.constant 0 : index
    %c1_128 = arith.constant 1 : index
    %c0_129 = arith.constant 0 : index
    %c0_130 = arith.constant 0 : index
    %232 = vector.load %arg21[%c0_127, %c1_128, %c0_129, %c0_130] : memref<1x2x4x128xf32, #tpu.memory_space<vmem>>, vector<1x1x4x128xf32>
    %233 = vector.shape_cast %232 : vector<1x1x4x128xf32> to vector<4x128xf32>
    %234 = vector.shape_cast %231 : vector<4x128xf32> to vector<1x1x4x128xf32>
    tpu.vector_store %arg21[%c0_127, %c1_128, %c0_129, %c0_130], %234 {strides = array<i32>} : memref<1x2x4x128xf32, #tpu.memory_space<vmem>>, vector<1x1x4x128xf32>,
    %c1_i32 = arith.constant 1 : i32
    %235 = arith.cmpi eq, %arg1, %c1_i32 : i32
    %236 = arith.extui %235 : i1 to i32
    %c0_i32_131 = arith.constant 0 : i32
    %237 = arith.cmpi ne, %236, %c0_i32_131 : i32
    scf.if %237 {
      %c0_132 = arith.constant 0 : index
      %c0_133 = arith.constant 0 : index
      %c0_134 = arith.constant 0 : index
      %238 = vector.load %arg20[%c0_132, %c0_133, %c0_134] : memref<1x16x32xf32, #tpu.memory_space<vmem>>, vector<1x16x32xf32>
      %239 = vector.shape_cast %238 : vector<1x16x32xf32> to vector<16x32xf32>
      %240 = vector.shape_cast %223 : vector<16x32xf32> to vector<1x16x32xf32>
      tpu.vector_store %arg20[%c0_132, %c0_133, %c0_134], %240 {strides = array<i32>} : memref<1x16x32xf32, #tpu.memory_space<vmem>>, vector<1x16x32xf32>,
    } else {
    }
    return
  }
  func.func @transform_0(%arg0: i32, %arg1: i32) -> (i32, i32, i32) {
    %c0_i32 = arith.constant 0 : i32
    %c0_i32_0 = arith.constant 0 : i32
    %c0_i32_1 = arith.constant 0 : i32
    return %arg0, %c0_i32, %c0_i32_0 : i32, i32, i32
  }
  func.func @transform_1(%arg0: i32, %arg1: i32) -> (i32, i32) {
    %c0_i32 = arith.constant 0 : i32
    %c0_i32_0 = arith.constant 0 : i32
    %c0_i32_1 = arith.constant 0 : i32
    return %c0_i32, %c0_i32_0 : i32, i32
  }
  func.func @transform_2(%arg0: i32, %arg1: i32) -> (i32, i32, i32) {
    %c0_i32 = arith.constant 0 : i32
    %c0_i32_0 = arith.constant 0 : i32
    %c0_i32_1 = arith.constant 0 : i32
    return %arg0, %c0_i32, %c0_i32_0 : i32, i32, i32
  }
  func.func @transform_3(%arg0: i32, %arg1: i32) -> (i32, i32, i32) {
    %c0_i32 = arith.constant 0 : i32
    %c0_i32_0 = arith.constant 0 : i32
    %c0_i32_1 = arith.constant 0 : i32
    return %arg0, %c0_i32, %c0_i32_0 : i32, i32, i32
  }
  func.func @transform_4(%arg0: i32, %arg1: i32) -> (i32, i32, i32, i32) {
    %c0_i32 = arith.constant 0 : i32
    %c0_i32_0 = arith.constant 0 : i32
    %c0_i32_1 = arith.constant 0 : i32
    %c0_i32_2 = arith.constant 0 : i32
    return %arg1, %c0_i32, %c0_i32_0, %c0_i32_1 : i32, i32, i32, i32
  }
  func.func @transform_5(%arg0: i32, %arg1: i32) -> (i32, i32, i32, i32) {
    %c0_i32 = arith.constant 0 : i32
    %c0_i32_0 = arith.constant 0 : i32
    %c0_i32_1 = arith.constant 0 : i32
    %c0_i32_2 = arith.constant 0 : i32
    return %arg1, %c0_i32, %c0_i32_0, %c0_i32_1 : i32, i32, i32, i32
  }
  func.func @transform_6(%arg0: i32, %arg1: i32) -> (i32, i32, i32) {
    %c0_i32 = arith.constant 0 : i32
    %c0_i32_0 = arith.constant 0 : i32
    %c0_i32_1 = arith.constant 0 : i32
    return %arg1, %c0_i32, %c0_i32_0 : i32, i32, i32
  }
  func.func @transform_7(%arg0: i32, %arg1: i32) -> (i32, i32, i32) {
    %c0_i32 = arith.constant 0 : i32
    %c0_i32_0 = arith.constant 0 : i32
    %c0_i32_1 = arith.constant 0 : i32
    return %arg1, %c0_i32, %c0_i32_0 : i32, i32, i32
  }
  func.func @transform_8(%arg0: i32, %arg1: i32) -> (i32, i32, i32, i32) {
    %c0_i32 = arith.constant 0 : i32
    %c0_i32_0 = arith.constant 0 : i32
    %c0_i32_1 = arith.constant 0 : i32
    %c0_i32_2 = arith.constant 0 : i32
    return %arg1, %c0_i32, %c0_i32_0, %c0_i32_1 : i32, i32, i32, i32
  }
  func.func @transform_9(%arg0: i32, %arg1: i32) -> (i32, i32, i32, i32) {
    %c0_i32 = arith.constant 0 : i32
    %c0_i32_0 = arith.constant 0 : i32
    %c0_i32_1 = arith.constant 0 : i32
    %c0_i32_2 = arith.constant 0 : i32
    return %arg1, %c0_i32, %c0_i32_0, %c0_i32_1 : i32, i32, i32, i32
  }
  func.func @transform_10(%arg0: i32, %arg1: i32) -> (i32, i32, i32) {
    %c0_i32 = arith.constant 0 : i32
    %c0_i32_0 = arith.constant 0 : i32
    %c0_i32_1 = arith.constant 0 : i32
    return %arg1, %c0_i32, %c0_i32_0 : i32, i32, i32
  }
  func.func @transform_11(%arg0: i32, %arg1: i32) -> (i32, i32, i32) {
    %c0_i32 = arith.constant 0 : i32
    %c0_i32_0 = arith.constant 0 : i32
    %c0_i32_1 = arith.constant 0 : i32
    return %arg1, %c0_i32, %c0_i32_0 : i32, i32, i32
  }
  func.func @transform_12(%arg0: i32, %arg1: i32) -> (i32, i32, i32) {
    %c0_i32 = arith.constant 0 : i32
    %c0_i32_0 = arith.constant 0 : i32
    %c0_i32_1 = arith.constant 0 : i32
    return %arg1, %c0_i32, %c0_i32_0 : i32, i32, i32
  }
  func.func @transform_13(%arg0: i32, %arg1: i32) -> (i32, i32, i32) {
    %c0_i32 = arith.constant 0 : i32
    %c0_i32_0 = arith.constant 0 : i32
    %c0_i32_1 = arith.constant 0 : i32
    return %arg1, %c0_i32, %c0_i32_0 : i32, i32, i32
  }
  func.func @transform_14(%arg0: i32, %arg1: i32) -> (i32, i32, i32) {
    %c0_i32 = arith.constant 0 : i32
    %c0_i32_0 = arith.constant 0 : i32
    %c0_i32_1 = arith.constant 0 : i32
    return %arg1, %c0_i32, %c0_i32_0 : i32, i32, i32
  }
  func.func @transform_15(%arg0: i32, %arg1: i32) -> (i32, i32, i32) {
    %c0_i32 = arith.constant 0 : i32
    %c0_i32_0 = arith.constant 0 : i32
    %c0_i32_1 = arith.constant 0 : i32
    return %arg1, %c0_i32, %c0_i32_0 : i32, i32, i32
  }
  func.func @transform_16(%arg0: i32, %arg1: i32) -> (i32, i32, i32) {
    %c0_i32 = arith.constant 0 : i32
    %c0_i32_0 = arith.constant 0 : i32
    %c0_i32_1 = arith.constant 0 : i32
    return %arg1, %c0_i32, %c0_i32_0 : i32, i32, i32
  }
  func.func @transform_17(%arg0: i32, %arg1: i32) -> (i32, i32, i32) {
    %c0_i32 = arith.constant 0 : i32
    %c0_i32_0 = arith.constant 0 : i32
    %c0_i32_1 = arith.constant 0 : i32
    return %arg1, %c0_i32, %c0_i32_0 : i32, i32, i32
  }
  func.func @transform_18(%arg0: i32, %arg1: i32) -> (i32, i32, i32) {
    %c0_i32 = arith.constant 0 : i32
    %c0_i32_0 = arith.constant 0 : i32
    %c0_i32_1 = arith.constant 0 : i32
    return %arg0, %c0_i32, %c0_i32_0 : i32, i32, i32
  }
  func.func @transform_19(%arg0: i32, %arg1: i32) -> (i32, i32, i32, i32) {
    %c1_i32 = arith.constant 1 : i32
    %0 = arith.muli %arg1, %c1_i32 : i32
    %1 = arith.addi %0, %arg0 : i32
    %c0_i32 = arith.constant 0 : i32
    %c0_i32_0 = arith.constant 0 : i32
    %c0_i32_1 = arith.constant 0 : i32
    %c0_i32_2 = arith.constant 0 : i32
    return %1, %c0_i32, %c0_i32_0, %c0_i32_1 : i32, i32, i32, i32
  }
}

</mosaic_0001>

<bundles_post_ra>
// kernel: decoder_forward_pallas.1
= control target key start
LH: loop header
LB: loop body
LE: loop exit
PB: predicated region body
PF: predicated region fallthrough
CT: control target
= control target key end

     0   :  { %s5846_s30 = smov 0   ;;  %s5848_s20 = smov 0   ;;  %s7577_s0 = inlined_call_operand.vmem [shape: f32[1,16,16], index: 0, kind: input, shape index: {}]   ;;  %s7578_s1 = inlined_call_operand.vmem [shape: f32[16,32], index: 1, kind: input, shape index: {}]   ;;  %s7579_s2 = inlined_call_operand.vmem [shape: f32[1,16,32], index: 2, kind: input, shape index: {}]   ;;  %s7580_s3 = inlined_call_operand.vmem [shape: bf16[1,32,32], index: 3, kind: input, shape index: {}]   ;;  %s7581_s4 = inlined_call_operand.vmem [shape: bf16[2,3,32,32], index: 4, kind: input, shape index: {}]   ;;  %s7582_s5 = inlined_call_operand.vmem [shape: f32[2,3,1,32], index: 5, kind: input, shape index: {}]   ;;  %s7583_s6 = inlined_call_operand.vmem [shape: bf16[2,32,32], index: 6, kind: input, shape index: {}]   ;;  %s7584_s7 = inlined_call_operand.vmem [shape: f32[2,1,32], index: 7, kind: input, shape index: {}]   ;;  %s7585_s8 = inlined_call_operand.vmem [shape: bf16[2,3,32,32], index: 8, kind: input, shape index: {}]   ;;  %s7586_s9 = inlined_call_operand.vmem [shape: f32[2,3,1,32], index: 9, kind: input, shape index: {}]   ;;  %s7587_s10 = inlined_call_operand.vmem [shape: bf16[2,32,32], index: 10, kind: input, shape index: {}]   ;;  %s7588_s11 = inlined_call_operand.vmem [shape: f32[2,1,32], index: 11, kind: input, shape index: {}]   ;;  %s7589_s12 = inlined_call_operand.vmem [shape: f32[2,3,32], index: 12, kind: input, shape index: {}]   ;;  %s7590_s13 = inlined_call_operand.vmem [shape: f32[2,3,32], index: 13, kind: input, shape index: {}]   ;;  %s7591_s14 = inlined_call_operand.vmem [shape: bf16[2,32,64], index: 14, kind: input, shape index: {}]   ;;  %s7592_s15 = inlined_call_operand.vmem [shape: f32[2,1,64], index: 15, kind: input, shape index: {}]   ;;  %s7593_s16 = inlined_call_operand.vmem [shape: bf16[2,64,32], index: 16, kind: input, shape index: {}]   ;;  %s7594_s17 = inlined_call_operand.vmem [shape: f32[2,1,32], index: 17, kind: input, shape index: {}]   ;;  %s7595_s18 = inlined_call_operand.vmem [shape: f32[1,16,32], index: 18, kind: output, shape index: {0}]   ;;  %s7596_s19 = inlined_call_operand.vmem [shape: f32[2,2,4,128], index: 19, kind: output, shape index: {1}]  }
   0x1   :  { %7605 = sst [smem:[#allocation7_spill]] %s7577_s0  ;;  %s5844_s0 = smov 0  }
   0x2   :  { %7606 = sst [smem:[#allocation8_spill]] %s7578_s1 }
   0x3   :  { %7607 = sst [smem:[#allocation9_spill]] %s7579_s2 }
   0x4   :  { %7608 = sst [smem:[#allocation10_spill]] %s7580_s3 }
   0x5   :  { %7609 = sst [smem:[#allocation11_spill]] %s7581_s4 }
   0x6   :  { %7610 = sst [smem:[#allocation12_spill]] %s7582_s5 }
   0x7   :  { %7611 = sst [smem:[#allocation13_spill]] %s7583_s6 }
   0x8   :  { %7612 = sst [smem:[#allocation14_spill]] %s7584_s7 }
   0x9   :  { %7613 = sst [smem:[#allocation15_spill]] %s7585_s8 }
   0xa   :  { %7614 = sst [smem:[#allocation16_spill]] %s7586_s9 }
   0xb   :  { %7615 = sst [smem:[#allocation17_spill]] %s7587_s10 }
   0xc   :  { %7616 = sst [smem:[#allocation18_spill]] %s7589_s12 }
   0xd   :  { %7617 = sst [smem:[#allocation19_spill]] %s7590_s13 }
   0xe   :  { %7618 = sst [smem:[#allocation20_spill]] %s7591_s14 }
   0xf   :  { %7619 = sst [smem:[#allocation21_spill]] %s7593_s16 }
  0x10   :  { %7620 = sst [smem:[#allocation22_spill]] %s7595_s18 }
  0x11   :  { %7621 = sst [smem:[#allocation23_spill]] %s7596_s19 }
  0x12 LB: > { %7622 = sst [smem:[#allocation3_spill]] %s5720_s0  ;;  %s39_s21 = sadd.s32 1, %s5724_s30  ;;  %s5728_s20 = sphi %s5848_s20, %s30_s20   ;;  %s5724_s30 = sphi %s5846_s30, %s7653_s30   ;;  %s5720_s0 = sphi %s5844_s0, %s7652_s0  }
  0x13   : > { %7623 = sst [smem:[#allocation4_spill]] %s5724_s30  ;;  %p5230_p0 = scmp.ge.s32.totalorder %s5728_s20, 1 }
  0x14   : > { %7624 = sst [smem:[#allocation5_spill]] %s5728_s20  ;;  %p40_p1 = scmp.ge.s32.totalorder %s39_s21, 2 }
  0x15   : > { %p702_p2 = scmp.lt.s32.totalorder %s5728_s20, 3 }
  0x16   : > { %s7655_s21 = smov (%p40_p1, %s39_s21), 0 }
  0x17   : > { %7625 = sst [smem:[#allocation6_spill]] %s7655_s21  ;;  %p703_p3 = pnand %p5230_p0, %p702_p2 }
  0x18   : > { %p847_p4 = scmp.lt.s32.totalorder (!%p703_p3), %s5720_s0, 1  ;;  %s7626_s6 = sld [smem:[#allocation13_spill]] (!%p703_p3) }
  0x19   : > { %706 = sbr.rel (%p703_p3) target bundleno = 3478 (0xd96), region = 92  ;;  %s7627_s4 = sld [smem:[#allocation11_spill]] (!%p703_p3) }
  0x1a   : > { %s7629_s5 = sld [smem:[#allocation12_spill]] (!%p703_p3) }
  0x1b   : > { %s7630_s8 = sld [smem:[#allocation15_spill]] (!%p703_p3) }
  0x1c   : > { %s7631_s9 = sld [smem:[#allocation16_spill]] (!%p703_p3) }
  0x1d   : > { %s7632_s10 = sld [smem:[#allocation17_spill]] (!%p703_p3) }
  0x1e   : > { %s5866_s1 = scalar_select %p847_p4, %s5720_s0, 1 }
  0x1f   : > { %s7633_s12 = sld [smem:[#allocation18_spill]] }
  0x20   : > { %s5424_s22 = smul.u32 48, %s5866_s1  ;;  %s5395_s2 = sshll.u32 %s5866_s1, 4 }
  0x21   : > { %s5425_s23 = smul.u32 3, %s5866_s1  ;;  %s5874_s3 = scalar_lea.vmem %s7626_s6, %s5395_s2 }
  0x22   : > { %s5879_s28 = scalar_lea.vmem %s7627_s4, %s5424_s22  ;;  %s5893_s24 = scalar_lea.vmem %s7630_s8, %s5424_s22 }
  0x23   : > { %s5888_s0 = scalar_lea.vmem %s7629_s5, %s5425_s23  ;;  %s5898_s26 = scalar_lea.vmem %s7631_s9, %s5425_s23 }
  0x24   : > { %s5903_s21 = scalar_lea.vmem %s7632_s10, %s5395_s2  ;;  %s5237_s20 = sshll.u32 %s5866_s1, 2 }
  0x25   : > { %s5913_s16 = scalar_lea.vmem %s7633_s12, %s5237_s20  ;;  %s7634_s13 = sld [smem:[#allocation19_spill]] }
  0x26   : > { %s7635_s14 = sld [smem:[#allocation20_spill]]  ;;  %s5398_s29 = sshll.u32 %s5866_s1, 5 }
  0x27   : > { %s904_s5 = scalar_lea.vmem %s7594_s17, %s5866_s1  ;;  %s7636_s12 = sld [smem:[#allocation21_spill]] }
  0x28   : > { %s7637_s23 = sld [smem:[#allocation23_spill]] }
  0x29   : > { %s7638_s25 = sld [smem:[#allocation3_spill]] }
  0x2b   : > { %s5918_s6 = scalar_lea.vmem %s7634_s13, %s5237_s20  ;;  %s5399_s20 = sshll.u32 %s5866_s1, 3 }
  0x2c   : > { %s5923_s4 = scalar_lea.vmem %s7635_s14, %s5395_s2 }
  0x2d   : > { %s5937_s19 = scalar_lea.vmem %s7636_s12, %s5398_s29 }
  0x2e   : > { %s5943_s2 = scalar_lea.vmem %s7637_s23, %s5399_s20 }
  0x2f   : > { %p5245_p5 = scmp.ne.s32.totalorder %s7638_s25, 0 }
  0x30   : > { %s7639_s30 = sld [smem:[#allocation9_spill]] (!%p5245_p5) }
  0x31   : > { %921 = sbr.rel (%p5245_p5) target bundleno = 57 (0x39), region = 96 }
  0x36   : > { %s7640_s14 = smov %s7639_s30  ;;  %v922_v0 = vld [vmem:[%s7639_s30] sm:$0xff]  ;;  %vm924_vm0 = vcmask 261120  }
  0x37   : > { %v923_v1 = vld [vmem:[%s7640_s14 + $0x8] sm:$0xff]  ;;  %925 = vst.msk [vmem:[#allocation2] sm:$0xff] %vm924_vm0, %v922_v0 }
  0x38   : > { %926 = vst.msk [vmem:[#allocation2 + $0x8] sm:$0xff] %vm924_vm0, %v923_v1 }
  0x39 PF: > { %v5403_v2 = vld [vmem:[%s5879_s28 + $0x8] sm:$0xff]  ;;  %v5405_v3 = vld [vmem:[%s5879_s28 + $0x18] sm:$0xff]  ;;  %v5402_v4 = vld [vmem:[%s5879_s28] sm:$0xff]  ;;  %vm956_vm1 = vcmask 261120   ;;  %s5730_s10 = smov 104   ;;  %s5731_s12 = smov 120  }
  0x3a   : > { %v5404_v5 = vld [vmem:[%s5879_s28 + $0x10] sm:$0xff]  ;;  %966 = vmatpush.bf16.msra.mxu0 %v5403_v2  ;;  %1004 = vmatpush.bf16.msra.mxu1 %v5405_v3  ;;  %v5614_v11 = vld [vmem:[%s5888_s0] ss:$0 sm:$0xff]  ;;  %v5615_v13 = vld [vmem:[%s5888_s0 + $0x1] ss:$0 sm:$0xff]  ;;  %s5732_s13 = smov 112  }
  0x3b   : > { %v5733_v26 = vmov 1983009808   ;;  %vm1071_vm2 = vcmask 1047556   ;;  %v5734_v46 = vmov 1934713408   ;;  %v5407_v0 = vld [vmem:[%s5879_s28 + $0x28] sm:$0xff] }
  0x3c   : > { %v1076_v27 = vunpack.c.l.s4 %v5733_v26  ;;  %v1100_v47 = vunpack.c.l.s4 %v5734_v46  ;;  %1040 = vmatpush.bf16.msra.mxu2 %v5407_v0  ;;  %vm1805_vm3 = vcmask 64512   ;;  %s7641_s29 = sld [smem:[#allocation7_spill]]  ;;  %vm1916_vm4 = vcmask 130048   ;;  %s5736_s22 = smov 16  }
  0x3d   : > { %s5737_s23 = smov 8   ;;  %vm2373_vm5 = vcmask 195584   ;;  %s7642_s8 = sld [smem:[#allocation10_spill]] }
  0x3e   : > { %v927_v6 = vld [vmem:[#allocation2] sm:$0xff]  ;;  %967 = vmatpush.bf16.msra.mxu0 %v5402_v4  ;;  %1005 = vmatpush.bf16.msra.mxu1 %v5404_v5  ;;  %v5976_v32 = vunpack.c.0.s8 %v1076_v27  ;;  %v6009_v3 = vunpack.c.0.s8 %v1100_v47  ;;  %s7643_s18 = sld [smem:[#allocation14_spill]] }
  0x3f   : > { %v928_v7 = vld [vmem:[#allocation2 + $0x8] sm:$0xff]  ;;  %s7645_s20 = sld [smem:[#allocation8_spill]] }
  0x40   : > { %v5956_v8 = vpack.c.bf16 %v928_v7, %v927_v6 }
  0x42   : > { %5254 = vmatmul.msk.bf16.vlgmr.msra.gmra.mxu0 %vm956_vm1, %v5956_v8  ;;  %5268 = vmatmul.msk.bf16.vlgmr.msra.gmra.mxu1 %vm956_vm1, %v5956_v8 }
  0xbf   : > { %v969_v9 = vpop.f32.mrf.mxu0  ;;  %v1007_v10 = vpop.f32.mrf.mxu1 }
  0xc0   : > { %v970_v12 = vadd.f32 %v5614_v11, %v969_v9  ;;  %v5964_v17 = vadd.f32 %v5615_v13, %v1007_v10 }
  0xc2   : > { %v974_v16 = vmul.f32 0.35355338, %v970_v12  ;;  %v1321_v63 = vrot.slane %v5964_v17, 4 }
  0xc4   : > { %v1073_v31 = vrot.slane %v974_v16, 4 }
  0xc7   : > { %v971_v14 = vpop.f32.mrf.mxu0  ;;  %v1009_v15 = vpop.f32.mrf.mxu1 }
  0xc8   : > { %v972_v18 = vadd.f32 %v5614_v11, %v971_v14  ;;  %v5966_v19 = vadd.f32 %v5615_v13, %v1009_v15 }
  0xca   : > { %v975_v20 = vmul.f32 0.35355338, %v972_v18  ;;  %v5474_v21 = vpack.i.bf16 %v5966_v19, %v5964_v17  ;;  %v1377_v4 = vrot.slane %v5966_v19, 4 }
  0xcc   : > { %5475 = vrot.lane.b32.xlu1 %v5474_v21, %s5730_s10  ;;  %5465 = vrot.lane.b32.xlu0 %v5474_v21, %s5731_s12  ;;  %v5484_v22 = vpack.i.bf16 %v975_v20, %v974_v16  ;;  %v1129_v30 = vrot.slane %v975_v20, 4 }
  0xce   : > { %5485 = vrot.lane.b32.xlu2 %v5484_v22, %s5732_s13 }
  0xd4   : > { %5470 = vrot.lane.b32.xlu0 %v5474_v21, %s5732_s13  ;;  %5480 = vrot.lane.b32.xlu1 %v5484_v22, %s5731_s12 }
  0xd6   : > { %5490 = vrot.lane.b32.xlu2 %v5484_v22, %s5730_s10  ;;  %v5406_v22 = vld [vmem:[%s5879_s28 + $0x20] sm:$0xff]  ;;  %s7644_s28 = scalar_lea.vmem %s7643_s18, %s5866_s1  ;;  %s7648_s18 = scalar_lea.vmem %s7592_s15, %s5866_s1 }
  0xd7   : > { %1041 = vmatpush.bf16.msra.mxu2 %v5406_v22 }
  0xda   : > { %5282 = vmatmul.msk.bf16.vlgmr.msra.gmra.mxu2 %vm956_vm1, %v5956_v8 }
 0x128   : > { %v5486_v23 = vpop.permute.xlu2 %5485 }
 0x129   : > { %v5488_v24 = vunpack.i.h.bf16 %v5486_v23  ;;  %v5487_v25 = vunpack.i.l.bf16 %v5486_v23 }
 0x12b   : > { %v1127_v28 = vrot.slane %v5488_v24, 4  ;;  %v1070_v29 = vrot.slane %v5487_v25, 4  ;;  %v1130_v33 = vsel %vm1071_vm2, %v5488_v24, %v1129_v30  ;;  %v1074_v34 = vsel %vm1071_vm2, %v5487_v25, %v1073_v31 }
 0x12c   : > { %v5985_v44 = vperm.slane %v1130_v33, %v5976_v32  ;;  %v5988_v45 = vperm.slane %v1074_v34, %v5976_v32 }
 0x12d   : > { %v1128_v35 = vsel %vm1071_vm2, %v1127_v28, %v975_v20  ;;  %v1072_v36 = vsel %vm1071_vm2, %v1070_v29, %v974_v16 }
 0x12e   : > { %v5991_v52 = vperm.slane %v1128_v35, %v5976_v32  ;;  %v5994_v53 = vperm.slane %v1072_v36, %v5976_v32  ;;  %v1165_v1 = vrot.slane %v5985_v44, 4  ;;  %v1109_v2 = vrot.slane %v5988_v45, 4 }
 0x130   : > { %v5982_v39 = vpop.permute.xlu2 %5490  ;;  %v1153_v5 = vrot.slane %v5991_v52, 4  ;;  %v1097_v6 = vrot.slane %v5994_v53, 4 }
 0x131   : > { %v5493_v54 = vunpack.i.h.bf16 %v5982_v39  ;;  %v5492_v55 = vunpack.i.l.bf16 %v5982_v39 }
 0x133   : > { %v1139_v7 = vrot.slane %v5493_v54, 4  ;;  %v1083_v12 = vrot.slane %v5492_v55, 4 }
 0x13e   : > { %v5476_v37 = vpop.permute.xlu1 %5475  ;;  %v5466_v38 = vpop.permute.xlu0 %5465 }
 0x13f   : > { %v5478_v40 = vunpack.i.h.bf16 %v5476_v37  ;;  %v5477_v41 = vunpack.i.l.bf16 %v5476_v37  ;;  %v5468_v42 = vunpack.i.h.bf16 %v5466_v38  ;;  %v5467_v43 = vunpack.i.l.bf16 %v5466_v38 }
 0x141   : > { %v1387_v48 = vrot.slane %v5478_v40, 4  ;;  %v1331_v49 = vrot.slane %v5477_v41, 4  ;;  %v1389_v50 = vrot.slane %v5468_v42, 4  ;;  %v1333_v51 = vrot.slane %v5467_v43, 4 }
 0x143   : > { %v1388_v56 = vsel %vm1071_vm2, %v1387_v48, %v5468_v42  ;;  %v1390_v57 = vsel %vm1071_vm2, %v5478_v40, %v1389_v50  ;;  %v1332_v58 = vsel %vm1071_vm2, %v1331_v49, %v5467_v43  ;;  %v1334_v59 = vsel %vm1071_vm2, %v5477_v41, %v1333_v51 }
 0x144   : > { %v1394_v60 = vperm.slane %v1388_v56, %v5976_v32  ;;  %v1398_v61 = vperm.slane %v1390_v57, %v5976_v32  ;;  %v1338_v62 = vperm.slane %v1332_v58, %v5976_v32  ;;  %v1342_v9 = vperm.slane %v1334_v59, %v5976_v32 }
 0x146   : > { %v5471_v10 = vpop.permute.xlu0 %5470  ;;  %v6015_v11 = vpop.permute.xlu1 %5480  ;;  %v1399_v16 = vrot.slane %v1394_v60, 4  ;;  %v1411_v18 = vrot.slane %v1398_v61, 4  ;;  %v1343_v20 = vrot.slane %v1338_v62, 4  ;;  %v1355_v27 = vrot.slane %v1342_v9, 4 }
 0x147   : > { %v5473_v13 = vunpack.i.h.bf16 %v5471_v10  ;;  %v5472_v14 = vunpack.i.l.bf16 %v5471_v10  ;;  %v5483_v15 = vunpack.i.h.bf16 %v6015_v11  ;;  %v5482_v21 = vunpack.i.l.bf16 %v6015_v11 }
 0x149   : > { %v1375_v23 = vrot.slane %v5473_v13, 4  ;;  %v1378_v24 = vsel %vm1071_vm2, %v5473_v13, %v1377_v4  ;;  %v1319_v25 = vrot.slane %v5472_v14, 4  ;;  %v1322_v26 = vsel %vm1071_vm2, %v5472_v14, %v1321_v63 }
 0x14a   : > { %v1386_v28 = vperm.slane %v1378_v24, %v5976_v32  ;;  %v1330_v29 = vperm.slane %v1322_v26, %v5976_v32  ;;  %v1140_v30 = vsel %vm1071_vm2, %v1139_v7, %v5483_v15  ;;  %v1141_v34 = vrot.slane %v5483_v15, 4 }
 0x14b   : > { %v1376_v31 = vsel %vm1071_vm2, %v1375_v23, %v5966_v19  ;;  %v1320_v33 = vsel %vm1071_vm2, %v1319_v25, %v5964_v17  ;;  %v1146_v35 = vperm.slane %v1140_v30, %v5976_v32  ;;  %v1084_v19 = vsel %vm1071_vm2, %v1083_v12, %v5482_v21 }
 0x14c   : > { %v1382_v36 = vperm.slane %v1376_v31, %v5976_v32  ;;  %v1413_v37 = vrot.slane %v1386_v28, 4  ;;  %v1326_v38 = vperm.slane %v1320_v33, %v5976_v32  ;;  %v1356_v40 = vsel %vm1071_vm2, %v1355_v27, %v1330_v29 }
 0x14d   : > { %v1357_v41 = vrot.slane %v1330_v29, 4  ;;  %v1362_v42 = vperm.slane %v1356_v40, %v6009_v3  ;;  %v1412_v43 = vsel %vm1071_vm2, %v1411_v18, %v1386_v28  ;;  %v1142_v56 = vsel %vm1071_vm2, %v5493_v54, %v1141_v34 }
 0x14e   : > { %v1401_v17 = vrot.slane %v1382_v36, 4  ;;  %v1344_v46 = vsel %vm1071_vm2, %v1343_v20, %v1326_v38  ;;  %v1345_v47 = vrot.slane %v1326_v38, 4  ;;  %v1400_v48 = vsel %vm1071_vm2, %v1399_v16, %v1382_v36 }
 0x14f   : > { %v6045_v49 = vperm.slane %v1344_v46, %v6009_v3  ;;  %v1358_v50 = vsel %vm1071_vm2, %v1342_v9, %v1357_v41  ;;  %v1371_v51 = vrot.slane %v1362_v42, 4  ;;  %v1414_v59 = vsel %vm1071_vm2, %v1398_v61, %v1413_v37 }
 0x150   : > { %v1346_v57 = vsel %vm1071_vm2, %v1338_v62, %v1345_v47  ;;  %v1366_v58 = vperm.slane %v1358_v50, %v6009_v3  ;;  %v1402_v8 = vsel %vm1071_vm2, %v1394_v60, %v1401_v17  ;;  %v6056_v4 = vperm.slane %v1400_v48, %v6009_v3 }
 0x151   : > { %v1354_v63 = vperm.slane %v1346_v57, %v6009_v3  ;;  %v1367_v0 = vrot.slane %v6045_v49, 4  ;;  %v1410_v7 = vperm.slane %v1402_v8, %v6009_v3  ;;  %v6060_v9 = vsel %vm1071_vm2, 0.0, %v1371_v51 }
 0x152   : > { %v1373_v54 = vrot.slane %v1366_v58, 4  ;;  %v1418_v62 = vperm.slane %v1412_v43, %v6009_v3  ;;  %v1422_v10 = vperm.slane %v1414_v59, %v6009_v3  ;;  %v1150_v61 = vperm.slane %v1142_v56, %v5976_v32 }
 0x153   : > { %v1369_v60 = vrot.slane %v1354_v63, 4  ;;  %v6064_v12 = vrot.slane %v1410_v7, 4  ;;  %v1151_v13 = vrot.slane %v1146_v35, 4  ;;  %v1423_v22 = vrot.slane %v6056_v4, 4 }
 0x154   : > { %v6068_v14 = vsel %vm1071_vm2, 0.0, %v1373_v54  ;;  %v1427_v15 = vrot.slane %v1418_v62, 4  ;;  %v1429_v16 = vrot.slane %v1422_v10, 4  ;;  %v1442_v18 = vsel %vm1071_vm2, %v1373_v54, %v1362_v42 }
 0x155   : > { %v6072_v20 = vsel %vm1071_vm2, 0.0, %v1369_v60  ;;  %v6077_v23 = vsel %vm1071_vm2, 0.0, %v6064_v12  ;;  %v6080_v24 = vperm.slane %v1442_v18, %v5976_v32  ;;  %v1447_v28 = vrot.slane %v6068_v14, 4 }
 0x156   : > { %v6083_v25 = vsel %vm1071_vm2, 0.0, %v1427_v15  ;;  %v6086_v26 = vsel %vm1071_vm2, 0.0, %v1429_v16  ;;  %v1436_v27 = vrot.slane %v6072_v20, 4  ;;  %v1490_v29 = vrot.slane %v6077_v23, 4 }
 0x157   : > { %v1496_v30 = vsel %vm1071_vm2, %v1429_v16, %v1418_v62  ;;  %v1152_v31 = vsel %vm1071_vm2, %v1151_v13, %v5991_v52  ;;  %v1154_v33 = vsel %vm1071_vm2, %v1146_v35, %v1153_v5  ;;  %v1501_v34 = vrot.slane %v6086_v26, 4 }
 0x158   : > { %v1158_v36 = vperm.slane %v1152_v31, %v6009_v3  ;;  %v1162_v37 = vperm.slane %v1154_v33, %v6009_v3  ;;  %v1163_v38 = vrot.slane %v1150_v61, 4  ;;  %v6101_v40 = vperm.slane %v1496_v30, %v5976_v32 }
 0x159   : > { %v1166_v41 = vsel %vm1071_vm2, %v1150_v61, %v1165_v1  ;;  %v1085_v42 = vrot.slane %v5482_v21, 4  ;;  %v1090_v52 = vperm.slane %v1084_v19, %v5976_v32  ;;  %v1368_v39 = vsel %vm1071_vm2, 0.0, %v1367_v0 }
 0x15a   : > { %v1164_v5 = vsel %vm1071_vm2, %v1163_v38, %v5985_v44  ;;  %v1174_v35 = vperm.slane %v1166_v41, %v6009_v3  ;;  %v1175_v43 = vrot.slane %v1158_v36, 4  ;;  %v1177_v17 = vrot.slane %v1162_v37, 4 }
 0x15b   : > { %v1170_v46 = vperm.slane %v1164_v5, %v6009_v3  ;;  %v1086_v47 = vsel %vm1071_vm2, %v5492_v55, %v1085_v42  ;;  %v1095_v48 = vrot.slane %v1090_v52, 4  ;;  %v1098_v1 = vsel %vm1071_vm2, %v1090_v52, %v1097_v6 }
 0x15c   : > { %v1176_v11 = vsel %vm1071_vm2, 0.0, %v1175_v43  ;;  %v1178_v21 = vsel %vm1071_vm2, 0.0, %v1177_v17  ;;  %v1181_v44 = vrot.slane %v1174_v35, 4  ;;  %v1237_v19 = vsel %vm1071_vm2, %v1177_v17, %v1158_v36 }
 0x15d   : > { %v1179_v50 = vrot.slane %v1170_v46, 4  ;;  %v1242_v51 = vrot.slane %v1178_v21, 4  ;;  %v1094_v56 = vperm.slane %v1086_v47, %v5976_v32  ;;  %v1096_v6 = vsel %vm1071_vm2, %v1095_v48, %v5994_v53 }
 0x15e   : > { %v1182_v55 = vsel %vm1071_vm2, 0.0, %v1181_v44  ;;  %v1248_v57 = vsel %vm1071_vm2, %v1181_v44, %v1170_v46  ;;  %v1106_v58 = vperm.slane %v1098_v1, %v6009_v3  ;;  %v6131_v59 = vperm.slane %v1237_v19, %v5976_v32 }
 0x15f   : > { %v1180_v8 = vsel %vm1071_vm2, 0.0, %v1179_v50  ;;  %v6134_v63 = vsel %vm1071_vm2, %v1242_v51, %v1176_v11  ;;  %v1253_v7 = vrot.slane %v1182_v55, 4  ;;  %v1102_v0 = vperm.slane %v1096_v6, %v6009_v3 }
 0x160   : > { %v1107_v54 = vrot.slane %v1094_v56, 4  ;;  %v1110_v62 = vsel %vm1071_vm2, %v1094_v56, %v1109_v2  ;;  %v1121_v10 = vrot.slane %v1106_v58, 4  ;;  %v6141_v53 = vperm.slane %v1248_v57, %v5976_v32 }
 0x161   : > { %v6144_v61 = vsel %vm1071_vm2, %v1253_v7, %v1180_v8  ;;  %v1118_v13 = vperm.slane %v1110_v62, %v6009_v3  ;;  %v1431_v14 = vsel %vm1071_vm2, %v1369_v60, %v6045_v49  ;;  %v1119_v16 = vrot.slane %v1102_v0, 4 }
 0x162   : > { %v1108_v15 = vsel %vm1071_vm2, %v1107_v54, %v5988_v45  ;;  %v1122_v18 = vsel %vm1071_vm2, 0.0, %v1121_v10  ;;  %v1183_v2 = vsel %vm1071_vm2, %v1121_v10, %v1102_v0  ;;  %v1424_v33 = vsel %vm1071_vm2, 0.0, %v1423_v22 }
 0x163   : > { %v1114_v20 = vperm.slane %v1108_v15, %v6009_v3  ;;  %v1125_v30 = vrot.slane %v1118_v13, 4  ;;  %v1188_v31 = vrot.slane %v1122_v18, 4  ;;  %v1120_v36 = vsel %vm1071_vm2, 0.0, %v1119_v16 }
 0x164   : > { %v1435_v37 = vperm.slane %v1431_v14, %v5976_v32  ;;  %v1437_v49 = vsel %vm1071_vm2, %v1436_v27, %v1368_v39  ;;  %v1448_v45 = vsel %vm1071_vm2, %v1447_v28, %v6060_v9  ;;  %v6162_v41 = vperm.slane %v1183_v2, %v5976_v32 }
 0x165   : > { %v1123_v60 = vrot.slane %v1114_v20, 4  ;;  %v1126_v38 = vsel %vm1071_vm2, 0.0, %v1125_v30  ;;  %v1194_v42 = vsel %vm1071_vm2, %v1125_v30, %v1114_v20  ;;  %v6166_v52 = vsel %vm1071_vm2, %v1188_v31, %v1120_v36 }
 0x166   : > { %v6169_v22 = vperm.slane %v1194_v42, %v5976_v32  ;;  %v1441_v5 = vperm.slane %v1437_v49, %v5976_v32  ;;  %v1452_v27 = vperm.slane %v1448_v45, %v5976_v32  ;;  %v1199_v35 = vrot.slane %v1126_v38, 4 }
 0x167   : > { %v1455_v9 = vrot.slane %v1435_v37, 4  ;;  %v1467_v28 = vrot.slane %v6080_v24, 4  ;;  %v1485_v43 = vsel %vm1071_vm2, %v6064_v12, %v6056_v4  ;;  %v1124_v17 = vsel %vm1071_vm2, 0.0, %v1123_v60 }
 0x168   : > { %v1489_v46 = vperm.slane %v1485_v43, %v5976_v32  ;;  %v1491_v47 = vsel %vm1071_vm2, %v1490_v29, %v1424_v33  ;;  %v1502_v48 = vsel %vm1071_vm2, %v1501_v34, %v6083_v25  ;;  %v1521_v29 = vrot.slane %v6101_v40, 4 }
 0x169   : > { %v1456_v1 = vsel %vm1071_vm2, %v1441_v5, %v1455_v9  ;;  %v1468_v11 = vsel %vm1071_vm2, %v1452_v27, %v1467_v28  ;;  %v1495_v21 = vperm.slane %v1491_v47, %v5976_v32  ;;  %v1506_v4 = vperm.slane %v1502_v48, %v5976_v32 }
 0x16a   : > { %v1464_v12 = vperm.slane %v1456_v1, %v6009_v3  ;;  %v1476_v44 = vperm.slane %v1468_v11, %v6009_v3  ;;  %v1509_v23 = vrot.slane %v1489_v46, 4  ;;  %v1200_v19 = vsel %vm1071_vm2, %v1199_v35, %v1124_v17 }
 0x16b   : > { %v1453_v26 = vrot.slane %v1441_v5, 4  ;;  %v1465_v50 = vrot.slane %v1452_v27, 4  ;;  %v1507_v25 = vrot.slane %v1495_v21, 4  ;;  %v1522_v56 = vsel %vm1071_vm2, %v1506_v4, %v1521_v29 }
 0x16c   : > { %v1481_v34 = vrot.slane %v1476_v44, 4  ;;  %v1510_v51 = vsel %vm1071_vm2, %v1495_v21, %v1509_v23  ;;  %v1519_v39 = vrot.slane %v1506_v4, 4  ;;  %v1530_v57 = vperm.slane %v1522_v56, %v6009_v3 }
 0x16d   : > { %v1518_v55 = vperm.slane %v1510_v51, %v6009_v3  ;;  %v1454_v6 = vsel %vm1071_vm2, %v1453_v26, %v1435_v37  ;;  %v1466_v58 = vsel %vm1071_vm2, %v1465_v50, %v6080_v24  ;;  %v1508_v54 = vsel %vm1071_vm2, %v1507_v25, %v1489_v46 }
 0x16e   : > { %v1482_v8 = vsel %vm1071_vm2, %v1481_v34, %v1464_v12  ;;  %v1460_v7 = vperm.slane %v1454_v6, %v6009_v3  ;;  %v1472_v0 = vperm.slane %v1466_v58, %v6009_v3  ;;  %v1535_v62 = vrot.slane %v1530_v57, 4 }
 0x16f   : > { %v1543_v10 = vpack.c.bf16 %v1482_v8, %v1482_v8  ;;  %v1514_v13 = vperm.slane %v1508_v54, %v6009_v3  ;;  %v1520_v14 = vsel %vm1071_vm2, %v1519_v39, %v6101_v40  ;;  %v1483_v18 = vrot.slane %v1464_v12, 4 }
 0x170   : > { %v1477_v15 = vrot.slane %v1472_v0, 4  ;;  %v1526_v16 = vperm.slane %v1520_v14, %v6009_v3  ;;  %v1537_v24 = vrot.slane %v1518_v55, 4  ;;  %v1536_v2 = vsel %vm1071_vm2, %v1535_v62, %v1518_v55 }
 0x171   : > { %v1863_v20 = vunpack.c.l.b16 %v1543_v10  ;;  %v1479_v30 = vrot.slane %v1460_v7, 4  ;;  %v1533_v31 = vrot.slane %v1514_v13, 4  ;;  %v1544_v33 = vpack.c.bf16 %v1536_v2, %v1536_v2 }
 0x172   : > { %v1478_v36 = vsel %vm1071_vm2, %v1477_v15, %v1460_v7  ;;  %v1531_v37 = vrot.slane %v1526_v16, 4  ;;  %v1484_v49 = vsel %vm1071_vm2, %v1476_v44, %v1483_v18  ;;  %v1538_v60 = vsel %vm1071_vm2, %v1530_v57, %v1537_v24 }
 0x173   : > { %v1539_v45 = vpack.c.bf16 %v1478_v36, %v1478_v36  ;;  %v1545_v40 = vpack.c.bf16 %v1484_v49, %v1484_v49  ;;  %v1480_v38 = vsel %vm1071_vm2, %v1472_v0, %v1479_v30  ;;  %v1864_v42 = vunpack.c.l.b16 %v1544_v33 }
 0x174   : > { %v1532_v5 = vsel %vm1071_vm2, %v1531_v37, %v1514_v13  ;;  %v1546_v27 = vpack.c.bf16 %v1538_v60, %v1538_v60  ;;  %v1534_v35 = vsel %vm1071_vm2, %v1526_v16, %v1533_v31  ;;  %v1541_v17 = vpack.c.bf16 %v1480_v38, %v1480_v38 }
 0x175   : > { %v1540_v9 = vpack.c.bf16 %v1532_v5, %v1532_v5  ;;  %v1802_v28 = vunpack.c.l.b16 %v1539_v45  ;;  %v1893_v43 = vunpack.c.l.b16 %v1545_v40  ;;  %v1865_v46 = vpack.c.b16 %v1864_v42, %v1863_v20 }
 0x176   : > { %v1894_v47 = vunpack.c.l.b16 %v1546_v27  ;;  %v1542_v48 = vpack.c.bf16 %v1534_v35, %v1534_v35  ;;  %v1193_v1 = vperm.slane %v6166_v52, %v5976_v32  ;;  %v1833_v21 = vunpack.c.l.b16 %v1541_v17 }
 0x177   : > { %v1803_v11 = vunpack.c.l.b16 %v1540_v9  ;;  %v1204_v4 = vperm.slane %v1200_v19, %v5976_v32  ;;  %v1207_v12 = vrot.slane %v6162_v41, 4  ;;  %v1870_v44 = vsel %vm1805_vm3, %v1865_v46, 0 }
 0x178   : > { %v1895_v23 = vpack.c.b16 %v1894_v47, %v1893_v43  ;;  %v1834_v29 = vunpack.c.l.b16 %v1542_v48  ;;  %v1219_v26 = vrot.slane %v6169_v22, 4  ;;  %1879 = vmatpush.bf16.xpose.msrb.mxu1 %v1870_v44  ;;  %v1247_v34 = vperm.slane %v6134_v63, %v5976_v32 }
 0x179   : > { %v1804_v50 = vpack.c.b16 %v1803_v11, %v1802_v28  ;;  %v1208_v25 = vsel %vm1071_vm2, %v1193_v1, %v1207_v12  ;;  %v1258_v52 = vperm.slane %v6144_v61, %v5976_v32  ;;  %v1261_v6 = vrot.slane %v6131_v59, 4 }
 0x17a   : > { %v1900_v19 = vsel %vm1805_vm3, %v1895_v23, 0  ;;  %v1835_v51 = vpack.c.b16 %v1834_v29, %v1833_v21  ;;  %v1216_v56 = vperm.slane %v1208_v25, %v6009_v3  ;;  %v1220_v39 = vsel %vm1071_vm2, %v1204_v4, %v1219_v26 }
 0x17b   : > { %v1810_v55 = vsel %vm1805_vm3, %v1804_v50, 0  ;;  %1909 = vmatpush.bf16.xpose.msrb.mxu2 %v1900_v19  ;;  %v1228_v57 = vperm.slane %v1220_v39, %v6009_v3  ;;  %v1273_v58 = vrot.slane %v6141_v53, 4  ;;  %v1205_v61 = vrot.slane %v1193_v1, 4  ;;  %v1048_v19 = vld [vmem:[%s7641_s29] sm:$0xff] }
 0x17c   : > { %1819 = vmatpush.bf16.xpose.msra.mxu3 %v1810_v55  ;;  %v1840_v63 = vsel %vm1805_vm3, %v1835_v51, 0  ;;  %v1217_v8 = vrot.slane %v1204_v4, 4  ;;  %v1259_v7 = vrot.slane %v1247_v34, 4  ;;  %v1262_v54 = vsel %vm1071_vm2, %v1247_v34, %v1261_v6 }
 0x17d   : > { %1849 = vmatpush.bf16.xpose.msrb.mxu0 %v1840_v63  ;;  %v1233_v0 = vrot.slane %v1228_v57, 4  ;;  %v1274_v62 = vsel %vm1071_vm2, %v1258_v52, %v1273_v58  ;;  %v1271_v10 = vrot.slane %v1258_v52, 4  ;;  %v1270_v13 = vperm.slane %v1262_v54, %v6009_v3  ;;  %v1043_v52 = vpop.f32.mrf.mxu2  ;;  %v1049_v58 = vld [vmem:[%s7641_s29 + $0x8] sm:$0xff] }
 0x17e   : > { %v1282_v14 = vperm.slane %v1274_v62, %v6009_v3  ;;  %v1206_v15 = vsel %vm1071_vm2, %v1205_v61, %v6162_v41  ;;  %v1218_v16 = vsel %vm1071_vm2, %v1217_v8, %v6169_v22  ;;  %v1260_v20 = vsel %vm1071_vm2, %v1259_v7, %v6131_v59 }
 0x17f   : > { %v1234_v18 = vsel %vm1071_vm2, %v1233_v0, %v1216_v56  ;;  %v1212_v24 = vperm.slane %v1206_v15, %v6009_v3  ;;  %v1224_v2 = vperm.slane %v1218_v16, %v6009_v3  ;;  %v1266_v33 = vperm.slane %v1260_v20, %v6009_v3 }
 0x180   : > { %v1287_v30 = vrot.slane %v1282_v14, 4  ;;  %v1295_v31 = vpack.c.bf16 %v1234_v18, %v1234_v18  ;;  %v1272_v36 = vsel %vm1071_vm2, %v1271_v10, %v6141_v53  ;;  %v1235_v49 = vrot.slane %v1216_v56, 4 }
 0x181   : > { %v1229_v41 = vrot.slane %v1224_v2, 4  ;;  %v1231_v37 = vrot.slane %v1212_v24, 4  ;;  %v1278_v22 = vperm.slane %v1272_v36, %v6009_v3  ;;  %v1285_v40 = vrot.slane %v1266_v33, 4  ;;  %v5616_v36 = vld [vmem:[%s5888_s0 + $0x2] ss:$0 sm:$0xff]  ;;  %s5735_s0 = smov 24  }
 0x182   : > { %v1288_v45 = vsel %vm1071_vm2, %v1287_v30, %v1270_v13  ;;  %v1858_v60 = vunpack.c.l.b16 %v1295_v31  ;;  %v1289_v38 = vrot.slane %v1270_v13, 4  ;;  %v1236_v27 = vsel %vm1071_vm2, %v1228_v57, %v1235_v49 }
 0x183   : > { %v1296_v42 = vpack.c.bf16 %v1288_v45, %v1288_v45  ;;  %v1230_v59 = vsel %vm1071_vm2, %v1229_v41, %v1212_v24  ;;  %v1283_v5 = vrot.slane %v1278_v22, 4  ;;  %v1297_v53 = vpack.c.bf16 %v1236_v27, %v1236_v27 }
 0x184   : > { %v1291_v35 = vpack.c.bf16 %v1230_v59, %v1230_v59  ;;  %v1290_v9 = vsel %vm1071_vm2, %v1282_v14, %v1289_v38  ;;  %v1232_v28 = vsel %vm1071_vm2, %v1224_v2, %v1231_v37  ;;  %v1286_v47 = vsel %vm1071_vm2, %v1278_v22, %v1285_v40 }
 0x185   : > { %v1859_v43 = vunpack.c.l.b16 %v1296_v42  ;;  %v1284_v17 = vsel %vm1071_vm2, %v1283_v5, %v1266_v33  ;;  %v1298_v46 = vpack.c.bf16 %v1290_v9, %v1290_v9  ;;  %v1888_v11 = vunpack.c.l.b16 %v1297_v53  ;;  %v1045_v51 = vpop.f32.mrf.mxu2 }
 0x186   : > { %v1292_v48 = vpack.c.bf16 %v1284_v17, %v1284_v17  ;;  %v1797_v1 = vunpack.c.l.b16 %v1291_v35  ;;  %v1293_v21 = vpack.c.bf16 %v1232_v28, %v1232_v28  ;;  %v1294_v44 = vpack.c.bf16 %v1286_v47, %v1286_v47 }
 0x187   : > { %v1860_v4 = vpack.c.b16 %v1859_v43, %v1858_v60  ;;  %v1889_v12 = vunpack.c.l.b16 %v1298_v46  ;;  %v6281_v41 = vadd.f32 %v5616_v36, %v1043_v52  ;;  %v6283_v37 = vadd.f32 %v5616_v36, %v1045_v51 }
 0x188   : > { %v1798_v23 = vunpack.c.l.b16 %v1292_v48  ;;  %v1828_v29 = vunpack.c.l.b16 %v1293_v21  ;;  %v1829_v50 = vunpack.c.l.b16 %v1294_v44 }
 0x189   : > { %5285 = vmatmul.msk.bf16.vlgmr.msrb.gmra.mxu1 %vm1805_vm3, %v1860_v4  ;;  %v1890_v26 = vpack.c.b16 %v1889_v12, %v1888_v11  ;;  %v5504_v22 = vpack.i.bf16 %v6283_v37, %v6281_v41 }
 0x18a   : > { %v1799_v25 = vpack.c.b16 %v1798_v23, %v1797_v1  ;;  %v1830_v34 = vpack.c.b16 %v1829_v50, %v1828_v29 }
 0x18b   : > { %5286 = vmatmul.msk.bf16.vlgmr.msrb.gmra.mxu2 %vm1805_vm3, %v1890_v26 }
 0x18c   : > { %5283 = vmatmul.msk.bf16.vlgmr.msra.gmra.mxu3 %vm1805_vm3, %v1799_v25  ;;  %5284 = vmatmul.msk.bf16.vlgmr.msrb.gmra.mxu0 %vm1805_vm3, %v1830_v34 }
 0x206   : > { %v1881_v56 = vpop.f32.mrf.mxu1 }
 0x207   : > { %v1882_v39 = vadd.f32 %v1881_v56, %v1048_v19 }
 0x209   : > { %v1929_v55 = vsel %vm1916_vm4, %v1882_v39, -inf  ;;  %v1851_v57 = vpop.f32.mrf.mxu0 }
 0x20a   : > { %1930 = vmax.xlane.f32.xlu0 %v1929_v55  ;;  %v6267_v6 = vadd.f32 %v1851_v57, %v1048_v19 }
 0x20c   : > { %v1923_v63 = vsel %vm1916_vm4, %v6267_v6, -inf }
 0x20d   : > { %1924 = vmax.xlane.f32.xlu2 %v1923_v63 }
 0x20e   : > { %v1883_v61 = vpop.f32.mrf.mxu1  ;;  %v1911_v8 = vpop.f32.mrf.mxu2 }
 0x20f   : > { %v1884_v7 = vadd.f32 %v1883_v61, %v1049_v58  ;;  %v1821_v0 = vpop.f32.mrf.mxu3  ;;  %v1912_v62 = vadd.f32 %v1911_v8, %v1048_v19 }
 0x210   : > { %v1822_v54 = vadd.f32 %v1821_v0, %v1048_v19 }
 0x211   : > { %v1932_v10 = vsel %vm1916_vm4, %v1884_v7, -inf  ;;  %v1853_v14 = vpop.f32.mrf.mxu0  ;;  %v1935_v15 = vsel %vm1916_vm4, %v1912_v62, -inf }
 0x212   : > { %1933 = vmax.xlane.f32.xlu1 %v1932_v10  ;;  %v1917_v13 = vsel %vm1916_vm4, %v1822_v54, -inf  ;;  %v1854_v16 = vadd.f32 %v1853_v14, %v1049_v58 }
 0x213   : > { %1918 = vmax.xlane.f32.xlu0 %v1917_v13 }
 0x214   : > { %v1926_v31 = vsel %vm1916_vm4, %v1854_v16, -inf }
 0x215   : > { %1936 = vmax.xlane.f32.xlu2 %v1935_v15 }
 0x216   : > { %v1913_v18 = vpop.f32.mrf.mxu2 }
 0x217   : > { %v1823_v24 = vpop.f32.mrf.mxu3  ;;  %v1914_v20 = vadd.f32 %v1913_v18, %v1049_v58 }
 0x218   : > { %v1824_v2 = vadd.f32 %v1823_v24, %v1049_v58 }
 0x219   : > { %v1938_v33 = vsel %vm1916_vm4, %v1914_v20, -inf }
 0x21a   : > { %v1920_v30 = vsel %vm1916_vm4, %v1824_v2, -inf }
 0x21b   : > { %1921 = vmax.xlane.f32.xlu1 %v1920_v30  ;;  %1927 = vmax.xlane.f32.xlu0 %v1926_v31 }
 0x21d   : > { %1939 = vmax.xlane.f32.xlu2 %v1938_v33 }
 0x22f   : > { %5505 = vrot.lane.b32.xlu0 %v5504_v22, %s5730_s10 }
 0x234   : > { %5495 = vrot.lane.b32.xlu1 %v5504_v22, %s5731_s12 }
 0x235   : > { %5500 = vrot.lane.b32.xlu2 %v5504_v22, %s5732_s13 }
 0x27d   : > { %v1931_v49 = vpop.xlane.xlu0 %1930 }
 0x27e   : > { %v1945_v45 = vsub.f32 %v1882_v39, %v1931_v49 }
 0x280   : > { %v1957_v60 = vmul.f32 1.442695, %v1945_v45  ;;  %v1925_v40 = vpop.xlane.xlu2 %1924 }
 0x281   : > { %v1943_v29 = vsub.f32 %v6267_v6, %v1925_v40 }
 0x282   : > { %5624 = vpow2.f32 %v1957_v60 }
 0x283   : > { %v1953_v34 = vmul.f32 1.442695, %v1943_v29 }
 0x285   : > { %v1934_v38 = vpop.xlane.xlu1 %1933 }
 0x286   : > { %v1919_v42 = vpop.xlane.xlu0 %1918  ;;  %v1946_v28 = vsub.f32 %v1884_v7, %v1934_v38  ;;  %v1569_v7 = vrot.slane %v6281_v41, 4 }
 0x287   : > { %v1941_v59 = vsub.f32 %v1822_v54, %v1919_v42 }
 0x288   : > { %v6290_v5 = vpop.eup %5624  ;;  %v1937_v35 = vpop.xlane.xlu2 %1936  ;;  %v1959_v48 = vmul.f32 1.442695, %v1946_v28 }
 0x289   : > { %v1949_v27 = vmul.f32 1.442695, %v1941_v59  ;;  %v1977_v9 = vsel %vm1916_vm4, %v6290_v5, 0.0  ;;  %v1947_v53 = vsub.f32 %v1912_v62, %v1937_v35  ;;  %v1625_v62 = vrot.slane %v6283_v37, 4 }
 0x28a   : > { %1978 = vadd.xlane.f32.xlu0 %v1977_v9 }
 0x28b   : > { %5626 = vpow2.f32 %v1949_v27  ;;  %v1961_v43 = vmul.f32 1.442695, %v1947_v53 }
 0x28d   : > { %5628 = vpow2.f32 %v1961_v43 }
 0x28e   : > { %v1922_v17 = vpop.xlane.xlu1 %1921  ;;  %v1928_v46 = vpop.xlane.xlu0 %1927 }
 0x28f   : > { %v1942_v47 = vsub.f32 %v1824_v2, %v1922_v17  ;;  %v1944_v21 = vsub.f32 %v1854_v16, %v1928_v46 }
 0x290   : > { %v1940_v4 = vpop.xlane.xlu2 %1939 }
 0x291   : > { %v6294_v1 = vpop.eup %5626  ;;  %v1951_v11 = vmul.f32 1.442695, %v1942_v47  ;;  %v1948_v12 = vsub.f32 %v1914_v20, %v1940_v4  ;;  %v1955_v50 = vmul.f32 1.442695, %v1944_v21 }
 0x292   : > { %v1965_v44 = vsel %vm1916_vm4, %v6294_v1, 0.0 }
 0x293   : > { %5630 = vpow2.f32 %v1951_v11  ;;  %1966 = vadd.xlane.f32.xlu1 %v1965_v44  ;;  %v6298_v23 = vpop.eup %5628  ;;  %v1963_v26 = vmul.f32 1.442695, %v1948_v12 }
 0x294   : > { %5632 = vpow2.f32 %v1959_v48  ;;  %v1983_v25 = vsel %vm1916_vm4, %v6298_v23, 0.0 }
 0x295   : > { %5634 = vpow2.f32 %v1963_v26  ;;  %1984 = vadd.xlane.f32.xlu2 %v1983_v25 }
 0x296   : > { %5636 = vpow2.f32 %v1955_v50 }
 0x297   : > { %5638 = vpow2.f32 %v1953_v34 }
 0x298   : > { %v5501_v19 = vpop.permute.xlu2 %5500 }
 0x299   : > { %v6303_v52 = vpop.eup %5630  ;;  %v5503_v39 = vunpack.i.h.bf16 %v5501_v19  ;;  %v5502_v55 = vunpack.i.l.bf16 %v5501_v19 }
 0x29a   : > { %v6305_v51 = vpop.eup %5632  ;;  %v1968_v56 = vsel %vm1916_vm4, %v6303_v52, 0.0 }
 0x29b   : > { %1969 = vadd.xlane.f32.xlu0 %v1968_v56  ;;  %v6309_v57 = vpop.eup %5634  ;;  %v1980_v6 = vsel %vm1916_vm4, %v6305_v51, 0.0  ;;  %v1623_v61 = vrot.slane %v5503_v39, 4  ;;  %v1567_v8 = vrot.slane %v5502_v55, 4  ;;  %v1570_v10 = vsel %vm1071_vm2, %v5502_v55, %v1569_v7 }
 0x29c   : > { %v1986_v58 = vsel %vm1916_vm4, %v6309_v57, 0.0  ;;  %v6315_v63 = vpop.eup %5636  ;;  %v1626_v24 = vsel %vm1071_vm2, %v5503_v39, %v1625_v62  ;;  %v1578_v31 = vperm.slane %v1570_v10, %v5976_v32 }
 0x29d   : > { %1981 = vadd.xlane.f32.xlu2 %v1980_v6  ;;  %1987 = vadd.xlane.f32.xlu1 %v1986_v58  ;;  %v6318_v54 = vpop.eup %5638  ;;  %v1974_v13 = vsel %vm1916_vm4, %v6315_v63, 0.0  ;;  %v1624_v14 = vsel %vm1071_vm2, %v1623_v61, %v6283_v37  ;;  %v1568_v15 = vsel %vm1071_vm2, %v1567_v8, %v6281_v41  ;;  %v1634_v49 = vperm.slane %v1626_v24, %v5976_v32 }
 0x29e   : > { %v1971_v2 = vsel %vm1916_vm4, %v6318_v54, 0.0  ;;  %v1630_v20 = vperm.slane %v1624_v14, %v5976_v32  ;;  %v1574_v30 = vperm.slane %v1568_v15, %v5976_v32  ;;  %v1605_v9 = vrot.slane %v1578_v31, 4 }
 0x29f   : > { %v1661_v48 = vrot.slane %v1634_v49, 4 }
 0x2a0   : > { %v1593_v42 = vrot.slane %v1574_v30, 4  ;;  %v1649_v35 = vrot.slane %v1630_v20, 4 }
 0x2a1   : > { %v5506_v0 = vpop.permute.xlu0 %5505 }
 0x2a2   : > { %v5508_v16 = vunpack.i.h.bf16 %v5506_v0  ;;  %v5507_v18 = vunpack.i.l.bf16 %v5506_v0 }
 0x2a3   : > { %1975 = vadd.xlane.f32.xlu0 %v1974_v13 }
 0x2a4   : > { %v1635_v36 = vrot.slane %v5508_v16, 4  ;;  %v1579_v37 = vrot.slane %v5507_v18, 4 }
 0x2a5   : > { %1972 = vadd.xlane.f32.xlu1 %v1971_v2 }
 0x2a6   : > { %v5496_v33 = vpop.permute.xlu1 %5495 }
 0x2a7   : > { %v5498_v22 = vunpack.i.h.bf16 %v5496_v33  ;;  %v5497_v41 = vunpack.i.l.bf16 %v5496_v33 }
 0x2a9   : > { %v1637_v45 = vrot.slane %v5498_v22, 4  ;;  %v1580_v60 = vsel %vm1071_vm2, %v1579_v37, %v5497_v41  ;;  %v1581_v40 = vrot.slane %v5497_v41, 4  ;;  %v1636_v38 = vsel %vm1071_vm2, %v1635_v36, %v5498_v22 }
 0x2aa   : > { %v1586_v59 = vperm.slane %v1580_v60, %v5976_v32  ;;  %v1642_v27 = vperm.slane %v1636_v38, %v5976_v32 }
 0x2ab   : > { %v1582_v53 = vsel %vm1071_vm2, %v5507_v18, %v1581_v40  ;;  %v1638_v28 = vsel %vm1071_vm2, %v5508_v16, %v1637_v45 }
 0x2ac   : > { %v1590_v43 = vperm.slane %v1582_v53, %v5976_v32  ;;  %v1591_v17 = vrot.slane %v1586_v59, 4  ;;  %v1594_v46 = vsel %vm1071_vm2, %v1586_v59, %v1593_v42  ;;  %v1646_v47 = vperm.slane %v1638_v28, %v5976_v32 }
 0x2ad   : > { %v1602_v11 = vperm.slane %v1594_v46, %v6009_v3  ;;  %v1647_v21 = vrot.slane %v1642_v27, 4  ;;  %v1650_v4 = vsel %vm1071_vm2, %v1642_v27, %v1649_v35 }
 0x2ae   : > { %v1592_v12 = vsel %vm1071_vm2, %v1591_v17, %v1574_v30  ;;  %v1603_v44 = vrot.slane %v1590_v43, 4  ;;  %v1606_v29 = vsel %vm1071_vm2, %v1590_v43, %v1605_v9  ;;  %v1658_v26 = vperm.slane %v1650_v4, %v6009_v3 }
 0x2af   : > { %v1598_v50 = vperm.slane %v1592_v12, %v6009_v3  ;;  %v1614_v25 = vperm.slane %v1606_v29, %v6009_v3  ;;  %v1617_v34 = vrot.slane %v1602_v11, 4  ;;  %v1648_v19 = vsel %vm1071_vm2, %v1647_v21, %v1630_v20 }
 0x2b0   : > { %v1604_v56 = vsel %vm1071_vm2, %v1603_v44, %v1578_v31  ;;  %v1654_v39 = vperm.slane %v1648_v19, %v6009_v3  ;;  %v1659_v55 = vrot.slane %v1646_v47, 4  ;;  %v1662_v6 = vsel %vm1071_vm2, %v1646_v47, %v1661_v48 }
 0x2b1   : > { %v1610_v58 = vperm.slane %v1604_v56, %v6009_v3  ;;  %v1615_v61 = vrot.slane %v1598_v50, 4  ;;  %v1618_v8 = vsel %vm1071_vm2, 0.0, %v1617_v34  ;;  %v1621_v7 = vrot.slane %v1614_v25, 4 }
 0x2b2   : > { %v1660_v0 = vsel %vm1071_vm2, %v1659_v55, %v1634_v49  ;;  %v1670_v62 = vperm.slane %v1662_v6, %v6009_v3  ;;  %v1671_v10 = vrot.slane %v1654_v39, 4  ;;  %v1673_v13 = vrot.slane %v1658_v26, 4 }
 0x2b3   : > { %v1616_v14 = vsel %vm1071_vm2, 0.0, %v1615_v61  ;;  %v1619_v15 = vrot.slane %v1610_v58, 4  ;;  %v1622_v16 = vsel %vm1071_vm2, 0.0, %v1621_v7  ;;  %v1666_v18 = vperm.slane %v1660_v0, %v6009_v3 }
 0x2b4   : > { %v1672_v24 = vsel %vm1071_vm2, 0.0, %v1671_v10  ;;  %v1674_v2 = vsel %vm1071_vm2, 0.0, %v1673_v13  ;;  %v1677_v20 = vrot.slane %v1670_v62, 4  ;;  %v1679_v30 = vsel %vm1071_vm2, %v1617_v34, %v1598_v50 }
 0x2b5   : > { %v1620_v31 = vsel %vm1071_vm2, 0.0, %v1619_v15  ;;  %v1675_v33 = vrot.slane %v1666_v18, 4  ;;  %v1683_v36 = vperm.slane %v1679_v30, %v5976_v32  ;;  %v1684_v37 = vrot.slane %v1618_v8, 4 }
 0x2b6   : > { %v1678_v22 = vsel %vm1071_vm2, 0.0, %v1677_v20  ;;  %v1690_v41 = vsel %vm1071_vm2, %v1621_v7, %v1610_v58  ;;  %v1695_v49 = vrot.slane %v1622_v16, 4  ;;  %v1733_v45 = vsel %vm1071_vm2, %v1673_v13, %v1654_v39 }
 0x2b7   : > { %v1676_v60 = vsel %vm1071_vm2, 0.0, %v1675_v33  ;;  %v1685_v40 = vsel %vm1071_vm2, %v1684_v37, %v1616_v14  ;;  %v1694_v38 = vperm.slane %v1690_v41, %v5976_v32  ;;  %v1703_v42 = vrot.slane %v1683_v36, 4 }
 0x2b8   : > { %v1689_v59 = vperm.slane %v1685_v40, %v5976_v32  ;;  %v1737_v27 = vperm.slane %v1733_v45, %v5976_v32  ;;  %v1738_v35 = vrot.slane %v1674_v2, 4  ;;  %v1744_v9 = vsel %vm1071_vm2, %v1677_v20, %v1666_v18 }
 0x2b9   : > { %v1748_v53 = vperm.slane %v1744_v9, %v5976_v32  ;;  %v1749_v28 = vrot.slane %v1678_v22, 4  ;;  %v1696_v43 = vsel %vm1071_vm2, %v1695_v49, %v1620_v31  ;;  %v1715_v17 = vrot.slane %v1694_v38, 4 }
 0x2ba   : > { %v1739_v46 = vsel %vm1071_vm2, %v1738_v35, %v1672_v24  ;;  %v1757_v47 = vrot.slane %v1737_v27, 4  ;;  %v1700_v48 = vperm.slane %v1696_v43, %v5976_v32  ;;  %v1704_v11 = vsel %vm1071_vm2, %v1689_v59, %v1703_v42 }
 0x2bb   : > { %v1743_v21 = vperm.slane %v1739_v46, %v5976_v32  ;;  %v1712_v4 = vperm.slane %v1704_v11, %v6009_v3  ;;  %v1750_v12 = vsel %vm1071_vm2, %v1749_v28, %v1676_v60  ;;  %v1769_v44 = vrot.slane %v1748_v53, 4 }
 0x2bc   : > { %v1716_v29 = vsel %vm1071_vm2, %v1700_v48, %v1715_v17  ;;  %v1754_v26 = vperm.slane %v1750_v12, %v5976_v32  ;;  %v1701_v50 = vrot.slane %v1689_v59, 4  ;;  %v1713_v25 = vrot.slane %v1700_v48, 4 }
 0x2bd   : > { %v1724_v34 = vperm.slane %v1716_v29, %v6009_v3  ;;  %v1731_v19 = vrot.slane %v1712_v4, 4  ;;  %v1758_v56 = vsel %vm1071_vm2, %v1743_v21, %v1757_v47  ;;  %v1755_v39 = vrot.slane %v1743_v21, 4 }
 0x2be   : > { %v1766_v55 = vperm.slane %v1758_v56, %v6009_v3  ;;  %v1770_v6 = vsel %vm1071_vm2, %v1754_v26, %v1769_v44  ;;  %v1702_v58 = vsel %vm1071_vm2, %v1701_v50, %v1683_v36  ;;  %v1714_v61 = vsel %vm1071_vm2, %v1713_v25, %v1694_v38 }
 0x2bf   : > { %v1732_v8 = vsel %vm1071_vm2, %v1724_v34, %v1731_v19  ;;  %v1778_v7 = vperm.slane %v1770_v6, %v6009_v3  ;;  %v1708_v0 = vperm.slane %v1702_v58, %v6009_v3  ;;  %v1720_v62 = vperm.slane %v1714_v61, %v6009_v3 }
 0x2c0   : > { %v1785_v10 = vrot.slane %v1766_v55, 4  ;;  %v1793_v13 = vpack.c.bf16 %v1732_v8, %v1732_v8  ;;  %v1756_v14 = vsel %vm1071_vm2, %v1755_v39, %v1737_v27  ;;  %v1767_v15 = vrot.slane %v1754_v26, 4 }
 0x2c1   : > { %v1727_v16 = vrot.slane %v1708_v0, 4  ;;  %v1762_v18 = vperm.slane %v1756_v14, %v6009_v3  ;;  %v1729_v24 = vrot.slane %v1724_v34, 4  ;;  %v1783_v2 = vrot.slane %v1778_v7, 4 }
 0x2c2   : > { %v1786_v20 = vsel %vm1071_vm2, %v1778_v7, %v1785_v10  ;;  %v2104_v30 = vunpack.c.l.b16 %v1793_v13  ;;  %v1768_v31 = vsel %vm1071_vm2, %v1767_v15, %v1748_v53  ;;  %v1725_v33 = vrot.slane %v1720_v62, 4 }
 0x2c3   : > { %v1794_v36 = vpack.c.bf16 %v1786_v20, %v1786_v20  ;;  %v1728_v37 = vsel %vm1071_vm2, %v1720_v62, %v1727_v16  ;;  %v1774_v22 = vperm.slane %v1768_v31, %v6009_v3  ;;  %v1781_v41 = vrot.slane %v1762_v18, 4 }
 0x2c4   : > { %v1789_v49 = vpack.c.bf16 %v1728_v37, %v1728_v37  ;;  %v1730_v45 = vsel %vm1071_vm2, %v1729_v24, %v1712_v4  ;;  %v1784_v60 = vsel %vm1071_vm2, %v1783_v2, %v1766_v55  ;;  %v1726_v40 = vsel %vm1071_vm2, %v1725_v33, %v1708_v0 }
 0x2c5   : > { %v2105_v38 = vunpack.c.l.b16 %v1794_v36  ;;  %v1782_v42 = vsel %vm1071_vm2, %v1774_v22, %v1781_v41  ;;  %v1791_v59 = vpack.c.bf16 %v1730_v45, %v1730_v45  ;;  %v1792_v27 = vpack.c.bf16 %v1784_v60, %v1784_v60 }
 0x2c6   : > { %v1790_v35 = vpack.c.bf16 %v1782_v42, %v1782_v42  ;;  %v2048_v9 = vunpack.c.l.b16 %v1789_v49  ;;  %v1779_v53 = vrot.slane %v1774_v22, 4  ;;  %v1787_v28 = vpack.c.bf16 %v1726_v40, %v1726_v40 }
 0x2c7   : > { %v2106_v43 = vpack.c.b16 %v2105_v38, %v2104_v30  ;;  %v2076_v17 = vunpack.c.l.b16 %v1791_v59  ;;  %v2077_v46 = vunpack.c.l.b16 %v1792_v27 }
 0x2c8   : > { %v2049_v47 = vunpack.c.l.b16 %v1790_v35  ;;  %v1780_v48 = vsel %vm1071_vm2, %v1779_v53, %v1762_v18  ;;  %v2020_v4 = vunpack.c.l.b16 %v1787_v28 }
 0x2c9   : > { %2118 = vmatpush.bf16.msra.mxu2 %v2106_v43  ;;  %v2078_v11 = vpack.c.b16 %v2077_v46, %v2076_v17  ;;  %v1788_v21 = vpack.c.bf16 %v1780_v48, %v1780_v48 }
 0x2ca   : > { %v2050_v12 = vpack.c.b16 %v2049_v47, %v2048_v9 }
 0x2cb   : > { %2090 = vmatpush.bf16.msra.mxu1 %v2078_v11  ;;  %v2021_v44 = vunpack.c.l.b16 %v1788_v21 }
 0x2cc   : > { %2062 = vmatpush.bf16.msra.mxu0 %v2050_v12 }
 0x2cd   : > { %v2022_v29 = vpack.c.b16 %v2021_v44, %v2020_v4 }
 0x2cf   : > { %2034 = vmatpush.bf16.msrb.mxu3 %v2022_v29 }
 0x2fd   : > { %v1979_v26 = vpop.xlane.xlu0 %1978 }
 0x306   : > { %v1967_v50 = vpop.xlane.xlu1 %1966 }
 0x307   : > { %5640 = vrcp.f32 %v1967_v50 }
 0x308   : > { %v1985_v25 = vpop.xlane.xlu2 %1984  ;;  %5642 = vrcp.f32 %v1979_v26 }
 0x309   : > { %5644 = vrcp.f32 %v1985_v25 }
 0x30d   : > { %v5641_v34 = vpop.eup %5640 }
 0x30e   : > { %v1970_v19 = vpop.xlane.xlu0 %1969  ;;  %v1997_v56 = vmul.f32 %v5641_v34, %v6294_v1  ;;  %v5643_v6 = vpop.eup %5642 }
 0x30f   : > { %5646 = vrcp.f32 %v1970_v19  ;;  %v5645_v58 = vpop.eup %5644  ;;  %v2001_v8 = vmul.f32 %v5643_v6, %v6290_v5 }
 0x310   : > { %v1982_v39 = vpop.xlane.xlu2 %1981  ;;  %v1988_v55 = vpop.xlane.xlu1 %1987  ;;  %v2005_v7 = vpack.c.bf16 %v1997_v56, %v1997_v56  ;;  %v2003_v0 = vmul.f32 %v5645_v58, %v6298_v23 }
 0x311   : > { %5648 = vrcp.f32 %v1982_v39  ;;  %v2009_v1 = vpack.c.bf16 %v2001_v8, %v2001_v8 }
 0x312   : > { %5650 = vrcp.f32 %v1988_v55  ;;  %v2015_v16 = vunpack.c.l.b16 %v2005_v7  ;;  %v2011_v2 = vpack.c.bf16 %v2003_v0, %v2003_v0 }
 0x314   : > { %v2099_v37 = vunpack.c.l.b16 %v2011_v2 }
 0x315   : > { %v5647_v61 = vpop.eup %5646 }
 0x316   : > { %v1998_v62 = vmul.f32 %v5647_v61, %v6303_v52  ;;  %v1976_v10 = vpop.xlane.xlu0 %1975  ;;  %v2071_v52 = vunpack.c.l.b16 %v2009_v1 }
 0x317   : > { %5652 = vrcp.f32 %v1976_v10  ;;  %v5649_v13 = vpop.eup %5648 }
 0x318   : > { %v2006_v14 = vpack.c.bf16 %v1998_v62, %v1998_v62  ;;  %v5651_v15 = vpop.eup %5650  ;;  %v2002_v18 = vmul.f32 %v5649_v13, %v6305_v51  ;;  %v1973_v24 = vpop.xlane.xlu1 %1972 }
 0x319   : > { %v2004_v30 = vmul.f32 %v5651_v15, %v6309_v57  ;;  %5654 = vrcp.f32 %v1973_v24 }
 0x31a   : > { %v2016_v20 = vunpack.c.l.b16 %v2006_v14  ;;  %v2010_v5 = vpack.c.bf16 %v2002_v18, %v2002_v18 }
 0x31b   : > { %v2012_v31 = vpack.c.bf16 %v2004_v30, %v2004_v30 }
 0x31c   : > { %v2017_v23 = vpack.c.b16 %v2016_v20, %v2015_v16  ;;  %v2072_v36 = vunpack.c.l.b16 %v2010_v5 }
 0x31d   : > { %v5653_v33 = vpop.eup %5652  ;;  %v2100_v22 = vunpack.c.l.b16 %v2012_v31 }
 0x31e   : > { %v2000_v41 = vmul.f32 %v5653_v33, %v6315_v63  ;;  %5287 = vmatmul.msk.bf16.vlgmr.msrb.gmra.mxu3 %vm1916_vm4, %v2017_v23  ;;  %v2073_v49 = vpack.c.b16 %v2072_v36, %v2071_v52 }
 0x31f   : > { %v5655_v51 = vpop.eup %5654  ;;  %v2101_v45 = vpack.c.b16 %v2100_v22, %v2099_v37 }
 0x320   : > { %v2008_v60 = vpack.c.bf16 %v2000_v41, %v2000_v41  ;;  %v1999_v40 = vmul.f32 %v5655_v51, %v6318_v54  ;;  %5289 = vmatmul.msk.bf16.vlgmr.msra.gmra.mxu1 %vm1916_vm4, %v2073_v49 }
 0x321   : > { %5290 = vmatmul.msk.bf16.vlgmr.msra.gmra.mxu2 %vm1916_vm4, %v2101_v45 }
 0x322   : > { %v2007_v57 = vpack.c.bf16 %v1999_v40, %v1999_v40  ;;  %v2044_v38 = vunpack.c.l.b16 %v2008_v60 }
 0x324   : > { %v2043_v42 = vunpack.c.l.b16 %v2007_v57 }
 0x326   : > { %v2045_v59 = vpack.c.b16 %v2044_v38, %v2043_v42 }
 0x328   : > { %5288 = vmatmul.msk.bf16.vlgmr.msra.gmra.mxu0 %vm1916_vm4, %v2045_v59 }
 0x39d   : > { %v2092_v27 = vpop.f32.mrf.mxu1 }
 0x39e   : > { %v2125_v63 = vrot.slane %v2092_v27, 4 }
 0x3a1   : > { %v2036_v35 = vpop.f32.mrf.mxu3 }
 0x3a2   : > { %v2126_v9 = vsel %vm1071_vm2, %v2125_v63, %v2036_v35  ;;  %v2127_v53 = vrot.slane %v2036_v35, 4 }
 0x3a3   : > { %v2132_v54 = vperm.slane %v2126_v9, %v5976_v32 }
 0x3a4   : > { %v2128_v28 = vsel %vm1071_vm2, %v2092_v27, %v2127_v53  ;;  %v2120_v43 = vpop.f32.mrf.mxu2 }
 0x3a5   : > { %v2136_v17 = vperm.slane %v2128_v28, %v5976_v32  ;;  %v2137_v46 = vrot.slane %v2120_v43, 4  ;;  %v2064_v47 = vpop.f32.mrf.mxu0  ;;  %v2094_v48 = vpop.f32.mrf.mxu1  ;;  %v2151_v12 = vrot.slane %v2132_v54, 4 }
 0x3a6   : > { %v2139_v11 = vrot.slane %v2064_v47, 4  ;;  %v2181_v21 = vrot.slane %v2094_v48, 4 }
 0x3a7   : > { %v2138_v4 = vsel %vm1071_vm2, %v2137_v46, %v2064_v47  ;;  %v2163_v50 = vrot.slane %v2136_v17, 4 }
 0x3a8   : > { %v2140_v44 = vsel %vm1071_vm2, %v2120_v43, %v2139_v11  ;;  %v2144_v29 = vperm.slane %v2138_v4, %v5976_v32 }
 0x3a9   : > { %v2038_v26 = vpop.f32.mrf.mxu3  ;;  %v2148_v25 = vperm.slane %v2140_v44, %v5976_v32 }
 0x3aa   : > { %v2182_v34 = vsel %vm1071_vm2, %v2181_v21, %v2038_v26  ;;  %v2183_v19 = vrot.slane %v2038_v26, 4  ;;  %v2149_v56 = vrot.slane %v2144_v29, 4  ;;  %v2152_v39 = vsel %vm1071_vm2, %v2144_v29, %v2151_v12 }
 0x3ab   : > { %v2188_v55 = vperm.slane %v2182_v34, %v5976_v32  ;;  %v2160_v6 = vperm.slane %v2152_v39, %v6009_v3  ;;  %v2161_v58 = vrot.slane %v2148_v25, 4  ;;  %v2164_v61 = vsel %vm1071_vm2, %v2148_v25, %v2163_v50 }
 0x3ac   : > { %v2184_v8 = vsel %vm1071_vm2, %v2094_v48, %v2183_v19  ;;  %v2150_v7 = vsel %vm1071_vm2, %v2149_v56, %v2132_v54  ;;  %v2172_v0 = vperm.slane %v2164_v61, %v6009_v3  ;;  %v2122_v13 = vpop.f32.mrf.mxu2 }
 0x3ad   : > { %v2192_v62 = vperm.slane %v2184_v8, %v5976_v32  ;;  %v2207_v10 = vrot.slane %v2188_v55, 4  ;;  %v2156_v14 = vperm.slane %v2150_v7, %v6009_v3  ;;  %v2162_v15 = vsel %vm1071_vm2, %v2161_v58, %v2136_v17  ;;  %v2066_v18 = vpop.f32.mrf.mxu0 }
 0x3ae   : > { %v2175_v1 = vrot.slane %v2160_v6, 4  ;;  %v2193_v16 = vrot.slane %v2122_v13, 4  ;;  %v2168_v24 = vperm.slane %v2162_v15, %v6009_v3  ;;  %v2179_v2 = vrot.slane %v2172_v0, 4 }
 0x3af   : > { %v2219_v20 = vrot.slane %v2192_v62, 4  ;;  %v2195_v30 = vrot.slane %v2066_v18, 4  ;;  %v2173_v5 = vrot.slane %v2156_v14, 4 }
 0x3b0   : > { %v2176_v31 = vsel %vm1071_vm2, 0.0, %v2175_v1  ;;  %v2237_v23 = vsel %vm1071_vm2, %v2175_v1, %v2156_v14  ;;  %v2194_v33 = vsel %vm1071_vm2, %v2193_v16, %v2066_v18  ;;  %v2177_v52 = vrot.slane %v2168_v24, 4 }
 0x3b1   : > { %v2180_v36 = vsel %vm1071_vm2, 0.0, %v2179_v2  ;;  %v2241_v37 = vperm.slane %v2237_v23, %v5976_v32  ;;  %v2242_v22 = vrot.slane %v2176_v31, 4  ;;  %v2174_v41 = vsel %vm1071_vm2, 0.0, %v2173_v5 }
 0x3b2   : > { %v2248_v49 = vsel %vm1071_vm2, %v2179_v2, %v2168_v24  ;;  %v2253_v51 = vrot.slane %v2180_v36, 4  ;;  %v2196_v45 = vsel %vm1071_vm2, %v2122_v13, %v2195_v30  ;;  %v2200_v57 = vperm.slane %v2194_v33, %v5976_v32 }
 0x3b3   : > { %v2243_v60 = vsel %vm1071_vm2, %v2242_v22, %v2174_v41  ;;  %v2261_v40 = vrot.slane %v2241_v37, 4  ;;  %v2204_v38 = vperm.slane %v2196_v45, %v5976_v32  ;;  %v2178_v59 = vsel %vm1071_vm2, 0.0, %v2177_v52 }
 0x3b4   : > { %v2247_v42 = vperm.slane %v2243_v60, %v5976_v32  ;;  %v2252_v27 = vperm.slane %v2248_v49, %v5976_v32  ;;  %v2205_v63 = vrot.slane %v2200_v57, 4  ;;  %v2208_v35 = vsel %vm1071_vm2, %v2200_v57, %v2207_v10 }
 0x3b5   : > { %v2217_v9 = vrot.slane %v2204_v38, 4  ;;  %v2220_v53 = vsel %vm1071_vm2, %v2204_v38, %v2219_v20  ;;  %v2216_v28 = vperm.slane %v2208_v35, %v6009_v3  ;;  %v2254_v43 = vsel %vm1071_vm2, %v2253_v51, %v2178_v59 }
 0x3b6   : > { %v2228_v54 = vperm.slane %v2220_v53, %v6009_v3  ;;  %v2262_v17 = vsel %vm1071_vm2, %v2247_v42, %v2261_v40  ;;  %v2206_v46 = vsel %vm1071_vm2, %v2205_v63, %v2188_v55  ;;  %v2258_v48 = vperm.slane %v2254_v43, %v5976_v32 }
 0x3b7   : > { %v2218_v47 = vsel %vm1071_vm2, %v2217_v9, %v2192_v62  ;;  %v2212_v11 = vperm.slane %v2206_v46, %v6009_v3  ;;  %v2231_v4 = vrot.slane %v2216_v28, 4  ;;  %v2270_v44 = vperm.slane %v2262_v17, %v6009_v3 }
 0x3b8   : > { %v2224_v21 = vperm.slane %v2218_v47, %v6009_v3  ;;  %v2235_v12 = vrot.slane %v2228_v54, 4  ;;  %v2273_v29 = vrot.slane %v2252_v27, 4  ;;  %v2259_v26 = vrot.slane %v2247_v42, 4 }
 0x3b9   : > { %v2271_v50 = vrot.slane %v2258_v48, 4  ;;  %v2229_v25 = vrot.slane %v2212_v11, 4  ;;  %v2232_v34 = vsel %vm1071_vm2, 0.0, %v2231_v4  ;;  %v2291_v39 = vsel %vm1071_vm2, %v2231_v4, %v2212_v11  ;;  %v5408_v11 = vld [vmem:[%s5874_s3] sm:$0xff] }
 0x3ba   : > { %v2233_v19 = vrot.slane %v2224_v21, 4  ;;  %v2236_v56 = vsel %vm1071_vm2, 0.0, %v2235_v12  ;;  %v2296_v55 = vrot.slane %v2232_v34, 4  ;;  %v2302_v6 = vsel %vm1071_vm2, %v2235_v12, %v2224_v21 }
 0x3bb   : > { %v2307_v58 = vrot.slane %v2236_v56, 4  ;;  %v2230_v61 = vsel %vm1071_vm2, 0.0, %v2229_v25  ;;  %v2295_v8 = vperm.slane %v2291_v39, %v5976_v32  ;;  %v2274_v0 = vsel %vm1071_vm2, %v2258_v48, %v2273_v29  ;;  %v5409_v48 = vld [vmem:[%s5874_s3 + $0x8] sm:$0xff]  ;;  %s7646_s3 = smov %s7645_s20 }
 0x3bc   : > { %v2234_v7 = vsel %vm1071_vm2, 0.0, %v2233_v19  ;;  %v2297_v62 = vsel %vm1071_vm2, %v2296_v55, %v2230_v61  ;;  %v2282_v10 = vperm.slane %v2274_v0, %v6009_v3  ;;  %v2306_v13 = vperm.slane %v2302_v6, %v5976_v32  ;;  %2406 = vmatpush.bf16.msra.mxu3 %v5409_v48  ;;  %v6516_v0 = vld [vmem:[%s7642_s8] sm:$0xff] }
 0x3bd   : > { %v2308_v14 = vsel %vm1071_vm2, %v2307_v58, %v2234_v7  ;;  %v2301_v15 = vperm.slane %v2297_v62, %v5976_v32  ;;  %v2315_v1 = vrot.slane %v2295_v8, 4  ;;  %v2260_v18 = vsel %vm1071_vm2, %v2259_v26, %v2241_v37  ;;  %v5412_v7 = vld [vmem:[%s5893_s24 + $0x10] sm:$0xff]  ;;  %v5617_v62 = vld [vmem:[%s7644_s28] ss:$0 sm:$0xff] }
 0x3be   : > { %v2312_v16 = vperm.slane %v2308_v14, %v5976_v32  ;;  %v2289_v24 = vrot.slane %v2270_v44, 4  ;;  %v2327_v2 = vrot.slane %v2306_v13, 4  ;;  %v2266_v20 = vperm.slane %v2260_v18, %v6009_v3  ;;  %v5702_v14 = vld [vmem:[#allocation2] sm:$0xff] }
 0x3bf   : > { %v2316_v30 = vsel %vm1071_vm2, %v2301_v15, %v2315_v1  ;;  %v2272_v5 = vsel %vm1071_vm2, %v2271_v50, %v2252_v27  ;;  %v2313_v31 = vrot.slane %v2301_v15, 4  ;;  %v2287_v36 = vrot.slane %v2282_v10, 4  ;;  %v6528_v1 = vld [vmem:[%s7642_s8 + $0x8] sm:$0xff] }
 0x3c0   : > { %v2325_v23 = vrot.slane %v2312_v16, 4  ;;  %v2324_v33 = vperm.slane %v2316_v30, %v6009_v3  ;;  %v2328_v52 = vsel %vm1071_vm2, %v2312_v16, %v2327_v2  ;;  %v2278_v22 = vperm.slane %v2272_v5, %v6009_v3  ;;  %2407 = vmatpush.bf16.msra.mxu3 %v5408_v11  ;;  %v5703_v2 = vld [vmem:[#allocation2 + $0x8] sm:$0xff] }
 0x3c1   : > { %v2336_v41 = vperm.slane %v2328_v52, %v6009_v3  ;;  %v2285_v37 = vrot.slane %v2266_v20, 4  ;;  %v2314_v49 = vsel %vm1071_vm2, %v2313_v31, %v2295_v8  ;;  %v2290_v38 = vsel %vm1071_vm2, %v2282_v10, %v2289_v24  ;;  %v5413_v8 = vld [vmem:[%s5893_s24 + $0x18] sm:$0xff] }
 0x3c2   : > { %v2326_v51 = vsel %vm1071_vm2, %v2325_v23, %v2306_v13  ;;  %v2343_v45 = vrot.slane %v2324_v33, 4  ;;  %v2283_v60 = vrot.slane %v2278_v22, 4  ;;  %v2320_v40 = vperm.slane %v2314_v49, %v6009_v3  ;;  %2557 = vmatpush.bf16.msrb.mxu1 %v5413_v8 }
 0x3c3   : > { %v2332_v57 = vperm.slane %v2326_v51, %v6009_v3  ;;  %v2341_v42 = vrot.slane %v2336_v41, 4  ;;  %v2288_v53 = vsel %vm1071_vm2, %v2287_v36, %v2270_v44  ;;  %v2286_v43 = vsel %vm1071_vm2, %v2278_v22, %v2285_v37 }
 0x3c4   : > { %v2344_v59 = vsel %vm1071_vm2, %v2336_v41, %v2343_v45  ;;  %v2339_v63 = vrot.slane %v2320_v40, 4  ;;  %v2284_v35 = vsel %vm1071_vm2, %v2283_v60, %v2266_v20  ;;  %v5738_v5 = vmov 32.0  }
 0x3c5   : > { %v2337_v27 = vrot.slane %v2332_v57, 4  ;;  %v5519_v9 = vpack.i.bf16 %v2344_v59, %v2290_v38  ;;  %v2342_v28 = vsel %vm1071_vm2, %v2341_v42, %v2324_v33  ;;  %5656 = vrcp.f32 %v5738_v5 }
 0x3c6   : > { %v5514_v54 = vpack.i.bf16 %v2342_v28, %v2288_v53  ;;  %v2340_v17 = vsel %vm1071_vm2, %v2332_v57, %v2339_v63  ;;  %2558 = vmatpush.bf16.msrb.mxu1 %v5412_v7  ;;  %v5618_v63 = vld [vmem:[%s5898_s26 + $0x1] ss:$0 sm:$0xff] }
 0x3c7   : > { %v2338_v46 = vsel %vm1071_vm2, %v2337_v27, %v2320_v40  ;;  %5520 = vrot.lane.b32.xlu0 %v5519_v9, %s5735_s0  ;;  %v5509_v47 = vpack.i.bf16 %v2340_v17, %v2286_v43 }
 0x3c8   : > { %5515 = vrot.lane.b32.xlu1 %v5514_v54, %s5736_s22 }
 0x3c9   : > { %5510 = vrot.lane.b32.xlu2 %v5509_v47, %s5737_s23  ;;  %5330 = vmatmul.msk.bf16.vlgmr.msrb.gmra.mxu1 %vm956_vm1, %v6516_v0 }
 0x3cb   : > { %v5657_v31 = vpop.eup %5656 }
 0x3cc   : > { %v2423_v23 = vmul.f32 32.0, %v5657_v31  ;;  %vm2427_vm6 = vweird.f32 %v5657_v31 }
 0x3ce   : > { %v2424_v33 = vsub.f32 1.0, %v2423_v23 }
 0x3d0   : > { %v2425_v52 = vmul.f32 %v5657_v31, %v2424_v33 }
 0x3d2   : > { %v2426_v36 = vadd.f32 %v5657_v31, %v2425_v52 }
 0x3d4   : > { %v6534_v41 = vsel %vm2427_vm6, %v5657_v31, %v2426_v36  ;;  %vm4654_vm6 = vcmask 523264  }
 0x3d9   : > { %5331 = vmatmul.msk.bf16.gmra.mxu1 %vm956_vm1, %v6528_v1 }
 0x423   : > { %v5511_v21 = vpop.permute.xlu2 %5510 }
 0x424   : > { %v5513_v4 = vunpack.i.h.bf16 %v5511_v21  ;;  %v5512_v12 = vunpack.i.l.bf16 %v5511_v21  ;;  %v5411_v21 = vld [vmem:[%s5893_s24 + $0x8] sm:$0xff] }
 0x425   : > { %2503 = vmatpush.bf16.msrb.mxu0 %v5411_v21 }
 0x426   : > { %v2369_v25 = vsel %vm1805_vm3, %v2284_v35, %v5512_v12  ;;  %v2370_v34 = vsel %vm1805_vm3, %v2338_v46, %v5513_v4  ;;  %v5410_v4 = vld [vmem:[%s5893_s24] sm:$0xff] }
 0x429   : > { %2504 = vmatpush.bf16.msrb.mxu0 %v5410_v4 }
 0x439   : > { %v5521_v44 = vpop.permute.xlu0 %5520 }
 0x43a   : > { %v5516_v29 = vpop.permute.xlu1 %5515  ;;  %v5523_v19 = vunpack.i.h.bf16 %v5521_v44  ;;  %v5522_v56 = vunpack.i.l.bf16 %v5521_v44 }
 0x43b   : > { %v5518_v26 = vunpack.i.h.bf16 %v5516_v29  ;;  %v5517_v50 = vunpack.i.l.bf16 %v5516_v29 }
 0x43d   : > { %v2371_v39 = vsel %vm1916_vm4, %v2369_v25, %v5517_v50  ;;  %v2372_v55 = vsel %vm1916_vm4, %v2370_v34, %v5518_v26 }
 0x43e   : > { %v2374_v6 = vsel %vm2373_vm5, %v2371_v39, %v5522_v56  ;;  %v2375_v58 = vsel %vm2373_vm5, %v2372_v55, %v5523_v19 }
 0x43f   : > { %v2376_v61 = vpack.c.bf16 %v2375_v58, %v2374_v6  ;;  %v933_v58 = vld [vmem:[%s5913_s16] sm:$0x7] }
 0x441   : > { %5299 = vmatmul.msk.bf16.vlgmr.msra.gmra.mxu3 %vm956_vm1, %v2376_v61 }
 0x446   : > { %v2560_v22 = vpop.f32.mrf.mxu1 }
 0x447   : > { %v6547_v43 = vadd.f32 %v5618_v63, %v2560_v22 }
 0x44e   : > { %v2562_v45 = vpop.f32.mrf.mxu1 }
 0x44f   : > { %v6549_v17 = vadd.f32 %v5618_v63, %v2562_v45 }
 0x451   : > { %v5539_v46 = vpack.i.bf16 %v6549_v17, %v6547_v43 }
 0x456   : > { %v2565_v59 = vpop.f32.mrf.mxu1 }
 0x457   : > { %v6541_v9 = vadd.f32 %v5618_v63, %v2565_v59 }
 0x459   : > { %v3015_v36 = vrot.slane %v6541_v9, 4 }
 0x45e   : > { %v2567_v53 = vpop.f32.mrf.mxu1 }
 0x45f   : > { %v6543_v28 = vadd.f32 %v5618_v63, %v2567_v53 }
 0x461   : > { %v5524_v54 = vpack.i.bf16 %v6543_v28, %v6541_v9  ;;  %v3071_v22 = vrot.slane %v6543_v28, 4 }
 0x4c4   : > { %v2409_v10 = vpop.f32.mrf.mxu3 }
 0x4c5   : > { %v2410_v13 = vadd.f32 %v5617_v62, %v2409_v10 }
 0x4c7   : > { %v2414_v15 = vadd.f32 %v5702_v14, %v2410_v13  ;;  %v934_v13 = vld [vmem:[%s5918_s6] sm:$0x7] }
 0x4c9   : > { %v2416_v16 = vsel %vm956_vm1, %v2414_v15, 0.0 }
 0x4ca   : > { %2417 = vadd.xlane.f32.xlu2 %v2416_v16  ;;  %v2470_v16 = vperm.slane %v934_v13, 0 }
 0x4cc   : > { %v2411_v18 = vpop.f32.mrf.mxu3 }
 0x4cd   : > { %v2412_v24 = vadd.f32 %v5617_v62, %v2411_v18  ;;  %v2467_v62 = vperm.slane %v933_v58, 0  ;;  %v2959_v58 = vrot.slane %v6549_v17, 4 }
 0x4cf   : > { %v2415_v20 = vadd.f32 %v5703_v2, %v2412_v24 }
 0x4d1   : > { %v2419_v30 = vsel %vm956_vm1, %v2415_v20, 0.0 }
 0x4d2   : > { %2420 = vadd.xlane.f32.xlu0 %v2419_v30 }
 0x4e6   : > { %5525 = vrot.lane.b32.xlu0 %v5524_v54, %s5731_s12 }
 0x4ee   : > { %5540 = vrot.lane.b32.xlu0 %v5539_v46, %s5731_s12 }
 0x4f6   : > { %5550 = vrot.lane.b32.xlu0 %v5539_v46, %s5730_s10 }
 0x53d   : > { %v2418_v37 = vpop.xlane.xlu2 %2417 }
 0x53e   : > { %v2429_v49 = vmul.f32 %v6534_v41, %v2418_v37 }
 0x540   : > { %v2431_v51 = vsub.f32 %v2414_v15, %v2429_v49 }
 0x542   : > { %v2433_v60 = vmul.f32 %v2431_v51, %v2431_v51 }
 0x544   : > { %v2435_v40 = vsel %vm956_vm1, %v2433_v60, 0.0 }
 0x545   : > { %v2421_v57 = vpop.xlane.xlu0 %2420  ;;  %2436 = vadd.xlane.f32.xlu1 %v2435_v40 }
 0x546   : > { %v2430_v38 = vmul.f32 %v6534_v41, %v2421_v57 }
 0x548   : > { %v2432_v42 = vsub.f32 %v2415_v20, %v2430_v38 }
 0x54a   : > { %v2434_v27 = vmul.f32 %v2432_v42, %v2432_v42 }
 0x54c   : > { %v2438_v35 = vsel %vm956_vm1, %v2434_v27, 0.0 }
 0x54d   : > { %2439 = vadd.xlane.f32.xlu2 %v2438_v35 }
 0x558   : > { %v5526_v23 = vpop.permute.xlu0 %5525 }
 0x559   : > { %v5527_v45 = vunpack.i.l.bf16 %v5526_v23 }
 0x55e   : > { %5530 = vrot.lane.b32.xlu1 %v5524_v54, %s5732_s13 }
 0x565   : > { %5535 = vrot.lane.b32.xlu2 %v5524_v54, %s5730_s10  ;;  %v3027_v54 = vrot.slane %v5527_v45, 4 }
 0x566   : > { %5545 = vrot.lane.b32.xlu1 %v5539_v46, %s5732_s13 }
 0x5b8   : > { %v2437_v47 = vpop.xlane.xlu1 %2436 }
 0x5b9   : > { %v2441_v48 = vmul.f32 %v2437_v47, %v6534_v41 }
 0x5bb   : > { %v2443_v11 = vadd.f32 1e-05, %v2441_v48 }
 0x5bd   : > { %5658 = vrsqrt.f32 %v2443_v11  ;;  %vm2451_vm8 = vweird.f32 %v2443_v11 }
 0x5c0   : > { %v2440_v12 = vpop.xlane.xlu2 %2439 }
 0x5c1   : > { %v2442_v44 = vmul.f32 %v2440_v12, %v6534_v41 }
 0x5c3   : > { %v5659_v29 = vpop.eup %5658  ;;  %v2444_v26 = vadd.f32 1e-05, %v2442_v44 }
 0x5c4   : > { %v2446_v50 = vmul.f32 %v5659_v29, %v2443_v11  ;;  %vm2452_vm7 = vweird.f32 %v5659_v29 }
 0x5c5   : > { %5660 = vrsqrt.f32 %v2444_v26  ;;  %vm2453_vm9 = vmor %vm2451_vm8, %vm2452_vm7  ;;  %vm2461_vm11 = vweird.f32 %v2444_v26  ;;  %vm4815_vm7 = vcmask 654336   ;;  %vm4819_vm8 = vcmask 916480  }
 0x5c6   : > { %v2447_v25 = vmul.f32 %v5659_v29, %v2446_v50 }
 0x5c8   : > { %v2448_v34 = vmul.f32 0.5, %v2447_v25 }
 0x5ca   : > { %v2449_v19 = vsub.f32 1.5, %v2448_v34 }
 0x5cb   : > { %v5661_v56 = vpop.eup %5660 }
 0x5cc   : > { %v2450_v39 = vmul.f32 %v5659_v29, %v2449_v19  ;;  %v2456_v55 = vmul.f32 %v5661_v56, %v2444_v26  ;;  %vm2462_vm10 = vweird.f32 %v5661_v56 }
 0x5cd   : > { %vm2463_vm12 = vmor %vm2461_vm11, %vm2462_vm10 }
 0x5ce   : > { %v2457_v6 = vmul.f32 %v5661_v56, %v2456_v55  ;;  %v2454_v61 = vsel %vm2453_vm9, %v5659_v29, %v2450_v39 }
 0x5cf   : > { %v2465_v10 = vmul.f32 %v2454_v61, %v2431_v51  ;;  %v5528_v51 = vunpack.i.h.bf16 %v5526_v23 }
 0x5d0   : > { %v2458_v8 = vmul.f32 0.5, %v2457_v6  ;;  %v5531_v31 = vpop.permute.xlu1 %5530  ;;  %v2903_v6 = vrot.slane %v6547_v43, 4 }
 0x5d1   : > { %v2468_v18 = vmul.f32 %v2467_v62, %v2465_v10  ;;  %v5533_v33 = vunpack.i.h.bf16 %v5531_v31  ;;  %v5532_v52 = vunpack.i.l.bf16 %v5531_v31  ;;  %v3083_v53 = vrot.slane %v5528_v51, 4 }
 0x5d2   : > { %v2459_v7 = vsub.f32 1.5, %v2458_v8 }
 0x5d3   : > { %v6565_v20 = vadd.f32 %v2470_v16, %v2468_v18  ;;  %v3069_v37 = vrot.slane %v5533_v33, 4  ;;  %v3013_v49 = vrot.slane %v5532_v52, 4  ;;  %v3072_v60 = vsel %vm1071_vm2, %v5533_v33, %v3071_v22 }
 0x5d4   : > { %v2460_v14 = vmul.f32 %v5661_v56, %v2459_v7  ;;  %v3016_v40 = vsel %vm1071_vm2, %v5532_v52, %v3015_v36  ;;  %v3080_v59 = vperm.slane %v3072_v60, %v5976_v32 }
 0x5d5   : > { %v3070_v57 = vsel %vm1071_vm2, %v3069_v37, %v6543_v28  ;;  %v3014_v38 = vsel %vm1071_vm2, %v3013_v49, %v6541_v9  ;;  %v3024_v27 = vperm.slane %v3016_v40, %v5976_v32  ;;  %v5536_v28 = vpop.permute.xlu2 %5535 }
 0x5d6   : > { %v2464_v15 = vsel %vm2463_vm12, %v5661_v56, %v2460_v14  ;;  %v3076_v46 = vperm.slane %v3070_v57, %v5976_v32  ;;  %v3020_v47 = vperm.slane %v3014_v38, %v5976_v32  ;;  %v5538_v48 = vunpack.i.h.bf16 %v5536_v28 }
 0x5d7   : > { %v2466_v24 = vmul.f32 %v2464_v15, %v2432_v42  ;;  %v6580_v42 = vpop.permute.xlu0 %5540  ;;  %v5537_v11 = vunpack.i.l.bf16 %v5536_v28  ;;  %v3107_v9 = vrot.slane %v3080_v59, 4  ;;  %v3051_v21 = vrot.slane %v3024_v27, 4 }
 0x5d8   : > { %v5543_v63 = vunpack.i.h.bf16 %v6580_v42  ;;  %v5542_v35 = vunpack.i.l.bf16 %v6580_v42  ;;  %v3081_v44 = vrot.slane %v5538_v48, 4  ;;  %v3084_v29 = vsel %vm1071_vm2, %v5538_v48, %v3083_v53  ;;  %v5546_v10 = vpop.permute.xlu1 %5545 }
 0x5d9   : > { %v2469_v2 = vmul.f32 %v2467_v62, %v2466_v24  ;;  %v3025_v26 = vrot.slane %v5537_v11, 4  ;;  %v3028_v50 = vsel %vm1071_vm2, %v5537_v11, %v3027_v54  ;;  %v3095_v25 = vrot.slane %v3076_v46, 4 }
 0x5da   : > { %v6590_v4 = vrot.slane %v5543_v63, 4  ;;  %v6594_v12 = vrot.slane %v5542_v35, 4  ;;  %v3039_v34 = vrot.slane %v3020_v47, 4  ;;  %v3092_v19 = vperm.slane %v3084_v29, %v5976_v32 }
 0x5db   : > { %v6567_v30 = vadd.f32 %v2470_v16, %v2469_v2  ;;  %v3036_v56 = vperm.slane %v3028_v50, %v5976_v32  ;;  %v3082_v39 = vsel %vm1071_vm2, %v3081_v44, %v5528_v51  ;;  %v3026_v55 = vsel %vm1071_vm2, %v3025_v26, %v5527_v45 }
 0x5dc   : > { %v3088_v61 = vperm.slane %v3082_v39, %v5976_v32  ;;  %v3105_v8 = vrot.slane %v3092_v19, 4  ;;  %v3108_v7 = vsel %vm1071_vm2, %v3092_v19, %v3107_v9  ;;  %v3032_v62 = vperm.slane %v3026_v55, %v5976_v32 }
 0x5dd   : > { %v2473_v5 = vpack.c.bf16 %v6567_v30, %v6565_v20  ;;  %v3116_v13 = vperm.slane %v3108_v7, %v6009_v3  ;;  %v3049_v14 = vrot.slane %v3036_v56, 4  ;;  %v3052_v15 = vsel %vm1071_vm2, %v3036_v56, %v3051_v21 }
 0x5de   : > { %v5548_v16 = vunpack.i.h.bf16 %v5546_v10  ;;  %v3093_v18 = vrot.slane %v3088_v61, 4  ;;  %v3096_v24 = vsel %vm1071_vm2, %v3088_v61, %v3095_v25  ;;  %v3106_v2 = vsel %vm1071_vm2, %v3105_v8, %v3080_v59 }
 0x5df   : > { %5308 = vmatmul.msk.bf16.vlgmr.msrb.gmra.mxu0 %vm956_vm1, %v2473_v5  ;;  %v3037_v5 = vrot.slane %v3032_v62, 4  ;;  %v3104_v31 = vperm.slane %v3096_v24, %v6009_v3  ;;  %v3112_v23 = vperm.slane %v3106_v2, %v6009_v3  ;;  %v3123_v33 = vrot.slane %v3116_v13, 4  ;;  %v5551_v8 = vpop.permute.xlu0 %5550 }
 0x5e0   : > { %v3040_v52 = vsel %vm1071_vm2, %v3032_v62, %v3039_v34  ;;  %v3094_v36 = vsel %vm1071_vm2, %v3093_v18, %v3076_v46  ;;  %v3050_v49 = vsel %vm1071_vm2, %v3049_v14, %v3024_v27  ;;  %v3060_v11 = vperm.slane %v3052_v15, %v6009_v3 }
 0x5e1   : > { %v3038_v22 = vsel %vm1071_vm2, %v3037_v5, %v3020_v47  ;;  %v3048_v37 = vperm.slane %v3040_v52, %v6009_v3  ;;  %v6619_v51 = vperm.slane %v3094_v36, %v6009_v3  ;;  %v6621_v45 = vrot.slane %v3104_v31, 4 }
 0x5e2   : > { %v3121_v60 = vrot.slane %v3112_v23, 4  ;;  %v3124_v40 = vsel %vm1071_vm2, 0.0, %v3123_v33  ;;  %v3298_v57 = vsel %vm1071_vm2, %v3123_v33, %v3112_v23  ;;  %v3044_v59 = vperm.slane %v3038_v22, %v6009_v3 }
 0x5e3   : > { %v3303_v38 = vrot.slane %v3124_v40, 4  ;;  %v3056_v53 = vperm.slane %v3050_v49, %v6009_v3  ;;  %v3117_v54 = vrot.slane %v6619_v51, 4  ;;  %v6630_v27 = vsel %vm1071_vm2, 0.0, %v6621_v45 }
 0x5e4   : > { %v3122_v46 = vsel %vm1071_vm2, 0.0, %v3121_v60  ;;  %v6634_v47 = vperm.slane %v3298_v57, %v5976_v32  ;;  %v3292_v28 = vrot.slane %v6630_v27, 4  ;;  %v3061_v9 = vrot.slane %v3044_v59, 4 }
 0x5e5   : > { %v3304_v48 = vsel %vm1071_vm2, %v3303_v38, %v3122_v46  ;;  %v6640_v21 = vsel %vm1071_vm2, 0.0, %v3117_v54  ;;  %v3063_v29 = vrot.slane %v3048_v37, 4  ;;  %v3065_v26 = vrot.slane %v3056_v53, 4 }
 0x5e6   : > { %v6643_v44 = vperm.slane %v3304_v48, %v5976_v32  ;;  %v6646_v50 = vsel %vm1071_vm2, 0.0, %v3061_v9  ;;  %v3067_v25 = vrot.slane %v3060_v11, 4  ;;  %v2957_v34 = vrot.slane %v5548_v16, 4 }
 0x5e7   : > { %v2960_v19 = vsel %vm1071_vm2, %v5548_v16, %v2959_v58  ;;  %v6650_v56 = vsel %vm1071_vm2, 0.0, %v3063_v29  ;;  %v3066_v39 = vsel %vm1071_vm2, 0.0, %v3065_v26  ;;  %v5547_v61 = vunpack.i.l.bf16 %v5546_v10 }
 0x5e8   : > { %v2968_v55 = vperm.slane %v2960_v19, %v5976_v32  ;;  %v3068_v7 = vsel %vm1071_vm2, 0.0, %v3067_v25  ;;  %v3238_v62 = vrot.slane %v6650_v56, 4  ;;  %v3244_v13 = vsel %vm1071_vm2, %v3067_v25, %v3056_v53 }
 0x5e9   : > { %v2958_v14 = vsel %vm1071_vm2, %v2957_v34, %v6549_v17  ;;  %v6660_v58 = vperm.slane %v3244_v13, %v5976_v32  ;;  %v3249_v15 = vrot.slane %v3068_v7, 4  ;;  %v2901_v24 = vrot.slane %v5547_v61, 4 }
 0x5ea   : > { %v2964_v16 = vperm.slane %v2958_v14, %v5976_v32  ;;  %v2995_v18 = vrot.slane %v2968_v55, 4  ;;  %v2904_v10 = vsel %vm1071_vm2, %v5547_v61, %v2903_v6  ;;  %v5553_v2 = vunpack.i.h.bf16 %v5551_v8 }
 0x5eb   : > { %v5552_v5 = vunpack.i.l.bf16 %v5551_v8  ;;  %v3250_v31 = vsel %vm1071_vm2, %v3249_v15, %v3066_v39  ;;  %v2912_v33 = vperm.slane %v2904_v10, %v5976_v32  ;;  %v3233_v52 = vsel %vm1071_vm2, %v3063_v29, %v3044_v59 }
 0x5ec   : > { %v2983_v23 = vrot.slane %v2964_v16, 4  ;;  %v6668_v17 = vperm.slane %v3250_v31, %v5976_v32  ;;  %v2902_v36 = vsel %vm1071_vm2, %v2901_v24, %v6547_v43  ;;  %v2969_v22 = vrot.slane %v5553_v2, 4 }
 0x5ed   : > { %v2913_v37 = vrot.slane %v5552_v5, 4  ;;  %v2908_v49 = vperm.slane %v2902_v36, %v5976_v32  ;;  %v2939_v6 = vrot.slane %v2912_v33, 4  ;;  %v2916_v60 = vsel %vm1071_vm2, %v5552_v5, %v6594_v12 }
 0x5ee   : > { %v2972_v40 = vsel %vm1071_vm2, %v5553_v2, %v6590_v4  ;;  %v2924_v38 = vperm.slane %v2916_v60, %v5976_v32  ;;  %v2970_v43 = vsel %vm1071_vm2, %v2969_v22, %v5543_v63  ;;  %v6688_v46 = vperm.slane %v3233_v52, %v5976_v32 }
 0x5ef   : > { %v2914_v57 = vsel %vm1071_vm2, %v2913_v37, %v5542_v35  ;;  %v2980_v59 = vperm.slane %v2972_v40, %v5976_v32  ;;  %v2927_v53 = vrot.slane %v2908_v49, 4  ;;  %v2976_v12 = vperm.slane %v2970_v43, %v5976_v32 }
 0x5f0   : > { %v2920_v54 = vperm.slane %v2914_v57, %v5976_v32  ;;  %v2937_v4 = vrot.slane %v2924_v38, 4  ;;  %v2940_v48 = vsel %vm1071_vm2, %v2924_v38, %v2939_v6 }
 0x5f1   : > { %v2993_v35 = vrot.slane %v2980_v59, 4  ;;  %v2996_v11 = vsel %vm1071_vm2, %v2980_v59, %v2995_v18  ;;  %v2948_v63 = vperm.slane %v2940_v48, %v6009_v3  ;;  %v2981_v29 = vrot.slane %v2976_v12, 4 }
 0x5f2   : > { %v2925_v9 = vrot.slane %v2920_v54, 4  ;;  %v2928_v42 = vsel %vm1071_vm2, %v2920_v54, %v2927_v53  ;;  %v2938_v25 = vsel %vm1071_vm2, %v2937_v4, %v2912_v33  ;;  %v2984_v34 = vsel %vm1071_vm2, %v2976_v12, %v2983_v23 }
 0x5f3   : > { %v2936_v26 = vperm.slane %v2928_v42, %v6009_v3  ;;  %v2994_v19 = vsel %vm1071_vm2, %v2993_v35, %v2968_v55  ;;  %v2944_v61 = vperm.slane %v2938_v25, %v6009_v3  ;;  %v2955_v8 = vrot.slane %v2948_v63, 4 }
 0x5f4   : > { %v2926_v39 = vsel %vm1071_vm2, %v2925_v9, %v2908_v49  ;;  %v2982_v7 = vsel %vm1071_vm2, %v2981_v29, %v2964_v16  ;;  %v2992_v18 = vperm.slane %v2984_v34, %v6009_v3  ;;  %v3000_v2 = vperm.slane %v2994_v19, %v6009_v3 }
 0x5f5   : > { %v2932_v13 = vperm.slane %v2926_v39, %v6009_v3  ;;  %v2951_v14 = vrot.slane %v2936_v26, 4  ;;  %v2988_v15 = vperm.slane %v2982_v7, %v6009_v3  ;;  %v2953_v24 = vrot.slane %v2944_v61, 4 }
 0x5f6   : > { %v2956_v10 = vsel %vm1071_vm2, 0.0, %v2955_v8  ;;  %v3004_v55 = vperm.slane %v2996_v11, %v6009_v3  ;;  %v3007_v33 = vrot.slane %v2992_v18, 4  ;;  %v3009_v52 = vrot.slane %v3000_v2, 4 }
 0x5f7   : > { %v2949_v5 = vrot.slane %v2932_v13, 4  ;;  %v2952_v31 = vsel %vm1071_vm2, 0.0, %v2951_v14  ;;  %v3005_v23 = vrot.slane %v2988_v15, 4  ;;  %v2954_v16 = vsel %vm1071_vm2, 0.0, %v2953_v24 }
 0x5f8   : > { %v3011_v36 = vrot.slane %v3004_v55, 4  ;;  %v3130_v22 = vrot.slane %v2952_v31, 4  ;;  %v3008_v6 = vsel %vm1071_vm2, 0.0, %v3007_v33  ;;  %v3136_v60 = vsel %vm1071_vm2, %v2955_v8, %v2944_v61 }
 0x5f9   : > { %v2950_v37 = vsel %vm1071_vm2, 0.0, %v2949_v5  ;;  %v3006_v49 = vsel %vm1071_vm2, 0.0, %v3005_v23  ;;  %v3010_v40 = vsel %vm1071_vm2, 0.0, %v3009_v52  ;;  %v3141_v38 = vrot.slane %v2956_v10, 4 }
 0x5fa   : > { %v3012_v57 = vsel %vm1071_vm2, 0.0, %v3011_v36  ;;  %v3184_v43 = vrot.slane %v3008_v6, 4  ;;  %v3190_v59 = vsel %vm1071_vm2, %v3011_v36, %v3000_v2  ;;  %v3239_v54 = vsel %vm1071_vm2, %v3238_v62, %v6646_v50 }
 0x5fb   : > { %v3195_v53 = vrot.slane %v3012_v57, 4  ;;  %v3267_v12 = vrot.slane %v6668_v17, 4  ;;  %v3142_v4 = vsel %vm1071_vm2, %v3141_v38, %v2954_v16  ;;  %v3243_v48 = vperm.slane %v3239_v54, %v5976_v32 }
 0x5fc   : > { %v3287_v35 = vsel %vm1071_vm2, %v6621_v45, %v6619_v51  ;;  %v3293_v11 = vsel %vm1071_vm2, %v3292_v28, %v6640_v21  ;;  %v3321_v51 = vrot.slane %v6643_v44, 4  ;;  %v3125_v45 = vsel %vm1071_vm2, %v2951_v14, %v2932_v13 }
 0x5fd   : > { %v3196_v9 = vsel %vm1071_vm2, %v3195_v53, %v3010_v40  ;;  %v3268_v50 = vsel %vm1071_vm2, %v3267_v12, %v6660_v58  ;;  %v6734_v56 = vperm.slane %v3287_v35, %v5976_v32  ;;  %v6737_v62 = vperm.slane %v3293_v11, %v5976_v32 }
 0x5fe   : > { %v3255_v42 = vrot.slane %v3243_v48, 4  ;;  %v3274_v63 = vperm.slane %v3268_v50, %v6009_v3  ;;  %v6744_v28 = vperm.slane %v3125_v45, %v5976_v32  ;;  %v3131_v21 = vsel %vm1071_vm2, %v3130_v22, %v2950_v37 }
 0x5ff   : > { %v3309_v27 = vrot.slane %v6737_v62, 4  ;;  %v6748_v29 = vperm.slane %v3136_v60, %v5976_v32  ;;  %v3322_v34 = vsel %vm1071_vm2, %v3321_v51, %v6634_v47  ;;  %v6755_v19 = vperm.slane %v3131_v21, %v5976_v32 }
 0x600   : > { %v3256_v26 = vsel %vm1071_vm2, %v3255_v42, %v6688_v46  ;;  %v3279_v25 = vrot.slane %v3274_v63, 4  ;;  %v3328_v8 = vperm.slane %v3322_v34, %v6009_v3  ;;  %v6762_v7 = vperm.slane %v3142_v4, %v5976_v32 }
 0x601   : > { %v3262_v39 = vperm.slane %v3256_v26, %v6009_v3  ;;  %v3310_v61 = vsel %vm1071_vm2, %v3309_v27, %v6734_v56  ;;  %v3147_v14 = vrot.slane %v6755_v19, 4  ;;  %v3179_v18 = vsel %vm1071_vm2, %v3007_v33, %v2988_v15 }
 0x602   : > { %v3316_v13 = vperm.slane %v3310_v61, %v6009_v3  ;;  %v3185_v24 = vsel %vm1071_vm2, %v3184_v43, %v3006_v49  ;;  %v3333_v2 = vrot.slane %v3328_v8, 4  ;;  %v3159_v5 = vrot.slane %v6762_v7, 4 }
 0x603   : > { %v3280_v10 = vsel %vm1071_vm2, %v3279_v25, %v3262_v39  ;;  %v3281_v55 = vrot.slane %v3262_v39, 4  ;;  %v3148_v16 = vsel %vm1071_vm2, %v3147_v14, %v6744_v28  ;;  %v6773_v52 = vperm.slane %v3179_v18, %v5976_v32  ;;  %v5415_v39 = vld [vmem:[%s5893_s24 + $0x28] sm:$0xff] }
 0x604   : > { %v3343_v31 = vpack.c.bf16 %v3280_v10, %v3280_v10  ;;  %v3335_v23 = vrot.slane %v3316_v13, 4  ;;  %v3334_v36 = vsel %vm1071_vm2, %v3333_v2, %v3316_v13  ;;  %v3154_v33 = vperm.slane %v3148_v16, %v6009_v3  ;;  %2598 = vmatpush.bf16.msrb.mxu2 %v5415_v39 }
 0x605   : > { %v3282_v15 = vsel %vm1071_vm2, %v3274_v63, %v3281_v55  ;;  %v3160_v22 = vsel %vm1071_vm2, %v3159_v5, %v6748_v29  ;;  %v3344_v37 = vpack.c.bf16 %v3334_v36, %v3334_v36  ;;  %v6783_v38 = vperm.slane %v3185_v24, %v5976_v32 }
 0x606   : > { %v3864_v49 = vunpack.c.l.b16 %v3343_v31  ;;  %v3336_v6 = vsel %vm1071_vm2, %v3328_v8, %v3335_v23  ;;  %v3347_v60 = vpack.c.bf16 %v3282_v15, %v3282_v15  ;;  %v3166_v57 = vperm.slane %v3160_v22, %v6009_v3  ;;  %v5414_v22 = vld [vmem:[%s5893_s24 + $0x20] sm:$0xff] }
 0x607   : > { %v3348_v40 = vpack.c.bf16 %v3336_v6, %v3336_v6  ;;  %v6786_v43 = vperm.slane %v3190_v59, %v5976_v32  ;;  %v3865_v53 = vunpack.c.l.b16 %v3344_v37  ;;  %v6789_v12 = vperm.slane %v3196_v9, %v5976_v32 }
 0x608   : > { %v3902_v54 = vunpack.c.l.b16 %v3347_v60  ;;  %v3257_v4 = vrot.slane %v6688_v46, 4  ;;  %v3171_v11 = vrot.slane %v3166_v57, 4  ;;  %v3201_v50 = vrot.slane %v6783_v38, 4  ;;  %2599 = vmatpush.bf16.msrb.mxu2 %v5414_v22 }
 0x609   : > { %v3903_v35 = vunpack.c.l.b16 %v3348_v40  ;;  %v3269_v42 = vrot.slane %v6660_v58, 4  ;;  %v3867_v63 = vpack.c.b16 %v3865_v53, %v3864_v49  ;;  %v3213_v51 = vrot.slane %v6789_v12, 4 }
 0x60a   : > { %v3258_v59 = vsel %vm1071_vm2, %v3243_v48, %v3257_v4  ;;  %v3311_v45 = vrot.slane %v6734_v56, 4  ;;  %v3172_v9 = vsel %vm1071_vm2, %v3171_v11, %v3154_v33  ;;  %v3202_v46 = vsel %vm1071_vm2, %v3201_v50, %v6773_v52 }
 0x60b   : > { %v3905_v27 = vpack.c.b16 %v3903_v35, %v3902_v54  ;;  %v3266_v21 = vperm.slane %v3258_v59, %v6009_v3  ;;  %v3875_v26 = vsel %vm1805_vm3, %v3867_v63, 0  ;;  %v3208_v25 = vperm.slane %v3202_v46, %v6009_v3  ;;  %5345 = vmatmul.msk.bf16.vlgmr.msrb.gmra.mxu2 %vm956_vm1, %v6516_v0 }
 0x60c   : > { %v3214_v58 = vsel %vm1071_vm2, %v3213_v51, %v6786_v43  ;;  %v3341_v34 = vpack.c.bf16 %v3172_v9, %v3172_v9  ;;  %3883 = vmatpush.bf16.xpose.msrb.mxu3 %v3875_v26  ;;  %v3270_v61 = vsel %vm1071_vm2, %v6668_v17, %v3269_v42  ;;  %v3312_v8 = vsel %vm1071_vm2, %v6737_v62, %v3311_v45 }
 0x60d   : > { %v3913_v48 = vsel %vm1805_vm3, %v3905_v27, 0  ;;  %v3220_v56 = vperm.slane %v3214_v58, %v6009_v3  ;;  %v3278_v14 = vperm.slane %v3270_v61, %v6009_v3  ;;  %v3320_v18 = vperm.slane %v3312_v8, %v6009_v3 }
 0x60e   : > { %3921 = vmatpush.bf16.xpose.msra.mxu0 %v3913_v48  ;;  %v3862_v13 = vunpack.c.l.b16 %v3341_v34  ;;  %v3323_v24 = vrot.slane %v6634_v47, 4  ;;  %v3173_v2 = vrot.slane %v3154_v33, 4  ;;  %v3227_v55 = vrot.slane %v3208_v25, 4 }
 0x60f   : > { %v3225_v10 = vrot.slane %v3220_v56, 4  ;;  %v3285_v5 = vrot.slane %v3266_v21, 4  ;;  %v3283_v31 = vrot.slane %v3278_v14, 4  ;;  %v3339_v23 = vrot.slane %v3320_v18, 4 }
 0x610   : > { %v3324_v17 = vsel %vm1071_vm2, %v6643_v44, %v3323_v24  ;;  %v3149_v62 = vrot.slane %v6744_v28, 4  ;;  %v3174_v15 = vsel %vm1071_vm2, %v3166_v57, %v3173_v2  ;;  %v3228_v47 = vsel %vm1071_vm2, %v3220_v56, %v3227_v55 }
 0x611   : > { %v3226_v16 = vsel %vm1071_vm2, %v3225_v10, %v3208_v25  ;;  %v3332_v36 = vperm.slane %v3324_v17, %v6009_v3  ;;  %v3284_v33 = vsel %vm1071_vm2, %v3283_v31, %v3266_v21  ;;  %v3345_v49 = vpack.c.bf16 %v3174_v15, %v3174_v15 }
 0x612   : > { %v3342_v37 = vpack.c.bf16 %v3226_v16, %v3226_v16  ;;  %v3346_v6 = vpack.c.bf16 %v3228_v47, %v3228_v47  ;;  %v3351_v40 = vpack.c.bf16 %v3284_v33, %v3284_v33  ;;  %v3286_v44 = vsel %vm1071_vm2, %v3278_v14, %v3285_v5  ;;  %v5619_v33 = vld [vmem:[%s5898_s26] ss:$0 sm:$0xff] }
 0x613   : > { %v3337_v60 = vrot.slane %v3332_v36, 4  ;;  %v3340_v28 = vsel %vm1071_vm2, %v3332_v36, %v3339_v23  ;;  %v3900_v54 = vunpack.c.l.b16 %v3345_v49  ;;  %v3355_v35 = vpack.c.bf16 %v3286_v44, %v3286_v44 }
 0x614   : > { %v3863_v53 = vunpack.c.l.b16 %v3342_v37  ;;  %v3901_v4 = vunpack.c.l.b16 %v3346_v6  ;;  %v3940_v11 = vunpack.c.l.b16 %v3351_v40  ;;  %v3356_v50 = vpack.c.bf16 %v3340_v28, %v3340_v28 }
 0x615   : > { %v3338_v57 = vsel %vm1071_vm2, %v3337_v60, %v3320_v18  ;;  %v3150_v42 = vsel %vm1071_vm2, %v6755_v19, %v3149_v62  ;;  %v3978_v45 = vunpack.c.l.b16 %v3355_v35  ;;  %v3161_v46 = vrot.slane %v6748_v29, 4 }
 0x616   : > { %v3866_v63 = vpack.c.b16 %v3863_v53, %v3862_v13  ;;  %v3352_v51 = vpack.c.bf16 %v3338_v57, %v3338_v57  ;;  %v3904_v59 = vpack.c.b16 %v3901_v4, %v3900_v54  ;;  %v3979_v27 = vunpack.c.l.b16 %v3356_v50  ;;  %v6861_v57 = vld [vmem:[%s5898_s26 + $0x2] ss:$0 sm:$0xff] }
 0x617   : > { %v3158_v9 = vperm.slane %v3150_v42, %v6009_v3  ;;  %v3203_v21 = vrot.slane %v6773_v52, 4  ;;  %v3215_v19 = vrot.slane %v6786_v43, 4  ;;  %v3162_v0 = vsel %vm1071_vm2, %v6762_v7, %v3161_v46 }
 0x618   : > { %v3872_v26 = vsel %vm1805_vm3, %v3866_v63, 0  ;;  %v3941_v25 = vunpack.c.l.b16 %v3352_v51  ;;  %v3910_v58 = vsel %vm1805_vm3, %v3904_v59, 0  ;;  %v3981_v34 = vpack.c.b16 %v3979_v27, %v3978_v45 }
 0x619   : > { %3884 = vmatpush.bf16.xpose.msrb.mxu3 %v3872_v26  ;;  %3922 = vmatpush.bf16.xpose.msra.mxu0 %v3910_v58  ;;  %v3204_v39 = vsel %vm1071_vm2, %v6783_v38, %v3203_v21  ;;  %v3177_v48 = vrot.slane %v3158_v9, 4  ;;  %v3170_v52 = vperm.slane %v3162_v0, %v6009_v3  ;;  %v3216_v61 = vsel %vm1071_vm2, %v6789_v12, %v3215_v19 }
 0x61a   : > { %v3943_v29 = vpack.c.b16 %v3941_v25, %v3940_v11  ;;  %v3212_v56 = vperm.slane %v3204_v39, %v6009_v3  ;;  %v3989_v43 = vsel %vm1805_vm3, %v3981_v34, 0  ;;  %v3224_v8 = vperm.slane %v3216_v61, %v6009_v3 }
 0x61b   : > { %v3175_v7 = vrot.slane %v3170_v52, 4  ;;  %v3178_v14 = vsel %vm1071_vm2, %v3170_v52, %v3177_v48  ;;  %5346 = vmatmul.msk.bf16.gmra.mxu2 %vm956_vm1, %v6528_v1 }
 0x61c   : > { %v3951_v13 = vsel %vm1805_vm3, %v3943_v29, 0  ;;  %v3231_v38 = vrot.slane %v3212_v56, 4  ;;  %v3229_v18 = vrot.slane %v3224_v8, 4  ;;  %v3353_v24 = vpack.c.bf16 %v3178_v14, %v3178_v14 }
 0x61d   : > { %v3176_v10 = vsel %vm1071_vm2, %v3175_v7, %v3158_v9 }
 0x61e   : > { %v3232_v2 = vsel %vm1071_vm2, %v3224_v8, %v3231_v38  ;;  %v3230_v12 = vsel %vm1071_vm2, %v3229_v18, %v3212_v56  ;;  %v3349_v55 = vpack.c.bf16 %v3176_v10, %v3176_v10  ;;  %v3976_v31 = vunpack.c.l.b16 %v3353_v24 }
 0x61f   : > { %v3354_v5 = vpack.c.bf16 %v3232_v2, %v3232_v2  ;;  %v3350_v17 = vpack.c.bf16 %v3230_v12, %v3230_v12 }
 0x620   : > { %v3938_v23 = vunpack.c.l.b16 %v3349_v55 }
 0x621   : > { %3997 = vmatpush.bf16.xpose.msrb.mxu0 %v3989_v43  ;;  %3959 = vmatpush.bf16.xpose.msra.mxu3 %v3951_v13  ;;  %v3977_v62 = vunpack.c.l.b16 %v3354_v5  ;;  %v3939_v16 = vunpack.c.l.b16 %v3350_v17 }
 0x623   : > { %v3980_v36 = vpack.c.b16 %v3977_v62, %v3976_v31  ;;  %v3942_v15 = vpack.c.b16 %v3939_v16, %v3938_v23 }
 0x625   : > { %v3986_v47 = vsel %vm1805_vm3, %v3980_v36, 0  ;;  %v3948_v22 = vsel %vm1805_vm3, %v3942_v15, 0 }
 0x629   : > { %3998 = vmatpush.bf16.xpose.msrb.mxu0 %v3986_v47  ;;  %3960 = vmatpush.bf16.xpose.msra.mxu3 %v3948_v22 }
 0x65c   : > { %v2506_v37 = vpop.f32.mrf.mxu0 }
 0x65d   : > { %v2507_v49 = vadd.f32 %v5619_v33, %v2506_v37 }
 0x65f   : > { %v2511_v40 = vmul.f32 0.35355338, %v2507_v49 }
 0x661   : > { %v2635_v26 = vrot.slane %v2511_v40, 4 }
 0x664   : > { %v2508_v6 = vpop.f32.mrf.mxu0 }
 0x665   : > { %v2509_v60 = vadd.f32 %v5619_v33, %v2508_v6 }
 0x667   : > { %v2512_v44 = vmul.f32 0.35355338, %v2509_v60 }
 0x669   : > { %v5564_v28 = vpack.i.bf16 %v2512_v44, %v2511_v40  ;;  %v2691_v21 = vrot.slane %v2512_v44, 4 }
 0x66b   : > { %5565 = vrot.lane.b32.xlu0 %v5564_v28, %s5730_s10  ;;  %5560 = vrot.lane.b32.xlu1 %v5564_v28, %s5732_s13 }
 0x66c   : > { %5555 = vrot.lane.b32.xlu2 %v5564_v28, %s5731_s12 }
 0x68e   : > { %v2601_v53 = vpop.f32.mrf.mxu2 }
 0x68f   : > { %v6864_v11 = vadd.f32 %v6861_v57, %v2601_v53 }
 0x696   : > { %v2603_v4 = vpop.f32.mrf.mxu2 }
 0x697   : > { %v6867_v50 = vadd.f32 %v6861_v57, %v2603_v4 }
 0x69e   : > { %v2606_v52 = vpop.f32.mrf.mxu2 }
 0x6c6   : > { %v5556_v54 = vpop.permute.xlu2 %5555 }
 0x6c7   : > { %v5558_v1 = vunpack.i.h.bf16 %v5556_v54  ;;  %v5557_v35 = vunpack.i.l.bf16 %v5556_v54 }
 0x6c9   : > { %v2703_v42 = vrot.slane %v5558_v1, 4  ;;  %v2647_v63 = vrot.slane %v5557_v35, 4 }
 0x6dd   : > { %v5566_v51 = vpop.permute.xlu0 %5565  ;;  %v5561_v59 = vpop.permute.xlu1 %5560 }
 0x6de   : > { %v5568_v45 = vunpack.i.h.bf16 %v5566_v51  ;;  %v5567_v27 = vunpack.i.l.bf16 %v5566_v51  ;;  %v5563_v9 = vunpack.i.h.bf16 %v5561_v59  ;;  %v5562_v46 = vunpack.i.l.bf16 %v5561_v59 }
 0x6e0   : > { %v2701_v25 = vrot.slane %v5568_v45, 4  ;;  %v2645_v58 = vrot.slane %v5567_v27, 4  ;;  %v2648_v19 = vsel %vm1071_vm2, %v5567_v27, %v2647_v63  ;;  %v2704_v34 = vsel %vm1071_vm2, %v5568_v45, %v2703_v42  ;;  %v2608_v42 = vpop.f32.mrf.mxu2 }
 0x6e1   : > { %v2656_v0 = vperm.slane %v2648_v19, %v5976_v32  ;;  %v2712_v39 = vperm.slane %v2704_v34, %v5976_v32  ;;  %v2689_v48 = vrot.slane %v5563_v9, 4  ;;  %v2692_v29 = vsel %vm1071_vm2, %v5563_v9, %v2691_v21 }
 0x6e2   : > { %v2646_v56 = vsel %vm1071_vm2, %v2645_v58, %v5557_v35  ;;  %v2702_v61 = vsel %vm1071_vm2, %v2701_v25, %v5558_v1  ;;  %v2700_v43 = vperm.slane %v2692_v29, %v5976_v32  ;;  %v2633_v8 = vrot.slane %v5562_v46, 4 }
 0x6e3   : > { %v2652_v13 = vperm.slane %v2646_v56, %v5976_v32  ;;  %v2669_v7 = vrot.slane %v2656_v0, 4  ;;  %v2708_v14 = vperm.slane %v2702_v61, %v5976_v32  ;;  %v2725_v38 = vrot.slane %v2712_v39, 4 }
 0x6e4   : > { %v2690_v18 = vsel %vm1071_vm2, %v2689_v48, %v2512_v44  ;;  %v2727_v24 = vrot.slane %v2700_v43, 4  ;;  %v2634_v10 = vsel %vm1071_vm2, %v2633_v8, %v2511_v40  ;;  %v2636_v2 = vsel %vm1071_vm2, %v5562_v46, %v2635_v26 }
 0x6e5   : > { %v2657_v12 = vrot.slane %v2652_v13, 4  ;;  %v2713_v55 = vrot.slane %v2708_v14, 4  ;;  %v2696_v5 = vperm.slane %v2690_v18, %v5976_v32  ;;  %v2640_v31 = vperm.slane %v2634_v10, %v5976_v32 }
 0x6e6   : > { %v2644_v17 = vperm.slane %v2636_v2, %v5976_v32  ;;  %v2726_v23 = vsel %vm1071_vm2, %v2725_v38, %v2700_v43  ;;  %v2728_v62 = vsel %vm1071_vm2, %v2712_v39, %v2727_v24  ;;  %v6904_v26 = vadd.f32 %v6861_v57, %v2606_v52 }
 0x6e7   : > { %v2715_v16 = vrot.slane %v2696_v5, 4  ;;  %v2658_v36 = vsel %vm1071_vm2, %v2657_v12, %v2640_v31  ;;  %v2659_v15 = vrot.slane %v2640_v31, 4  ;;  %v2714_v47 = vsel %vm1071_vm2, %v2713_v55, %v2696_v5 }
 0x6e8   : > { %v2664_v22 = vperm.slane %v2658_v36, %v6009_v3  ;;  %v2670_v37 = vsel %vm1071_vm2, %v2669_v7, %v2644_v17  ;;  %v2671_v33 = vrot.slane %v2644_v17, 4  ;;  %v2720_v49 = vperm.slane %v2714_v47, %v6009_v3 }
 0x6e9   : > { %v2660_v6 = vsel %vm1071_vm2, %v2652_v13, %v2659_v15  ;;  %v2676_v60 = vperm.slane %v2670_v37, %v6009_v3  ;;  %v2716_v40 = vsel %vm1071_vm2, %v2708_v14, %v2715_v16  ;;  %v2732_v1 = vperm.slane %v2726_v23, %v6009_v3 }
 0x6ea   : > { %v2668_v44 = vperm.slane %v2660_v6, %v6009_v3  ;;  %v2672_v28 = vsel %vm1071_vm2, %v2656_v0, %v2671_v33  ;;  %v2724_v53 = vperm.slane %v2716_v40, %v6009_v3  ;;  %v2681_v4 = vrot.slane %v2664_v22, 4 }
 0x6eb   : > { %v2680_v54 = vperm.slane %v2672_v28, %v6009_v3  ;;  %v2736_v35 = vperm.slane %v2728_v62, %v6009_v3  ;;  %v2685_v51 = vrot.slane %v2676_v60, 4  ;;  %v2737_v59 = vrot.slane %v2720_v49, 4 }
 0x6ec   : > { %v2683_v63 = vrot.slane %v2668_v44, 4  ;;  %v2739_v45 = vrot.slane %v2724_v53, 4  ;;  %v6907_v25 = vadd.f32 %v6861_v57, %v2608_v42  ;;  %v2682_v58 = vsel %vm1071_vm2, 0.0, %v2681_v4 }
 0x6ed   : > { %v2687_v27 = vrot.slane %v2680_v54, 4  ;;  %v2743_v9 = vrot.slane %v2736_v35, 4  ;;  %v2741_v34 = vrot.slane %v2732_v1, 4  ;;  %v2686_v39 = vsel %vm1071_vm2, 0.0, %v2685_v51 }
 0x6ee   : > { %v2684_v46 = vsel %vm1071_vm2, 0.0, %v2683_v63  ;;  %v2740_v21 = vsel %vm1071_vm2, 0.0, %v2739_v45  ;;  %v2738_v48 = vsel %vm1071_vm2, 0.0, %v2737_v59  ;;  %v2745_v52 = vsel %vm1071_vm2, %v2683_v63, %v2664_v22 }
 0x6ef   : > { %v2688_v19 = vsel %vm1071_vm2, 0.0, %v2687_v27  ;;  %v2750_v0 = vrot.slane %v2684_v46, 4  ;;  %v2804_v56 = vrot.slane %v2740_v21, 4  ;;  %v2744_v61 = vsel %vm1071_vm2, 0.0, %v2743_v9 }
 0x6f0   : > { %v2761_v29 = vrot.slane %v2688_v19, 4  ;;  %v2756_v57 = vsel %vm1071_vm2, %v2687_v27, %v2676_v60  ;;  %v2799_v7 = vsel %vm1071_vm2, %v2739_v45, %v2720_v49  ;;  %v2742_v38 = vsel %vm1071_vm2, 0.0, %v2741_v34 }
 0x6f1   : > { %v2751_v43 = vsel %vm1071_vm2, %v2750_v0, %v2682_v58  ;;  %v2805_v14 = vsel %vm1071_vm2, %v2804_v56, %v2738_v48  ;;  %v2810_v10 = vsel %vm1071_vm2, %v2743_v9, %v2732_v1  ;;  %v2749_v2 = vperm.slane %v2745_v52, %v5976_v32 }
 0x6f2   : > { %v2755_v8 = vperm.slane %v2751_v43, %v5976_v32  ;;  %v2762_v13 = vsel %vm1071_vm2, %v2761_v29, %v2686_v39  ;;  %v2809_v24 = vperm.slane %v2805_v14, %v5976_v32  ;;  %v2815_v55 = vrot.slane %v2744_v61, 4 }
 0x6f3   : > { %v2766_v18 = vperm.slane %v2762_v13, %v5976_v32  ;;  %v6928_v5 = vpack.i.bf16 %v6907_v25, %v6904_v26  ;;  %v2760_v31 = vperm.slane %v2756_v57, %v5976_v32  ;;  %v2803_v23 = vperm.slane %v2799_v7, %v5976_v32 }
 0x6f4   : > { %v2767_v12 = vrot.slane %v2755_v8, 4  ;;  %v2821_v62 = vrot.slane %v2809_v24, 4  ;;  %v2814_v16 = vperm.slane %v2810_v10, %v5976_v32  ;;  %v2816_v36 = vsel %vm1071_vm2, %v2815_v55, %v2742_v38 }
 0x6f5   : > { %v2779_v17 = vrot.slane %v2766_v18, 4  ;;  %5575 = vrot.lane.b32.xlu2 %v6928_v5, %s5732_s13  ;;  %v2820_v47 = vperm.slane %v2816_v36, %v5976_v32  ;;  %v2769_v60 = vrot.slane %v2749_v2, 4  ;;  %v2823_v40 = vrot.slane %v2803_v23, 4  ;;  %5570 = vrot.lane.b32.xlu0 %v6928_v5, %s5731_s12 }
 0x6f6   : > { %v2768_v15 = vsel %vm1071_vm2, %v2767_v12, %v2749_v2  ;;  %v2822_v33 = vsel %vm1071_vm2, %v2821_v62, %v2803_v23  ;;  %v2781_v4 = vrot.slane %v2760_v31, 4  ;;  %v2835_v1 = vrot.slane %v2814_v16, 4 }
 0x6f7   : > { %v2774_v22 = vperm.slane %v2768_v15, %v6009_v3  ;;  %v2780_v37 = vsel %vm1071_vm2, %v2779_v17, %v2760_v31  ;;  %v2828_v6 = vperm.slane %v2822_v33, %v6009_v3  ;;  %v2833_v44 = vrot.slane %v2820_v47, 4  ;;  %v2611_v33 = vld [vmem:[%s7645_s20] sm:$0xff] }
 0x6f8   : > { %v2786_v49 = vperm.slane %v2780_v37, %v6009_v3  ;;  %v2770_v27 = vsel %vm1071_vm2, %v2755_v8, %v2769_v60  ;;  %v2824_v9 = vsel %vm1071_vm2, %v2809_v24, %v2823_v40  ;;  %v2782_v34 = vsel %vm1071_vm2, %v2766_v18, %v2781_v4  ;;  %v2612_v40 = vld [vmem:[%s7646_s3 + $0x8] sm:$0xff] }
 0x6f9   : > { %v2793_v28 = vrot.slane %v2774_v22, 4  ;;  %v2847_v54 = vrot.slane %v2828_v6, 4  ;;  %v2834_v35 = vsel %vm1071_vm2, %v2833_v44, %v2814_v16  ;;  %v2836_v0 = vsel %vm1071_vm2, %v2820_v47, %v2835_v1 }
 0x6fa   : > { %v2791_v53 = vrot.slane %v2786_v49, 4  ;;  %v2840_v51 = vperm.slane %v2834_v35, %v6009_v3  ;;  %v2778_v48 = vperm.slane %v2770_v27, %v6009_v3  ;;  %v2832_v29 = vperm.slane %v2824_v9, %v6009_v3 }
 0x6fb   : > { %v2794_v42 = vsel %vm1071_vm2, %v2786_v49, %v2793_v28  ;;  %v2790_v43 = vperm.slane %v2782_v34, %v6009_v3  ;;  %v2844_v57 = vperm.slane %v2836_v0, %v6009_v3 }
 0x6fc   : > { %v2792_v63 = vsel %vm1071_vm2, %v2791_v53, %v2774_v22  ;;  %v2855_v59 = vpack.c.bf16 %v2794_v42, %v2794_v42  ;;  %v2845_v46 = vrot.slane %v2840_v51, 4  ;;  %v2848_v21 = vsel %vm1071_vm2, %v2840_v51, %v2847_v54 }
 0x6fd   : > { %v2853_v45 = vpack.c.bf16 %v2792_v63, %v2792_v63  ;;  %v2856_v58 = vpack.c.bf16 %v2848_v21, %v2848_v21  ;;  %v2797_v7 = vrot.slane %v2778_v48, 4  ;;  %v2851_v14 = vrot.slane %v2832_v29, 4 }
 0x6fe   : > { %v3893_v19 = vunpack.c.l.b16 %v2855_v59  ;;  %v2846_v39 = vsel %vm1071_vm2, %v2845_v46, %v2828_v6  ;;  %v2795_v18 = vrot.slane %v2790_v43, 4  ;;  %v2849_v24 = vrot.slane %v2844_v57, 4 }
 0x6ff   : > { %v2854_v56 = vpack.c.bf16 %v2846_v39, %v2846_v39  ;;  %v3855_v61 = vunpack.c.l.b16 %v2853_v45  ;;  %v3894_v52 = vunpack.c.l.b16 %v2856_v58  ;;  %v2798_v10 = vsel %vm1071_vm2, %v2790_v43, %v2797_v7 }
 0x700   : > { %v2852_v2 = vsel %vm1071_vm2, %v2844_v57, %v2851_v14  ;;  %v2796_v12 = vsel %vm1071_vm2, %v2795_v18, %v2778_v48  ;;  %v2850_v55 = vsel %vm1071_vm2, %v2849_v24, %v2832_v29  ;;  %v2859_v31 = vpack.c.bf16 %v2798_v10, %v2798_v10 }
 0x701   : > { %v3856_v8 = vunpack.c.l.b16 %v2854_v56  ;;  %v3895_v13 = vpack.c.b16 %v3894_v52, %v3893_v19  ;;  %v2860_v17 = vpack.c.bf16 %v2852_v2, %v2852_v2  ;;  %v2857_v23 = vpack.c.bf16 %v2796_v12, %v2796_v12 }
 0x702   : > { %v2858_v62 = vpack.c.bf16 %v2850_v55, %v2850_v55  ;;  %v3969_v16 = vunpack.c.l.b16 %v2859_v31  ;;  %v5584_v48 = vpack.i.bf16 %v6867_v50, %v6864_v11 }
 0x703   : > { %v3857_v38 = vpack.c.b16 %v3856_v8, %v3855_v61  ;;  %5348 = vmatmul.msk.bf16.vlgmr.msra.gmra.mxu0 %vm1805_vm3, %v3895_v13  ;;  %v3970_v36 = vunpack.c.l.b16 %v2860_v17  ;;  %v3931_v15 = vunpack.c.l.b16 %v2857_v23 }
 0x704   : > { %v3932_v47 = vunpack.c.l.b16 %v2858_v62 }
 0x705   : > { %5347 = vmatmul.msk.bf16.vlgmr.msrb.gmra.mxu3 %vm1805_vm3, %v3857_v38  ;;  %v3971_v22 = vpack.c.b16 %v3970_v36, %v3969_v16 }
 0x706   : > { %v3933_v37 = vpack.c.b16 %v3932_v47, %v3931_v15 }
 0x713   : > { %5350 = vmatmul.msk.bf16.vlgmr.msrb.gmra.mxu0 %vm1805_vm3, %v3971_v22 }
 0x715   : > { %5349 = vmatmul.msk.bf16.vlgmr.msra.gmra.mxu3 %vm1805_vm3, %v3933_v37 }
 0x74f   : > { %v5576_v56 = vpop.permute.xlu2 %5575 }
 0x750   : > { %v5578_v47 = vunpack.i.h.bf16 %v5576_v56  ;;  %v5577_v22 = vunpack.i.l.bf16 %v5576_v56 }
 0x767   : > { %v6994_v29 = vpop.permute.xlu0 %5570 }
 0x780   : > { %v3924_v49 = vpop.f32.mrf.mxu0 }
 0x781   : > { %v3925_v6 = vadd.f32 %v3924_v49, %v2611_v33 }
 0x783   : > { %v4011_v60 = vsel %vm956_vm1, %v3925_v6, -inf }
 0x784   : > { %4012 = vmax.xlane.f32.xlu0 %v4011_v60  ;;  %v3567_v60 = vrot.slane %v6907_v25, 4 }
 0x788   : > { %v3886_v44 = vpop.f32.mrf.mxu3  ;;  %v3926_v28 = vpop.f32.mrf.mxu0 }
 0x789   : > { %v3887_v53 = vadd.f32 %v3886_v44, %v2611_v33  ;;  %v3927_v54 = vadd.f32 %v3926_v28, %v2612_v40  ;;  %v3565_v44 = vrot.slane %v5578_v47, 4  ;;  %v3509_v28 = vrot.slane %v5577_v22, 4 }
 0x78b   : > { %v4005_v4 = vsel %vm956_vm1, %v3887_v53, -inf  ;;  %v4014_v1 = vsel %vm956_vm1, %v3927_v54, -inf }
 0x78c   : > { %4006 = vmax.xlane.f32.xlu1 %v4005_v4  ;;  %4015 = vmax.xlane.f32.xlu2 %v4014_v1 }
 0x790   : > { %v3888_v35 = vpop.f32.mrf.mxu3  ;;  %v4000_v42 = vpop.f32.mrf.mxu0 }
 0x791   : > { %v3889_v63 = vadd.f32 %v3888_v35, %v2612_v40  ;;  %v6976_v51 = vadd.f32 %v4000_v42, %v2611_v33 }
 0x793   : > { %v4008_v59 = vsel %vm956_vm1, %v3889_v63, -inf  ;;  %v4023_v45 = vsel %vm956_vm1, %v6976_v51, -inf }
 0x794   : > { %4009 = vmax.xlane.f32.xlu0 %v4008_v59  ;;  %4024 = vmax.xlane.f32.xlu2 %v4023_v45  ;;  %v3566_v45 = vsel %vm1071_vm2, %v3565_v44, %v6907_v25 }
 0x798   : > { %v3962_v27 = vpop.f32.mrf.mxu3  ;;  %v4002_v9 = vpop.f32.mrf.mxu0 }
 0x799   : > { %v3963_v46 = vadd.f32 %v3962_v27, %v2611_v33  ;;  %v4003_v21 = vadd.f32 %v4002_v9, %v2612_v40  ;;  %v3510_v27 = vsel %vm1071_vm2, %v3509_v28, %v6904_v26 }
 0x79b   : > { %v4017_v58 = vsel %vm956_vm1, %v3963_v46, -inf  ;;  %v4026_v19 = vsel %vm956_vm1, %v4003_v21, -inf }
 0x79c   : > { %4018 = vmax.xlane.f32.xlu2 %v4017_v58  ;;  %4027 = vmax.xlane.f32.xlu1 %v4026_v19  ;;  %v3455_v58 = vrot.slane %v6867_v50, 4 }
 0x7a0   : > { %v3964_v34 = vpop.f32.mrf.mxu3 }
 0x7a1   : > { %v6983_v0 = vadd.f32 %v3964_v34, %v2612_v40  ;;  %v3511_v40 = vrot.slane %v6904_v26, 4  ;;  %v7035_v26 = vperm.slane %v3510_v27, %v5976_v32 }
 0x7a3   : > { %v4020_v39 = vsel %vm956_vm1, %v6983_v0, -inf  ;;  %v3512_v9 = vsel %vm1071_vm2, %v5577_v22, %v3511_v40 }
 0x7a4   : > { %4021 = vmax.xlane.f32.xlu1 %v4020_v39  ;;  %v7032_v39 = vperm.slane %v3566_v45, %v5976_v32 }
 0x7a8   : > { %5585 = vrot.lane.b32.xlu0 %v5584_v48, %s5731_s12  ;;  %s7647_s12 = scalar_lea.vmem %s7588_s11, %s5866_s1  ;;  %s7649_s1 = sld [smem:[#allocation3_spill]] }
 0x7ae   : > { %p5391_p6 = scmp.ne.s32.totalorder %s7649_s1, 1 }
 0x7b0   : > { %5595 = vrot.lane.b32.xlu0 %v5584_v48, %s5730_s10 }
 0x7b4   : > { %5590 = vrot.lane.b32.xlu2 %v5584_v48, %s5732_s13  ;;  %v7038_v48 = vperm.slane %v3512_v9, %v5976_v32 }
 0x7bd   : > { %5580 = vrot.lane.b32.xlu1 %v6928_v5, %s5730_s10 }
 0x7f7   : > { %v4013_v61 = vpop.xlane.xlu0 %4012 }
 0x7f8   : > { %v4031_v52 = vsub.f32 %v3925_v6, %v4013_v61  ;;  %v5573_v61 = vunpack.i.h.bf16 %v6994_v29 }
 0x7fa   : > { %v4041_v43 = vmul.f32 1.442695, %v4031_v52 }
 0x7fc   : > { %5662 = vpow2.f32 %v4041_v43 }
 0x7ff   : > { %v4007_v57 = vpop.xlane.xlu1 %4006  ;;  %v4016_v8 = vpop.xlane.xlu2 %4015 }
 0x800   : > { %v4029_v13 = vsub.f32 %v3887_v53, %v4007_v57  ;;  %v4032_v7 = vsub.f32 %v3927_v54, %v4016_v8 }
 0x802   : > { %v6996_v14 = vpop.eup %5662  ;;  %v4037_v38 = vmul.f32 1.442695, %v4029_v13  ;;  %v4043_v18 = vmul.f32 1.442695, %v4032_v7 }
 0x803   : > { %v4059_v24 = vsel %vm956_vm1, %v6996_v14, 0.0 }
 0x804   : > { %5664 = vpow2.f32 %v4037_v38  ;;  %4060 = vadd.xlane.f32.xlu0 %v4059_v24  ;;  %v5572_v38 = vunpack.i.l.bf16 %v6994_v29 }
 0x805   : > { %5666 = vpow2.f32 %v4043_v18 }
 0x807   : > { %v4010_v5 = vpop.xlane.xlu0 %4009  ;;  %v4025_v10 = vpop.xlane.xlu2 %4024 }
 0x808   : > { %v4030_v2 = vsub.f32 %v3889_v63, %v4010_v5  ;;  %v4035_v37 = vsub.f32 %v6976_v51, %v4025_v10  ;;  %v3568_v63 = vsel %vm1071_vm2, %v5578_v47, %v3567_v60  ;;  %v3591_v5 = vrot.slane %v7032_v39, 4 }
 0x809   : > { %v7027_v19 = vperm.slane %v3568_v63, %v5976_v32  ;;  %v3535_v10 = vrot.slane %v7035_v26, 4 }
 0x80a   : > { %v7000_v12 = vpop.eup %5664  ;;  %v4039_v55 = vmul.f32 1.442695, %v4030_v2  ;;  %v4049_v53 = vmul.f32 1.442695, %v4035_v37  ;;  %v3547_v2 = vrot.slane %v7038_v48, 4 }
 0x80b   : > { %v7002_v31 = vpop.eup %5666  ;;  %v4053_v17 = vsel %vm956_vm1, %v7000_v12, 0.0  ;;  %v3603_v7 = vrot.slane %v7027_v19, 4 }
 0x80c   : > { %5668 = vpow2.f32 %v4039_v55  ;;  %4054 = vadd.xlane.f32.xlu1 %v4053_v17  ;;  %v4062_v23 = vsel %vm956_vm1, %v7002_v31, 0.0  ;;  %v7058_v17 = vrot.slane %v5573_v61, 4 }
 0x80d   : > { %4063 = vadd.xlane.f32.xlu2 %v4062_v23 }
 0x80f   : > { %v4019_v62 = vpop.xlane.xlu2 %4018  ;;  %v4028_v16 = vpop.xlane.xlu1 %4027 }
 0x810   : > { %v4033_v36 = vsub.f32 %v3963_v46, %v4019_v62  ;;  %v4036_v49 = vsub.f32 %v4003_v21, %v4028_v16  ;;  %v3399_v21 = vrot.slane %v6864_v11, 4 }
 0x812   : > { %v7008_v15 = vpop.eup %5668  ;;  %v4045_v33 = vmul.f32 1.442695, %v4033_v36  ;;  %v4051_v54 = vmul.f32 1.442695, %v4036_v49 }
 0x813   : > { %v4056_v6 = vsel %vm956_vm1, %v7008_v15, 0.0 }
 0x814   : > { %5670 = vpow2.f32 %v4045_v33  ;;  %4057 = vadd.xlane.f32.xlu0 %v4056_v6 }
 0x815   : > { %5672 = vpow2.f32 %v4049_v53 }
 0x816   : > { %5674 = vpow2.f32 %v4051_v54 }
 0x817   : > { %v5591_v4 = vpop.permute.xlu2 %5590  ;;  %v4022_v1 = vpop.xlane.xlu1 %4021 }
 0x818   : > { %v5592_v35 = vunpack.i.l.bf16 %v5591_v4  ;;  %v4034_v42 = vsub.f32 %v6983_v0, %v4022_v1  ;;  %v5593_v51 = vunpack.i.h.bf16 %v5591_v4 }
 0x81a   : > { %v7017_v59 = vpop.eup %5670  ;;  %v5586_v46 = vpop.permute.xlu0 %5585  ;;  %v3397_v34 = vrot.slane %v5592_v35, 4  ;;  %v4047_v0 = vmul.f32 1.442695, %v4034_v42  ;;  %v3453_v56 = vrot.slane %v5593_v51, 4  ;;  %v3456_v57 = vsel %vm1071_vm2, %v5593_v51, %v3455_v58 }
 0x81b   : > { %v4065_v25 = vsel %vm956_vm1, %v7017_v59, 0.0  ;;  %v5588_v52 = vunpack.i.h.bf16 %v5586_v46  ;;  %v5587_v43 = vunpack.i.l.bf16 %v5586_v46  ;;  %v3400_v8 = vsel %vm1071_vm2, %v5592_v35, %v3399_v21  ;;  %v7043_v13 = vpop.eup %5672 }
 0x81c   : > { %4066 = vadd.xlane.f32.xlu1 %v4065_v25  ;;  %5676 = vpow2.f32 %v4047_v0  ;;  %v3398_v18 = vsel %vm1071_vm2, %v3397_v34, %v6864_v11  ;;  %v7049_v24 = vpop.eup %5674  ;;  %v3454_v55 = vsel %vm1071_vm2, %v3453_v56, %v6867_v50  ;;  %v3464_v62 = vperm.slane %v3456_v57, %v5976_v32 }
 0x81d   : > { %v3467_v23 = vrot.slane %v5588_v52, 4  ;;  %v3408_v11 = vperm.slane %v3400_v8, %v5976_v32  ;;  %v3411_v36 = vrot.slane %v5587_v43, 4  ;;  %v3404_v47 = vperm.slane %v3398_v18, %v5976_v32 }
 0x81e   : > { %v7067_v50 = vrot.slane %v5572_v38, 4  ;;  %v3460_v49 = vperm.slane %v3454_v55, %v5976_v32  ;;  %v4074_v6 = vsel %vm956_vm1, %v7049_v24, 0.0  ;;  %v4071_v60 = vsel %vm956_vm1, %v7043_v13, 0.0 }
 0x81f   : > { %v3435_v54 = vrot.slane %v3408_v11, 4  ;;  %v3491_v42 = vrot.slane %v3464_v62, 4  ;;  %v3423_v63 = vrot.slane %v3404_v47, 4 }
 0x820   : > { %v3479_v58 = vrot.slane %v3460_v49, 4 }
 0x822   : > { %v5596_v16 = vpop.permute.xlu0 %5595  ;;  %v7063_v33 = vpop.eup %5676 }
 0x823   : > { %v5598_v22 = vunpack.i.h.bf16 %v5596_v16  ;;  %v5597_v37 = vunpack.i.l.bf16 %v5596_v16  ;;  %v4068_v35 = vsel %vm956_vm1, %v7063_v33, 0.0 }
 0x824   : > { %4075 = vadd.xlane.f32.xlu1 %v4074_v6  ;;  %4069 = vadd.xlane.f32.xlu2 %v4068_v35 }
 0x825   : > { %v3465_v40 = vrot.slane %v5598_v22, 4  ;;  %v3409_v44 = vrot.slane %v5597_v37, 4  ;;  %v3412_v28 = vsel %vm1071_vm2, %v5597_v37, %v3411_v36  ;;  %v3468_v53 = vsel %vm1071_vm2, %v5598_v22, %v3467_v23 }
 0x826   : > { %v3420_v4 = vperm.slane %v3412_v28, %v5976_v32  ;;  %v3476_v1 = vperm.slane %v3468_v53, %v5976_v32 }
 0x827   : > { %v3410_v51 = vsel %vm1071_vm2, %v3409_v44, %v5587_v43  ;;  %v3466_v45 = vsel %vm1071_vm2, %v3465_v40, %v5588_v52 }
 0x828   : > { %v3416_v27 = vperm.slane %v3410_v51, %v5976_v32  ;;  %v3433_v9 = vrot.slane %v3420_v4, 4  ;;  %v3436_v46 = vsel %vm1071_vm2, %v3420_v4, %v3435_v54  ;;  %v3472_v21 = vperm.slane %v3466_v45, %v5976_v32 }
 0x829   : > { %v3444_v34 = vperm.slane %v3436_v46, %v6009_v3  ;;  %v3489_v0 = vrot.slane %v3476_v1, 4  ;;  %v3492_v25 = vsel %vm1071_vm2, %v3476_v1, %v3491_v42 }
 0x82a   : > { %v3421_v56 = vrot.slane %v3416_v27, 4  ;;  %v3424_v57 = vsel %vm1071_vm2, %v3416_v27, %v3423_v63  ;;  %v3434_v43 = vsel %vm1071_vm2, %v3433_v9, %v3408_v11  ;;  %v3477_v52 = vrot.slane %v3472_v21, 4 }
 0x82b   : > { %v3432_v8 = vperm.slane %v3424_v57, %v6009_v3  ;;  %v3440_v18 = vperm.slane %v3434_v43, %v6009_v3  ;;  %v3451_v55 = vrot.slane %v3444_v34, 4  ;;  %v3480_v23 = vsel %vm1071_vm2, %v3472_v21, %v3479_v58 }
 0x82c   : > { %v3422_v16 = vsel %vm1071_vm2, %v3421_v56, %v3404_v47  ;;  %v3478_v36 = vsel %vm1071_vm2, %v3477_v52, %v3460_v49  ;;  %v3488_v22 = vperm.slane %v3480_v23, %v6009_v3  ;;  %v3490_v37 = vsel %vm1071_vm2, %v3489_v0, %v3464_v62  ;;  %4072 = vadd.xlane.f32.xlu2 %v4071_v60 }
 0x82d   : > { %v3428_v6 = vperm.slane %v3422_v16, %v6009_v3  ;;  %v3447_v40 = vrot.slane %v3432_v8, 4  ;;  %v3449_v11 = vrot.slane %v3440_v18, 4  ;;  %v3452_v44 = vsel %vm1071_vm2, 0.0, %v3451_v55 }
 0x82e   : > { %v7099_v28 = vperm.slane %v3478_v36, %v6009_v3  ;;  %v3496_v53 = vperm.slane %v3490_v37, %v6009_v3  ;;  %v3500_v54 = vperm.slane %v3492_v25, %v6009_v3  ;;  %v7103_v47 = vrot.slane %v3488_v22, 4 }
 0x82f   : > { %v3445_v49 = vrot.slane %v3428_v6, 4  ;;  %v3448_v4 = vsel %vm1071_vm2, 0.0, %v3447_v40  ;;  %v3450_v62 = vsel %vm1071_vm2, 0.0, %v3449_v11  ;;  %v3632_v1 = vsel %vm1071_vm2, %v3451_v55, %v3440_v18  ;;  %v5581_v35 = vpop.permute.xlu1 %5580 }
 0x830   : > { %v3501_v42 = vrot.slane %v7099_v28, 4  ;;  %v7111_v63 = vsel %vm1071_vm2, 0.0, %v7103_v47  ;;  %v3505_v51 = vrot.slane %v3496_v53, 4  ;;  %v3507_v45 = vrot.slane %v3500_v54, 4 }
 0x831   : > { %v3626_v27 = vrot.slane %v3448_v4, 4  ;;  %v7114_v9 = vperm.slane %v3632_v1, %v5976_v32  ;;  %v3637_v46 = vrot.slane %v3452_v44, 4  ;;  %v3680_v21 = vrot.slane %v7111_v63, 4 }
 0x832   : > { %v7118_v58 = vsel %vm1071_vm2, 0.0, %v3505_v51  ;;  %v7121_v60 = vsel %vm1071_vm2, 0.0, %v3507_v45  ;;  %v3686_v34 = vsel %vm1071_vm2, %v3507_v45, %v3496_v53  ;;  %v5583_v0 = vunpack.i.h.bf16 %v5581_v35 }
 0x833   : > { %v7125_v25 = vperm.slane %v3686_v34, %v5976_v32  ;;  %v3691_v56 = vrot.slane %v7121_v60, 4  ;;  %v5582_v57 = vunpack.i.l.bf16 %v5581_v35  ;;  %v3446_v43 = vsel %vm1071_vm2, 0.0, %v3445_v49 }
 0x834   : > { %v3577_v52 = vrot.slane %v5583_v0, 4  ;;  %v3580_v8 = vsel %vm1071_vm2, %v5583_v0, %v7058_v17  ;;  %v7132_v18 = vsel %vm1071_vm2, 0.0, %v3501_v42  ;;  %v3621_v55 = vsel %vm1071_vm2, %v3447_v40, %v3428_v6 }
 0x835   : > { %v3588_v23 = vperm.slane %v3580_v8, %v5976_v32  ;;  %v3521_v16 = vrot.slane %v5582_v57, 4  ;;  %v3524_v36 = vsel %vm1071_vm2, %v5582_v57, %v7067_v50  ;;  %v7139_v22 = vperm.slane %v3621_v55, %v5976_v32 }
 0x836   : > { %v3578_v37 = vsel %vm1071_vm2, %v3577_v52, %v5573_v61  ;;  %v3532_v17 = vperm.slane %v3524_v36, %v5976_v32  ;;  %v7146_v11 = vsel %vm1071_vm2, %v3626_v27, %v3446_v43  ;;  %v7149_v6 = vsel %vm1071_vm2, %v3637_v46, %v3450_v62 }
 0x837   : > { %v3584_v40 = vperm.slane %v3578_v37, %v5976_v32  ;;  %v3601_v44 = vrot.slane %v3588_v23, 4  ;;  %v3604_v50 = vsel %vm1071_vm2, %v3588_v23, %v3603_v7  ;;  %v3522_v53 = vsel %vm1071_vm2, %v3521_v16, %v5572_v38 }
 0x838   : > { %v3612_v61 = vperm.slane %v3604_v50, %v6009_v3  ;;  %v3528_v54 = vperm.slane %v3522_v53, %v5976_v32  ;;  %v3545_v49 = vrot.slane %v3532_v17, 4  ;;  %v3548_v4 = vsel %vm1071_vm2, %v3532_v17, %v3547_v2 }
 0x839   : > { %v3589_v62 = vrot.slane %v3584_v40, 4  ;;  %v3592_v1 = vsel %vm1071_vm2, %v3584_v40, %v3591_v5  ;;  %v3602_v7 = vsel %vm1071_vm2, %v3601_v44, %v7027_v19  ;;  %v3556_v29 = vperm.slane %v3548_v4, %v6009_v3 }
 0x83a   : > { %v3600_v38 = vperm.slane %v3592_v1, %v6009_v3  ;;  %v3608_v35 = vperm.slane %v3602_v7, %v6009_v3  ;;  %v3619_v42 = vrot.slane %v3612_v61, 4  ;;  %v3533_v51 = vrot.slane %v3528_v54, 4 }
 0x83b   : > { %v3590_v45 = vsel %vm1071_vm2, %v3589_v62, %v7032_v39  ;;  %v3536_v2 = vsel %vm1071_vm2, %v3528_v54, %v3535_v10  ;;  %v3546_v5 = vsel %vm1071_vm2, %v3545_v49, %v7038_v48  ;;  %v3563_v27 = vrot.slane %v3556_v29, 4 }
 0x83c   : > { %v3596_v19 = vperm.slane %v3590_v45, %v6009_v3  ;;  %v3615_v46 = vrot.slane %v3600_v38, 4  ;;  %v3617_v34 = vrot.slane %v3608_v35, 4  ;;  %v3620_v0 = vsel %vm1071_vm2, 0.0, %v3619_v42 }
 0x83d   : > { %v3794_v57 = vsel %vm1071_vm2, %v3619_v42, %v3608_v35  ;;  %v3799_v43 = vrot.slane %v3620_v0, 4  ;;  %v3534_v39 = vsel %vm1071_vm2, %v3533_v51, %v7035_v26  ;;  %v3544_v52 = vperm.slane %v3536_v2, %v6009_v3 }
 0x83e   : > { %v3613_v8 = vrot.slane %v3596_v19, 4  ;;  %v3616_v10 = vsel %vm1071_vm2, 0.0, %v3615_v46  ;;  %v3618_v48 = vsel %vm1071_vm2, 0.0, %v3617_v34  ;;  %v3783_v55 = vsel %vm1071_vm2, %v3615_v46, %v3596_v19 }
 0x83f   : > { %v3787_v23 = vperm.slane %v3783_v55, %v5976_v32  ;;  %v3788_v16 = vrot.slane %v3616_v10, 4  ;;  %v3798_v36 = vperm.slane %v3794_v57, %v5976_v32  ;;  %v3800_v37 = vsel %vm1071_vm2, %v3799_v43, %v3618_v48 }
 0x840   : > { %v3614_v17 = vsel %vm1071_vm2, 0.0, %v3613_v8  ;;  %v3804_v26 = vperm.slane %v3800_v37, %v5976_v32  ;;  %v3540_v40 = vperm.slane %v3534_v39, %v6009_v3  ;;  %v3552_v44 = vperm.slane %v3546_v5, %v6009_v3 }
 0x841   : > { %v3819_v50 = vrot.slane %v3798_v36, 4  ;;  %v3559_v53 = vrot.slane %v3544_v52, 4  ;;  %v3564_v61 = vsel %vm1071_vm2, 0.0, %v3563_v27  ;;  %v3789_v54 = vsel %vm1071_vm2, %v3788_v16, %v3614_v17 }
 0x842   : > { %v3557_v49 = vrot.slane %v3540_v40, 4  ;;  %v3561_v4 = vrot.slane %v3552_v44, 4  ;;  %v3740_v62 = vsel %vm1071_vm2, %v3563_v27, %v3552_v44  ;;  %v3745_v1 = vrot.slane %v3564_v61, 4 }
 0x843   : > { %v3560_v7 = vsel %vm1071_vm2, 0.0, %v3559_v53  ;;  %v3729_v29 = vsel %vm1071_vm2, %v3559_v53, %v3540_v40  ;;  %v3744_v38 = vperm.slane %v3740_v62, %v5976_v32  ;;  %v3793_v35 = vperm.slane %v3789_v54, %v5976_v32 }
 0x844   : > { %v3558_v42 = vsel %vm1071_vm2, 0.0, %v3557_v49  ;;  %v3562_v51 = vsel %vm1071_vm2, 0.0, %v3561_v4  ;;  %v3733_v45 = vperm.slane %v3729_v29, %v5976_v32  ;;  %v3734_v2 = vrot.slane %v3560_v7, 4 }
 0x845   : > { %v3746_v5 = vsel %vm1071_vm2, %v3745_v1, %v3562_v51  ;;  %v3765_v19 = vrot.slane %v3744_v38, 4  ;;  %v3807_v27 = vrot.slane %v3787_v23, 4  ;;  %v3820_v46 = vsel %vm1071_vm2, %v3804_v26, %v3819_v50 }
 0x846   : > { %v3750_v34 = vperm.slane %v3746_v5, %v5976_v32  ;;  %v3735_v0 = vsel %vm1071_vm2, %v3734_v2, %v3558_v42  ;;  %v3753_v57 = vrot.slane %v3733_v45, 4  ;;  %v3828_v43 = vperm.slane %v3820_v46, %v6009_v3 }
 0x847   : > { %v3739_v39 = vperm.slane %v3735_v0, %v5976_v32  ;;  %v3808_v52 = vsel %vm1071_vm2, %v3793_v35, %v3807_v27  ;;  %v3805_v8 = vrot.slane %v3793_v35, 4  ;;  %v3817_v10 = vrot.slane %v3804_v26, 4 }
 0x848   : > { %v3766_v48 = vsel %vm1071_vm2, %v3750_v34, %v3765_v19  ;;  %v3816_v55 = vperm.slane %v3808_v52, %v6009_v3  ;;  %v3833_v16 = vrot.slane %v3828_v43, 4  ;;  %v3763_v37 = vrot.slane %v3750_v34, 4 }
 0x849   : > { %v3754_v17 = vsel %vm1071_vm2, %v3739_v39, %v3753_v57  ;;  %v3774_v40 = vperm.slane %v3766_v48, %v6009_v3  ;;  %v3751_v44 = vrot.slane %v3739_v39, 4  ;;  %v3806_v50 = vsel %vm1071_vm2, %v3805_v8, %v3787_v23 }
 0x84a   : > { %v3762_v53 = vperm.slane %v3754_v17, %v6009_v3  ;;  %v3834_v61 = vsel %vm1071_vm2, %v3833_v16, %v3816_v55  ;;  %v3764_v54 = vsel %vm1071_vm2, %v3763_v37, %v3744_v38  ;;  %v3812_v26 = vperm.slane %v3806_v50, %v6009_v3 }
 0x84b   : > { %v3779_v49 = vrot.slane %v3774_v40, 4  ;;  %v3848_v4 = vpack.c.bf16 %v3834_v61, %v3834_v61  ;;  %v3752_v62 = vsel %vm1071_vm2, %v3751_v44, %v3733_v45  ;;  %v3770_v1 = vperm.slane %v3764_v54, %v6009_v3 }
 0x84c   : > { %v3758_v7 = vperm.slane %v3752_v62, %v6009_v3  ;;  %v3818_v29 = vsel %vm1071_vm2, %v3817_v10, %v3798_v36  ;;  %v3781_v35 = vrot.slane %v3762_v53, 4  ;;  %v3835_v23 = vrot.slane %v3816_v55, 4 }
 0x84d   : > { %v3780_v42 = vsel %vm1071_vm2, %v3779_v49, %v3762_v53  ;;  %v4181_v51 = vunpack.c.l.b16 %v3848_v4  ;;  %v3775_v2 = vrot.slane %v3770_v1, 4  ;;  %v3824_v38 = vperm.slane %v3818_v29, %v6009_v3 }
 0x84e   : > { %v3847_v5 = vpack.c.bf16 %v3780_v42, %v3780_v42  ;;  %v3782_v19 = vsel %vm1071_vm2, %v3774_v40, %v3781_v35  ;;  %v3836_v27 = vsel %vm1071_vm2, %v3828_v43, %v3835_v23  ;;  %v3777_v45 = vrot.slane %v3758_v7, 4 }
 0x84f   : > { %v3776_v46 = vsel %vm1071_vm2, %v3775_v2, %v3758_v7  ;;  %v3829_v34 = vrot.slane %v3824_v38, 4  ;;  %v3851_v0 = vpack.c.bf16 %v3782_v19, %v3782_v19  ;;  %v3852_v57 = vpack.c.bf16 %v3836_v27, %v3836_v27 }
 0x850   : > { %v4180_v36 = vunpack.c.l.b16 %v3847_v5  ;;  %v3839_v39 = vpack.c.bf16 %v3776_v46, %v3776_v46  ;;  %v3778_v52 = vsel %vm1071_vm2, %v3770_v1, %v3777_v45  ;;  %v3831_v8 = vrot.slane %v3812_v26, 4 }
 0x851   : > { %v3830_v10 = vsel %vm1071_vm2, %v3829_v34, %v3812_v26  ;;  %v4214_v48 = vunpack.c.l.b16 %v3851_v0  ;;  %v4215_v55 = vunpack.c.l.b16 %v3852_v57  ;;  %v3843_v16 = vpack.c.bf16 %v3778_v52, %v3778_v52 }
 0x852   : > { %v4183_v37 = vpack.c.b16 %v4181_v51, %v4180_v36  ;;  %v3840_v17 = vpack.c.bf16 %v3830_v10, %v3830_v10  ;;  %v4112_v40 = vunpack.c.l.b16 %v3839_v39  ;;  %v3832_v43 = vsel %vm1071_vm2, %v3824_v38, %v3831_v8 }
 0x853   : > { %v4217_v44 = vpack.c.b16 %v4215_v55, %v4214_v48  ;;  %v3844_v50 = vpack.c.bf16 %v3832_v43, %v3832_v43  ;;  %v4146_v53 = vunpack.c.l.b16 %v3843_v16  ;;  %v3631_v61 = vperm.slane %v7146_v11, %v5976_v32 }
 0x854   : > { %4195 = vmatpush.bf16.msrb.mxu3 %v4183_v37  ;;  %v4113_v54 = vunpack.c.l.b16 %v3840_v17  ;;  %v3642_v49 = vperm.slane %v7149_v6, %v5976_v32  ;;  %v3645_v26 = vrot.slane %v7139_v22, 4  ;;  %v3657_v4 = vrot.slane %v7114_v9, 4 }
 0x855   : > { %4229 = vmatpush.bf16.msra.mxu0 %v4217_v44  ;;  %v4147_v62 = vunpack.c.l.b16 %v3844_v50  ;;  %v3675_v1 = vsel %vm1071_vm2, %v7103_v47, %v7099_v28  ;;  %v3681_v11 = vsel %vm1071_vm2, %v3680_v21, %v7132_v18  ;;  %v3692_v6 = vsel %vm1071_vm2, %v3691_v56, %v7118_v58 }
 0x856   : > { %v4115_v7 = vpack.c.b16 %v4113_v54, %v4112_v40  ;;  %v3646_v29 = vsel %vm1071_vm2, %v3631_v61, %v3645_v26  ;;  %v3658_v35 = vsel %vm1071_vm2, %v3642_v49, %v3657_v4  ;;  %v3679_v23 = vperm.slane %v3675_v1, %v5976_v32 }
 0x857   : > { %v4149_v42 = vpack.c.b16 %v4147_v62, %v4146_v53  ;;  %v3654_v28 = vperm.slane %v3646_v29, %v6009_v3  ;;  %v3666_v47 = vperm.slane %v3658_v35, %v6009_v3  ;;  %v3685_v63 = vperm.slane %v3681_v11, %v5976_v32 }
 0x858   : > { %4127 = vmatpush.bf16.msra.mxu1 %v4115_v7  ;;  %v3696_v21 = vperm.slane %v3692_v6, %v5976_v32  ;;  %v3699_v60 = vrot.slane %v3679_v23, 4  ;;  %v3711_v58 = vrot.slane %v7125_v25, 4  ;;  %v3643_v56 = vrot.slane %v3631_v61, 4 }
 0x859   : > { %4161 = vmatpush.bf16.msra.mxu2 %v4149_v42  ;;  %v3671_v18 = vrot.slane %v3666_v47, 4  ;;  %v3655_v51 = vrot.slane %v3642_v49, 4  ;;  %v3697_v2 = vrot.slane %v3685_v63, 4  ;;  %v3673_v38 = vrot.slane %v3654_v28, 4 }
 0x85a   : > { %v3700_v5 = vsel %vm1071_vm2, %v3685_v63, %v3699_v60  ;;  %v3712_v19 = vsel %vm1071_vm2, %v3696_v21, %v3711_v58  ;;  %v3644_v27 = vsel %vm1071_vm2, %v3643_v56, %v7139_v22  ;;  %v3709_v45 = vrot.slane %v3696_v21, 4 }
 0x85b   : > { %v3672_v46 = vsel %vm1071_vm2, %v3671_v18, %v3654_v28  ;;  %v3708_v34 = vperm.slane %v3700_v5, %v6009_v3  ;;  %v3720_v0 = vperm.slane %v3712_v19, %v6009_v3  ;;  %v3650_v57 = vperm.slane %v3644_v27, %v6009_v3 }
 0x85c   : > { %v3845_v36 = vpack.c.bf16 %v3672_v46, %v3672_v46  ;;  %v3656_v39 = vsel %vm1071_vm2, %v3655_v51, %v7114_v9  ;;  %v3698_v52 = vsel %vm1071_vm2, %v3697_v2, %v3679_v23  ;;  %v3710_v8 = vsel %vm1071_vm2, %v3709_v45, %v7125_v25 }
 0x85d   : > { %v3725_v10 = vrot.slane %v3720_v0, 4  ;;  %v3662_v22 = vperm.slane %v3656_v39, %v6009_v3  ;;  %v3704_v48 = vperm.slane %v3698_v52, %v6009_v3  ;;  %v3716_v55 = vperm.slane %v3710_v8, %v6009_v3 }
 0x85e   : > { %v4178_v16 = vunpack.c.l.b16 %v3845_v36  ;;  %v3674_v37 = vsel %vm1071_vm2, %v3666_v47, %v3673_v38  ;;  %v3727_v17 = vrot.slane %v3708_v34, 4  ;;  %v3669_v40 = vrot.slane %v3650_v57, 4 }
 0x85f   : > { %v3726_v43 = vsel %vm1071_vm2, %v3725_v10, %v3708_v34  ;;  %v3667_v9 = vrot.slane %v3662_v22, 4  ;;  %v3721_v44 = vrot.slane %v3716_v55, 4  ;;  %v3849_v50 = vpack.c.bf16 %v3674_v37, %v3674_v37 }
 0x860   : > { %v3846_v53 = vpack.c.bf16 %v3726_v43, %v3726_v43  ;;  %v3728_v25 = vsel %vm1071_vm2, %v3720_v0, %v3727_v17  ;;  %v3670_v61 = vsel %vm1071_vm2, %v3662_v22, %v3669_v40  ;;  %v3723_v54 = vrot.slane %v3704_v48, 4 }
 0x861   : > { %v3668_v49 = vsel %vm1071_vm2, %v3667_v9, %v3650_v57  ;;  %v3722_v26 = vsel %vm1071_vm2, %v3721_v44, %v3704_v48  ;;  %v3850_v4 = vpack.c.bf16 %v3728_v25, %v3728_v25  ;;  %v4212_v62 = vunpack.c.l.b16 %v3849_v50 }
 0x862   : > { %v4179_v1 = vunpack.c.l.b16 %v3846_v53  ;;  %v3837_v11 = vpack.c.bf16 %v3668_v49, %v3668_v49  ;;  %v3838_v6 = vpack.c.bf16 %v3722_v26, %v3722_v26  ;;  %v3724_v7 = vsel %vm1071_vm2, %v3716_v55, %v3723_v54 }
 0x863   : > { %v4213_v29 = vunpack.c.l.b16 %v3850_v4  ;;  %v3841_v35 = vpack.c.bf16 %v3670_v61, %v3670_v61  ;;  %v3842_v23 = vpack.c.bf16 %v3724_v7, %v3724_v7 }
 0x864   : > { %v4182_v42 = vpack.c.b16 %v4179_v1, %v4178_v16  ;;  %v4110_v28 = vunpack.c.l.b16 %v3837_v11  ;;  %v4111_v47 = vunpack.c.l.b16 %v3838_v6 }
 0x865   : > { %v4216_v63 = vpack.c.b16 %v4213_v29, %v4212_v62  ;;  %v4144_v21 = vunpack.c.l.b16 %v3841_v35  ;;  %v4145_v60 = vunpack.c.l.b16 %v3842_v23 }
 0x866   : > { %4196 = vmatpush.bf16.msrb.mxu3 %v4182_v42  ;;  %v4114_v58 = vpack.c.b16 %v4111_v47, %v4110_v28 }
 0x867   : > { %4230 = vmatpush.bf16.msra.mxu0 %v4216_v63  ;;  %v4148_v56 = vpack.c.b16 %v4145_v60, %v4144_v21 }
 0x868   : > { %4128 = vmatpush.bf16.msra.mxu1 %v4114_v58 }
 0x869   : > { %4162 = vmatpush.bf16.msra.mxu2 %v4148_v56 }
 0x877   : > { %v4061_v18 = vpop.xlane.xlu0 %4060 }
 0x878   : > { %5678 = vrcp.f32 %v4061_v18 }
 0x87e   : > { %v5679_v38 = vpop.eup %5678 }
 0x87f   : > { %v4055_v51 = vpop.xlane.xlu1 %4054  ;;  %v4087_v5 = vmul.f32 %v5679_v38, %v6996_v14 }
 0x880   : > { %v4064_v2 = vpop.xlane.xlu2 %4063 }
 0x881   : > { %5680 = vrcp.f32 %v4064_v2  ;;  %v4095_v46 = vpack.c.bf16 %v4087_v5, %v4087_v5  ;;  %v4740_v11 = vrot.slane %v4087_v5, 4 }
 0x882   : > { %5682 = vrcp.f32 %v4055_v51 }
 0x883   : > { %v4137_v36 = vunpack.c.l.b16 %v4095_v46 }
 0x887   : > { %v5681_v19 = vpop.eup %5680  ;;  %v4058_v27 = vpop.xlane.xlu0 %4057 }
 0x888   : > { %v5683_v45 = vpop.eup %5682  ;;  %v7282_v34 = vmul.f32 %v5681_v19, %v7002_v31  ;;  %5684 = vrcp.f32 %v4058_v27 }
 0x889   : > { %v4085_v57 = vmul.f32 %v5683_v45, %v7000_v12 }
 0x88a   : > { %v4096_v0 = vpack.c.bf16 %v7282_v34, %v7282_v34 }
 0x88b   : > { %v4093_v10 = vpack.c.bf16 %v4085_v57, %v4085_v57  ;;  %v4728_v12 = vrot.slane %v4085_v57, 4 }
 0x88c   : > { %v4138_v39 = vunpack.c.l.b16 %v4096_v0 }
 0x88d   : > { %v4103_v48 = vunpack.c.l.b16 %v4093_v10 }
 0x88e   : > { %v5685_v52 = vpop.eup %5684  ;;  %v4139_v8 = vpack.c.b16 %v4138_v39, %v4137_v36 }
 0x88f   : > { %v7288_v14 = vmul.f32 %v5685_v52, %v7008_v15  ;;  %v4067_v22 = vpop.xlane.xlu1 %4066 }
 0x890   : > { %5352 = vmatmul.msk.bf16.vlgmr.msra.gmra.mxu2 %vm956_vm1, %v4139_v8  ;;  %5686 = vrcp.f32 %v4067_v22 }
 0x891   : > { %v4094_v31 = vpack.c.bf16 %v7288_v14, %v7288_v14 }
 0x893   : > { %v4104_v55 = vunpack.c.l.b16 %v4094_v31 }
 0x895   : > { %v4105_v16 = vpack.c.b16 %v4104_v55, %v4103_v48 }
 0x896   : > { %v5687_v37 = vpop.eup %5686 }
 0x897   : > { %5351 = vmatmul.msk.bf16.vlgmr.msra.gmra.mxu1 %vm956_vm1, %v4105_v16  ;;  %v4089_v17 = vmul.f32 %v5687_v37, %v7017_v59  ;;  %v4070_v15 = vpop.xlane.xlu2 %4069  ;;  %v4076_v43 = vpop.xlane.xlu1 %4075 }
 0x898   : > { %5688 = vrcp.f32 %v4070_v15 }
 0x899   : > { %v4729_v40 = vsel %vm1071_vm2, %v4089_v17, %v4728_v12  ;;  %5690 = vrcp.f32 %v4076_v43  ;;  %v4097_v44 = vpack.c.bf16 %v4089_v17, %v4089_v17  ;;  %v4726_v61 = vrot.slane %v4089_v17, 4 }
 0x89b   : > { %v4171_v49 = vunpack.c.l.b16 %v4097_v44  ;;  %v4727_v4 = vsel %vm1071_vm2, %v4726_v61, %v4085_v57 }
 0x89c   : > { %v4733_v63 = vperm.slane %v4727_v4, %v5976_v32 }
 0x89e   : > { %v5689_v9 = vpop.eup %5688  ;;  %v4752_v58 = vrot.slane %v4733_v63, 4 }
 0x89f   : > { %v7297_v50 = vmul.f32 %v5689_v9, %v7063_v33  ;;  %v4073_v53 = vpop.xlane.xlu2 %4072  ;;  %v5691_v25 = vpop.eup %5690 }
 0x8a0   : > { %5692 = vrcp.f32 %v4073_v53  ;;  %v7302_v26 = vmul.f32 %v5691_v25, %v7049_v24  ;;  %v4737_v24 = vperm.slane %v4729_v40, %v5976_v32 }
 0x8a1   : > { %v4098_v54 = vpack.c.bf16 %v7297_v50, %v7297_v50 }
 0x8a2   : > { %v4100_v33 = vpack.c.bf16 %v7302_v26, %v7302_v26  ;;  %v4764_v21 = vrot.slane %v4737_v24, 4 }
 0x8a3   : > { %v4172_v59 = vunpack.c.l.b16 %v4098_v54 }
 0x8a4   : > { %v4206_v35 = vunpack.c.l.b16 %v4100_v33 }
 0x8a5   : > { %v4173_v62 = vpack.c.b16 %v4172_v59, %v4171_v49 }
 0x8a6   : > { %v5693_v1 = vpop.eup %5692 }
 0x8a7   : > { %v4091_v6 = vmul.f32 %v5693_v1, %v7043_v13  ;;  %5353 = vmatmul.msk.bf16.vlgmr.msrb.gmra.mxu3 %vm956_vm1, %v4173_v62 }
 0x8a9   : > { %v4099_v7 = vpack.c.bf16 %v4091_v6, %v4091_v6  ;;  %v4741_v29 = vsel %vm1071_vm2, %v4091_v6, %v4740_v11  ;;  %v4738_v28 = vrot.slane %v4091_v6, 4 }
 0x8aa   : > { %v4749_v47 = vperm.slane %v4741_v29, %v5976_v32 }
 0x8ab   : > { %v4205_v23 = vunpack.c.l.b16 %v4099_v7  ;;  %v4739_v13 = vsel %vm1071_vm2, %v4738_v28, %v4087_v5 }
 0x8ac   : > { %v4745_v60 = vperm.slane %v4739_v13, %v5976_v32  ;;  %v4762_v56 = vrot.slane %v4749_v47, 4  ;;  %v7317_v18 = vsel %vm1071_vm2, %v4749_v47, %v4764_v21 }
 0x8ad   : > { %v4207_v42 = vpack.c.b16 %v4206_v35, %v4205_v23 }
 0x8ae   : > { %v4750_v51 = vrot.slane %v4745_v60, 4  ;;  %v7320_v2 = vsel %vm1071_vm2, %v4745_v60, %v4752_v58  ;;  %v7323_v38 = vsel %vm1071_vm2, %v4762_v56, %v4737_v24 }
 0x8af   : > { %5354 = vmatmul.msk.bf16.vlgmr.msra.gmra.mxu0 %vm956_vm1, %v4207_v42 }
 0x8b0   : > { %v7326_v19 = vsel %vm1071_vm2, %v4750_v51, %v4733_v63 }
 0x913   : > { %v4164_v45 = vpop.f32.mrf.mxu2 }
 0x914   : > { %v4130_v27 = vpop.f32.mrf.mxu1  ;;  %v4251_v0 = vrot.slane %v4164_v45, 4 }
 0x915   : > { %v4239_v5 = vrot.slane %v4130_v27, 4 }
 0x91b   : > { %v4166_v43 = vpop.f32.mrf.mxu2 }
 0x91c   : > { %v4132_v16 = vpop.f32.mrf.mxu1  ;;  %v4307_v1 = vrot.slane %v4166_v43, 4 }
 0x91d   : > { %v4295_v44 = vrot.slane %v4132_v16, 4 }
 0x92a   : > { %v4198_v46 = vpop.f32.mrf.mxu3 }
 0x92b   : > { %v4237_v57 = vrot.slane %v4198_v46, 4  ;;  %v4240_v36 = vsel %vm1071_vm2, %v4198_v46, %v4239_v5 }
 0x92c   : > { %v4248_v39 = vperm.slane %v4240_v36, %v5976_v32  ;;  %v4232_v52 = vpop.f32.mrf.mxu0 }
 0x92d   : > { %v4238_v8 = vsel %vm1071_vm2, %v4237_v57, %v4130_v27  ;;  %v4249_v10 = vrot.slane %v4232_v52, 4  ;;  %v4252_v22 = vsel %vm1071_vm2, %v4232_v52, %v4251_v0 }
 0x92e   : > { %v4244_v31 = vperm.slane %v4238_v8, %v5976_v32  ;;  %v4275_v48 = vrot.slane %v4248_v39, 4  ;;  %v4260_v55 = vperm.slane %v4252_v22, %v5976_v32 }
 0x92f   : > { %v4250_v37 = vsel %vm1071_vm2, %v4249_v10, %v4164_v45 }
 0x930   : > { %v4263_v12 = vrot.slane %v4244_v31, 4  ;;  %v4256_v17 = vperm.slane %v4250_v37, %v5976_v32  ;;  %v4273_v40 = vrot.slane %v4260_v55, 4  ;;  %v4276_v15 = vsel %vm1071_vm2, %v4260_v55, %v4275_v48 }
 0x931   : > { %v4284_v9 = vperm.slane %v4276_v15, %v6009_v3 }
 0x932   : > { %v4261_v53 = vrot.slane %v4256_v17, 4  ;;  %v4264_v25 = vsel %vm1071_vm2, %v4256_v17, %v4263_v12  ;;  %v4274_v61 = vsel %vm1071_vm2, %v4273_v40, %v4248_v39  ;;  %v4200_v54 = vpop.f32.mrf.mxu3 }
 0x933   : > { %v4272_v49 = vperm.slane %v4264_v25, %v6009_v3  ;;  %v4280_v59 = vperm.slane %v4274_v61, %v6009_v3  ;;  %v4291_v4 = vrot.slane %v4284_v9, 4  ;;  %v4293_v62 = vrot.slane %v4200_v54, 4 }
 0x934   : > { %v4262_v11 = vsel %vm1071_vm2, %v4261_v53, %v4244_v31  ;;  %v4296_v33 = vsel %vm1071_vm2, %v4200_v54, %v4295_v44  ;;  %v4234_v47 = vpop.f32.mrf.mxu0 }
 0x935   : > { %v4268_v6 = vperm.slane %v4262_v11, %v6009_v3  ;;  %v4287_v7 = vrot.slane %v4272_v49, 4  ;;  %v4289_v29 = vrot.slane %v4280_v59, 4  ;;  %v4292_v35 = vsel %vm1071_vm2, 0.0, %v4291_v4 }
 0x936   : > { %v4360_v23 = vsel %vm1071_vm2, %v4291_v4, %v4280_v59  ;;  %v4365_v42 = vrot.slane %v4292_v35, 4  ;;  %v4294_v24 = vsel %vm1071_vm2, %v4293_v62, %v4132_v16  ;;  %v4304_v28 = vperm.slane %v4296_v33, %v5976_v32 }
 0x937   : > { %v4285_v63 = vrot.slane %v4268_v6, 4  ;;  %v4288_v21 = vsel %vm1071_vm2, 0.0, %v4287_v7  ;;  %v4290_v13 = vsel %vm1071_vm2, 0.0, %v4289_v29  ;;  %v4349_v60 = vsel %vm1071_vm2, %v4287_v7, %v4268_v6 }
 0x938   : > { %v4354_v58 = vrot.slane %v4288_v21, 4  ;;  %v4364_v56 = vperm.slane %v4360_v23, %v5976_v32  ;;  %v4366_v51 = vsel %vm1071_vm2, %v4365_v42, %v4290_v13  ;;  %v4300_v27 = vperm.slane %v4294_v24, %v5976_v32 }
 0x939   : > { %v4370_v45 = vperm.slane %v4366_v51, %v5976_v32  ;;  %v4331_v5 = vrot.slane %v4304_v28, 4  ;;  %v4305_v46 = vrot.slane %v4234_v47, 4  ;;  %v4308_v0 = vsel %vm1071_vm2, %v4234_v47, %v4307_v1 }
 0x93a   : > { %v4385_v57 = vrot.slane %v4364_v56, 4  ;;  %v4319_v36 = vrot.slane %v4300_v27, 4  ;;  %v4316_v39 = vperm.slane %v4308_v0, %v5976_v32  ;;  %v4286_v52 = vsel %vm1071_vm2, 0.0, %v4285_v63 }
 0x93b   : > { %v4306_v8 = vsel %vm1071_vm2, %v4305_v46, %v4166_v43  ;;  %v4353_v10 = vperm.slane %v4349_v60, %v5976_v32  ;;  %v4355_v22 = vsel %vm1071_vm2, %v4354_v58, %v4286_v52  ;;  %v4383_v31 = vrot.slane %v4370_v45, 4 }
 0x93c   : > { %v4312_v48 = vperm.slane %v4306_v8, %v5976_v32  ;;  %v4329_v55 = vrot.slane %v4316_v39, 4  ;;  %v4332_v16 = vsel %vm1071_vm2, %v4316_v39, %v4331_v5  ;;  %v4359_v37 = vperm.slane %v4355_v22, %v5976_v32 }
 0x93d   : > { %v4340_v12 = vperm.slane %v4332_v16, %v6009_v3  ;;  %v4373_v43 = vrot.slane %v4353_v10, 4  ;;  %v4386_v25 = vsel %vm1071_vm2, %v4370_v45, %v4385_v57  ;;  %v4384_v49 = vsel %vm1071_vm2, %v4383_v31, %v4364_v56 }
 0x93e   : > { %v4317_v17 = vrot.slane %v4312_v48, 4  ;;  %v4320_v40 = vsel %vm1071_vm2, %v4312_v48, %v4319_v36  ;;  %v4330_v15 = vsel %vm1071_vm2, %v4329_v55, %v4304_v28  ;;  %v4371_v54 = vrot.slane %v4359_v37, 4 }
 0x93f   : > { %v4328_v9 = vperm.slane %v4320_v40, %v6009_v3  ;;  %v4336_v44 = vperm.slane %v4330_v15, %v6009_v3  ;;  %v4347_v53 = vrot.slane %v4340_v12, 4  ;;  %v4374_v6 = vsel %vm1071_vm2, %v4359_v37, %v4373_v43 }
 0x940   : > { %v4318_v61 = vsel %vm1071_vm2, %v4317_v17, %v4300_v27  ;;  %v4394_v7 = vperm.slane %v4386_v25, %v6009_v3  ;;  %v4372_v60 = vsel %vm1071_vm2, %v4371_v54, %v4353_v10  ;;  %v4382_v56 = vperm.slane %v4374_v6, %v6009_v3 }
 0x941   : > { %v4324_v59 = vperm.slane %v4318_v61, %v6009_v3  ;;  %v4343_v4 = vrot.slane %v4328_v9, 4  ;;  %v4345_v62 = vrot.slane %v4336_v44, 4  ;;  %v4348_v1 = vsel %vm1071_vm2, 0.0, %v4347_v53 }
 0x942   : > { %v4414_v11 = vsel %vm1071_vm2, %v4347_v53, %v4336_v44  ;;  %v4419_v33 = vrot.slane %v4348_v1, 4  ;;  %v4378_v5 = vperm.slane %v4372_v60, %v6009_v3  ;;  %v4390_v46 = vperm.slane %v4384_v49, %v6009_v3 }
 0x943   : > { %v4341_v29 = vrot.slane %v4324_v59, 4  ;;  %v4344_v35 = vsel %vm1071_vm2, 0.0, %v4343_v4  ;;  %v4346_v23 = vsel %vm1071_vm2, 0.0, %v4345_v62  ;;  %v4403_v42 = vsel %vm1071_vm2, %v4343_v4, %v4324_v59 }
 0x944   : > { %v4408_v24 = vrot.slane %v4344_v35, 4  ;;  %v4418_v28 = vperm.slane %v4414_v11, %v5976_v32  ;;  %v4420_v47 = vsel %vm1071_vm2, %v4419_v33, %v4346_v23  ;;  %v4407_v63 = vperm.slane %v4403_v42, %v5976_v32  ;;  %v5417_v11 = vld [vmem:[%s5903_s21 + $0x8] sm:$0xff]  ;;  %v5416_v33 = vld [vmem:[%s5903_s21] sm:$0xff] }
 0x945   : > { %v4342_v21 = vsel %vm1071_vm2, 0.0, %v4341_v29  ;;  %v4424_v13 = vperm.slane %v4420_v47, %v5976_v32  ;;  %v4399_v57 = vrot.slane %v4394_v7, 4  ;;  %v4395_v8 = vrot.slane %v4390_v46, 4  ;;  %4517 = vmatpush.bf16.msrb.mxu1 %v5417_v11 }
 0x946   : > { %v4439_v58 = vrot.slane %v4418_v28, 4  ;;  %v4409_v51 = vsel %vm1071_vm2, %v4408_v24, %v4342_v21  ;;  %v4427_v27 = vrot.slane %v4407_v63, 4  ;;  %v4401_v31 = vrot.slane %v4382_v56, 4 }
 0x947   : > { %v4413_v45 = vperm.slane %v4409_v51, %v5976_v32  ;;  %v4437_v0 = vrot.slane %v4424_v13, 4  ;;  %v4396_v12 = vsel %vm1071_vm2, %v4395_v8, %v4378_v5  ;;  %v4397_v40 = vrot.slane %v4378_v5, 4 }
 0x948   : > { %v4440_v36 = vsel %vm1071_vm2, %v4424_v13, %v4439_v58  ;;  %v4400_v43 = vsel %vm1071_vm2, %v4399_v57, %v4382_v56  ;;  %v4402_v53 = vsel %vm1071_vm2, %v4394_v7, %v4401_v31 }
 0x949   : > { %v4428_v39 = vsel %vm1071_vm2, %v4413_v45, %v4427_v27  ;;  %v4448_v52 = vperm.slane %v4440_v36, %v6009_v3  ;;  %v4425_v10 = vrot.slane %v4413_v45, 4  ;;  %v4438_v48 = vsel %vm1071_vm2, %v4437_v0, %v4418_v28  ;;  %4518 = vmatpush.bf16.msrb.mxu1 %v5416_v33  ;;  %v5621_v27 = vld [vmem:[%s7647_s12] ss:$0 sm:$0xff] }
 0x94a   : > { %v4436_v22 = vperm.slane %v4428_v39, %v6009_v3  ;;  %v4444_v37 = vperm.slane %v4438_v48, %v6009_v3  ;;  %v4398_v59 = vsel %vm1071_vm2, %v4390_v46, %v4397_v40 }
 0x94b   : > { %v4453_v55 = vrot.slane %v4448_v52, 4  ;;  %v4426_v16 = vsel %vm1071_vm2, %v4425_v10, %v4407_v63 }
 0x94c   : > { %v4455_v17 = vrot.slane %v4436_v22, 4  ;;  %v4432_v15 = vperm.slane %v4426_v16, %v6009_v3  ;;  %v4449_v49 = vrot.slane %v4444_v37, 4 }
 0x94d   : > { %v4454_v9 = vsel %vm1071_vm2, %v4453_v55, %v4436_v22 }
 0x94e   : > { %v5604_v44 = vpack.i.bf16 %v4454_v9, %v4400_v43  ;;  %v4456_v25 = vsel %vm1071_vm2, %v4448_v52, %v4455_v17  ;;  %v4451_v61 = vrot.slane %v4432_v15, 4  ;;  %v4450_v1 = vsel %vm1071_vm2, %v4449_v49, %v4432_v15  ;;  %v5419_v43 = vld [vmem:[%s5923_s4 + $0x8] sm:$0xff] }
 0x94f   : > { %v5609_v54 = vpack.i.bf16 %v4456_v25, %v4402_v53  ;;  %4607 = vmatpush.bf16.msrb.mxu2 %v5419_v43 }
 0x950   : > { %5605 = vrot.lane.b32.xlu2 %v5604_v44, %s5736_s22  ;;  %v4452_v4 = vsel %vm1071_vm2, %v4444_v37, %v4451_v61 }
 0x951   : > { %5610 = vrot.lane.b32.xlu1 %v5609_v54, %s5735_s0  ;;  %v5599_v62 = vpack.i.bf16 %v4452_v4, %v4398_v59  ;;  %s5742_s0 = smov 80  }
 0x953   : > { %5600 = vrot.lane.b32.xlu0 %v5599_v62, %s5737_s23 }
 0x9aa   : > { %v5606_v6 = vpop.permute.xlu2 %5605 }
 0x9ab   : > { %v5608_v42 = vunpack.i.h.bf16 %v5606_v6  ;;  %v5607_v24 = vunpack.i.l.bf16 %v5606_v6 }
 0x9c3   : > { %v5611_v7 = vpop.permute.xlu1 %5610 }
 0x9c4   : > { %v5613_v28 = vunpack.i.h.bf16 %v5611_v7  ;;  %v5612_v47 = vunpack.i.l.bf16 %v5611_v7 }
 0x9c5   : > { %v5601_v29 = vpop.permute.xlu0 %5600 }
 0x9c6   : > { %v5603_v35 = vunpack.i.h.bf16 %v5601_v29  ;;  %v5602_v23 = vunpack.i.l.bf16 %v5601_v29 }
 0x9c8   : > { %v4481_v63 = vsel %vm1805_vm3, %v4396_v12, %v5602_v23  ;;  %v4482_v21 = vsel %vm1805_vm3, %v4450_v1, %v5603_v35  ;;  %v7453_v35 = vld [vmem:[%s5913_s16] sm:$0x7]  ;;  %s5739_s16 = smov 48  }
 0x9c9   : > { %v4483_v13 = vsel %vm1916_vm4, %v4481_v63, %v5607_v24  ;;  %v4484_v60 = vsel %vm1916_vm4, %v4482_v21, %v5608_v42  ;;  %v4571_v23 = vperm.slane %v7453_v35, 1 }
 0x9ca   : > { %v4485_v58 = vsel %vm2373_vm5, %v4483_v13, %v5612_v47  ;;  %v4486_v56 = vsel %vm2373_vm5, %v4484_v60, %v5613_v28  ;;  %v7459_v13 = vld [vmem:[%s5918_s6] sm:$0x7]  ;;  %s5740_s6 = smov 32  }
 0x9cb   : > { %v4487_v51 = vpack.c.bf16 %v4486_v56, %v4485_v58  ;;  %v4574_v60 = vperm.slane %v7459_v13, 1 }
 0x9cd   : > { %5363 = vmatmul.msk.bf16.vlgmr.msrb.gmra.mxu1 %vm956_vm1, %v4487_v51 }
 0xa4a   : > { %v4520_v45 = vpop.f32.mrf.mxu1 }
 0xa4b   : > { %v4521_v5 = vadd.f32 %v5621_v27, %v4520_v45 }
 0xa4d   : > { %v4525_v46 = vadd.f32 %v4521_v5, %v6565_v20 }
 0xa4f   : > { %v4527_v0 = vsel %vm956_vm1, %v4525_v46, 0.0 }
 0xa50   : > { %4528 = vadd.xlane.f32.xlu0 %v4527_v0 }
 0xa52   : > { %v4522_v57 = vpop.f32.mrf.mxu1 }
 0xa53   : > { %v4523_v36 = vadd.f32 %v5621_v27, %v4522_v57 }
 0xa55   : > { %v4526_v39 = vadd.f32 %v4523_v36, %v6567_v30 }
 0xa57   : > { %v4530_v52 = vsel %vm956_vm1, %v4526_v39, 0.0 }
 0xa58   : > { %4531 = vadd.xlane.f32.xlu2 %v4530_v52 }
 0xa70   : > { %4828 = vrot.lane.b32.xlu2 %v7282_v34, %s5732_s13  ;;  %v7441_v34 = vperm.slane %v7326_v19, %v6009_v3 }
 0xa72   : > { %v4774_v12 = vrot.slane %v7441_v34, 4 }
 0xa74   : > { %v4775_v17 = vsel %vm1071_vm2, 0.0, %v4774_v12 }
 0xac3   : > { %v4529_v8 = vpop.xlane.xlu0 %4528 }
 0xac4   : > { %v4533_v10 = vmul.f32 %v4529_v8, %v6534_v41 }
 0xac6   : > { %v4535_v22 = vsub.f32 %v4525_v46, %v4533_v10 }
 0xac8   : > { %v4537_v31 = vmul.f32 %v4535_v22, %v4535_v22 }
 0xaca   : > { %v4539_v20 = vsel %vm956_vm1, %v4537_v31, 0.0 }
 0xacb   : > { %v4532_v48 = vpop.xlane.xlu2 %4531  ;;  %4540 = vadd.xlane.f32.xlu1 %v4539_v20 }
 0xacc   : > { %v4534_v55 = vmul.f32 %v4532_v48, %v6534_v41 }
 0xace   : > { %v4536_v16 = vsub.f32 %v4526_v39, %v4534_v55 }
 0xad0   : > { %v4538_v30 = vmul.f32 %v4536_v16, %v4536_v16 }
 0xad2   : > { %v4542_v37 = vsel %vm956_vm1, %v4538_v30, 0.0  ;;  %v4761_v30 = vperm.slane %v7320_v2, %v6009_v3 }
 0xad3   : > { %4543 = vadd.xlane.f32.xlu0 %v4542_v37  ;;  %v4829_v7 = vpop.permute.xlu2 %4828 }
 0xad4   : > { %v4852_v37 = vrot.slane %v4829_v7, 4 }
 0xae4   : > { %4832 = vrot.lane.b32.xlu1 %v7302_v26, %s5732_s13 }
 0xae7   : > { %4830 = vrot.lane.b32.xlu0 %v7297_v50, %s5732_s13  ;;  %v5418_v50 = vld [vmem:[%s5923_s4] sm:$0xff]  ;;  %s5741_s4 = smov 64  }
 0xae8   : > { %4608 = vmatpush.bf16.msrb.mxu2 %v5418_v50 }
 0xaec   : > { %4826 = vrot.lane.b32.xlu1 %v7288_v14, %s5732_s13 }
 0xaf4   : > { %4783 = vrot.lane.b32.xlu1 %v4775_v17, %s5736_s22 }
 0xb3e   : > { %v4541_v40 = vpop.xlane.xlu1 %4540 }
 0xb3f   : > { %v4545_v15 = vmul.f32 %v4541_v40, %v6534_v41  ;;  %v4776_v40 = vrot.slane %v4761_v30, 4 }
 0xb41   : > { %v4547_v26 = vadd.f32 1e-05, %v4545_v15  ;;  %v4777_v50 = vsel %vm1071_vm2, 0.0, %v4776_v40 }
 0xb43   : > { %5694 = vrsqrt.f32 %v4547_v26  ;;  %vm4555_vm14 = vweird.f32 %v4547_v26 }
 0xb46   : > { %v4544_v9 = vpop.xlane.xlu0 %4543 }
 0xb47   : > { %v4546_v19 = vmul.f32 %v4544_v9, %v6534_v41 }
 0xb49   : > { %v5695_v44 = vpop.eup %5694  ;;  %v4548_v14 = vadd.f32 1e-05, %v4546_v19 }
 0xb4a   : > { %v4550_v53 = vmul.f32 %v5695_v44, %v4547_v26  ;;  %vm4556_vm13 = vweird.f32 %v5695_v44 }
 0xb4b   : > { %5696 = vrsqrt.f32 %v4548_v14  ;;  %vm4557_vm15 = vmor %vm4555_vm14, %vm4556_vm13  ;;  %vm4565_vm3 = vweird.f32 %v4548_v14 }
 0xb4c   : > { %v4551_v25 = vmul.f32 %v5695_v44, %v4550_v53 }
 0xb4e   : > { %v4552_v61 = vmul.f32 0.5, %v4551_v25 }
 0xb50   : > { %v4553_v54 = vsub.f32 1.5, %v4552_v61  ;;  %v4773_v61 = vperm.slane %v7317_v18, %v6009_v3 }
 0xb51   : > { %v5697_v49 = vpop.eup %5696 }
 0xb52   : > { %v4554_v59 = vmul.f32 %v5695_v44, %v4553_v54  ;;  %v4560_v4 = vmul.f32 %v5697_v49, %v4548_v14  ;;  %vm4566_vm0 = vweird.f32 %v5697_v49 }
 0xb53   : > { %vm4567_vm5 = vmor %vm4565_vm3, %vm4566_vm0 }
 0xb54   : > { %v4561_v62 = vmul.f32 %v5697_v49, %v4560_v4  ;;  %v4558_v1 = vsel %vm4557_vm15, %v5695_v44, %v4554_v59  ;;  %v4769_v44 = vperm.slane %v7323_v38, %v6009_v3  ;;  %v5423_v59 = vld [vmem:[%s5937_s19 + $0x18] sm:$0xff]  ;;  %v5422_v4 = vld [vmem:[%s5937_s19 + $0x10] sm:$0xff] }
 0xb55   : > { %v4569_v42 = vmul.f32 %v4558_v1, %v4535_v22  ;;  %4662 = vmatpush.bf16.msra.mxu3 %v5423_v59  ;;  %v5420_v1 = vld [vmem:[%s5937_s19] sm:$0xff] }
 0xb56   : > { %v4562_v11 = vmul.f32 0.5, %v4561_v62  ;;  %v4833_v33 = vpop.permute.xlu1 %4832  ;;  %v4778_v14 = vrot.slane %v4769_v44, 4  ;;  %v5421_v62 = vld [vmem:[%s5937_s19 + $0x8] sm:$0xff] }
 0xb57   : > { %v4850_v6 = vrot.slane %v4833_v33, 4  ;;  %v4572_v58 = vmul.f32 %v4571_v23, %v4569_v42  ;;  %v4853_v17 = vsel %vm1071_vm2, %v4833_v33, %v4852_v37  ;;  %v5623_v42 = vld [vmem:[%s904_s5] ss:$0 sm:$0xff] }
 0xb58   : > { %v4563_v29 = vsub.f32 1.5, %v4562_v11  ;;  %v4861_v26 = vperm.slane %v4853_v17, %v5976_v32  ;;  %v4779_v53 = vsel %vm1071_vm2, 0.0, %v4778_v14 }
 0xb59   : > { %v4851_v24 = vsel %vm1071_vm2, %v4850_v6, %v4829_v7  ;;  %v4831_v47 = vpop.permute.xlu0 %4830  ;;  %v7464_v57 = vadd.f32 %v4574_v60, %v4572_v58  ;;  %4663 = vmatpush.bf16.msra.mxu3 %v5422_v4 }
 0xb5a   : > { %v4564_v28 = vmul.f32 %v5697_v49, %v4563_v29  ;;  %v4857_v21 = vperm.slane %v4851_v24, %v5976_v32  ;;  %v4838_v51 = vrot.slane %v4831_v47, 4  ;;  %v4874_v9 = vrot.slane %v4861_v26, 4 }
 0xb5c   : > { %v4568_v63 = vsel %vm4567_vm5, %v5697_v49, %v4564_v28  ;;  %v4862_v46 = vrot.slane %v4857_v21, 4 }
 0xb5d   : > { %v4570_v56 = vmul.f32 %v4568_v63, %v4536_v16  ;;  %4664 = vmatpush.bf16.msra.mxu3 %v5421_v62 }
 0xb5e   : > { %v4827_v27 = vpop.permute.xlu1 %4826 }
 0xb5f   : > { %v4573_v45 = vmul.f32 %v4571_v23, %v4570_v56  ;;  %v4839_v5 = vsel %vm1071_vm2, %v4838_v51, %v4827_v27  ;;  %v4840_v12 = vrot.slane %v4827_v27, 4 }
 0xb60   : > { %v4845_v0 = vperm.slane %v4839_v5, %v5976_v32 }
 0xb61   : > { %v7466_v36 = vadd.f32 %v4574_v60, %v4573_v45  ;;  %v4841_v15 = vsel %vm1071_vm2, %v4831_v47, %v4840_v12  ;;  %4665 = vmatpush.bf16.msra.mxu3 %v5420_v1 }
 0xb62   : > { %v4864_v39 = vrot.slane %v4845_v0, 4  ;;  %v4863_v52 = vsel %vm1071_vm2, %v4862_v46, %v4845_v0  ;;  %v4849_v43 = vperm.slane %v4841_v15, %v5976_v32 }
 0xb63   : > { %v4577_v8 = vpack.c.bf16 %v7466_v36, %v7464_v57  ;;  %v7472_v10 = vperm.slane %v4863_v52, %v6009_v3 }
 0xb64   : > { %v4865_v22 = vsel %vm1071_vm2, %v4857_v21, %v4864_v39  ;;  %v4875_v2 = vsel %vm1071_vm2, %v4874_v9, %v4849_v43  ;;  %v4876_v32 = vrot.slane %v4849_v43, 4 }
 0xb65   : > { %5372 = vmatmul.msk.bf16.vlgmr.msrb.gmra.mxu2 %vm956_vm1, %v4577_v8  ;;  %v4886_v31 = vrot.slane %v7472_v10, 4  ;;  %v4873_v20 = vperm.slane %v4865_v22, %v6009_v3  ;;  %v4881_v19 = vperm.slane %v4875_v2, %v6009_v3 }
 0xb66   : > { %v4877_v25 = vsel %vm1071_vm2, %v4861_v26, %v4876_v32 }
 0xb67   : > { %v4887_v48 = vsel %vm1071_vm2, 0.0, %v4886_v31  ;;  %v4888_v55 = vrot.slane %v4873_v20, 4  ;;  %v4885_v38 = vperm.slane %v4877_v25, %v6009_v3  ;;  %v5622_v3 = vld [vmem:[%s7648_s18] ss:$0 sm:$0xff]  ;;  %v4890_v51 = vrot.slane %v4881_v19, 4 }
 0xb68   : > { %4895 = vrot.lane.b32.xlu1 %v4887_v48, %s5736_s22  ;;  %s5743_s22 = smov 96  }
 0xb69   : > { %v4889_v16 = vsel %vm1071_vm2, 0.0, %v4888_v55  ;;  %v4892_v54 = vrot.slane %v4885_v38, 4  ;;  %v4891_v27 = vsel %vm1071_vm2, 0.0, %v4890_v51  ;;  %v4784_v55 = vpop.permute.xlu1 %4783 }
 0xb6a   : > { %4903 = vrot.lane.b32.xlu0 %v4889_v16, %s5739_s16  ;;  %v4810_v14 = vsel %vm1916_vm4, %v7441_v34, %v4784_v55 }
 0xb6b   : > { %v4893_v49 = vsel %vm1071_vm2, 0.0, %v4892_v54 }
 0xb70   : > { %4787 = vrot.lane.b32.xlu1 %v4761_v30, %s5740_s6 }
 0xb78   : > { %4899 = vrot.lane.b32.xlu1 %v4873_v20, %s5740_s6  ;;  %v4780_v20 = vrot.slane %v4773_v61, 4 }
 0xb7a   : > { %v4781_v48 = vsel %vm1071_vm2, 0.0, %v4780_v20  ;;  %vm4812_vm2 = vcmask 392192  }
 0xb80   : > { %4791 = vrot.lane.b32.xlu1 %v4777_v50, %s5739_s16 }
 0xb88   : > { %4907 = vrot.lane.b32.xlu1 %v4881_v19, %s5741_s4 }
 0xb90   : > { %4799 = vrot.lane.b32.xlu1 %v4779_v53, %s5742_s0 }
 0xb98   : > { %4803 = vrot.lane.b32.xlu1 %v4773_v61, %s5743_s22 }
 0xba0   : > { %4919 = vrot.lane.b32.xlu1 %v4893_v49, %s5732_s13 }
 0xbda   : > { %v4896_v16 = vpop.permute.xlu1 %4895 }
 0xbdb   : > { %v4922_v53 = vsel %vm1916_vm4, %v7472_v10, %v4896_v16  ;;  %vm4817_vm4 = vcmask 785408  }
 0xbdc   : > { %v4904_v45 = vpop.permute.xlu0 %4903 }
 0xbe2   : > { %v4788_v30 = vpop.permute.xlu1 %4787 }
 0xbe3   : > { %v4811_v25 = vsel %vm956_vm1, %v4810_v14, %v4788_v30 }
 0xbe8   : > { %v4610_v18 = vpop.f32.mrf.mxu2 }
 0xbe9   : > { %v4611_v11 = vadd.f32 %v5622_v3, %v4610_v18 }
 0xbea   : > { %v4900_v37 = vpop.permute.xlu1 %4899 }
 0xbeb   : > { %v4615_v7 = vmax.f32 %v4611_v11, 0.0  ;;  %v4923_v61 = vsel %vm956_vm1, %v4922_v53, %v4900_v37 }
 0xbf0   : > { %v4612_v33 = vpop.f32.mrf.mxu2 }
 0xbf1   : > { %v4613_v6 = vadd.f32 %v5622_v3, %v4612_v33 }
 0xbf2   : > { %v4792_v12 = vpop.permute.xlu1 %4791 }
 0xbf3   : > { %v4616_v29 = vmax.f32 %v4613_v6, 0.0  ;;  %v4813_v54 = vsel %vm4812_vm2, %v4811_v25, %v4792_v12 }
 0xbf5   : > { %v4617_v23 = vpack.c.bf16 %v4616_v29, %v4615_v7 }
 0xbf7   : > { %5389 = vmatmul.msk.bf16.vlgmr.msra.gmra.mxu3 %vm4654_vm6, %v4617_v23 }
 0xbfa   : > { %v4908_v17 = vpop.permute.xlu1 %4907 }
 0xc02   : > { %v4800_v15 = vpop.permute.xlu1 %4799 }
 0xc0a   : > { %v4804_v2 = vpop.permute.xlu1 %4803 }
 0xc12   : > { %v4920_v3 = vpop.permute.xlu1 %4919 }
 0xc7a   : > { %v4667_v24 = vpop.f32.mrf.mxu3 }
 0xc7b   : > { %v4668_v28 = vadd.f32 %v5623_v42, %v4667_v24 }
 0xc7d   : > { %v4672_v47 = vadd.f32 %v4668_v28, %v7464_v57 }
 0xc7f   : > { %v4674_v63 = vsel %vm956_vm1, %v4672_v47, 0.0 }
 0xc80   : > { %4675 = vadd.xlane.f32.xlu2 %v4674_v63 }
 0xc82   : > { %v4669_v21 = vpop.f32.mrf.mxu3 }
 0xc83   : > { %v4670_v60 = vadd.f32 %v5623_v42, %v4669_v21 }
 0xc85   : > { %v4673_v58 = vadd.f32 %v4670_v60, %v7466_v36  ;;  %v4721_v60 = vperm.slane %v7459_v13, 2 }
 0xc87   : > { %v4677_v56 = vsel %vm956_vm1, %v4673_v58, 0.0 }
 0xc88   : > { %4678 = vadd.xlane.f32.xlu0 %v4677_v56 }
 0xc98   : > { %4795 = vrot.lane.b32.xlu2 %v4769_v44, %s5741_s4 }
 0xc9c   : > { %4911 = vrot.lane.b32.xlu0 %v4891_v27, %s5742_s0 }
 0xcf3   : > { %v4676_v5 = vpop.xlane.xlu2 %4675 }
 0xcf4   : > { %v4680_v46 = vmul.f32 %v4676_v5, %v6534_v41 }
 0xcf6   : > { %v7525_v0 = vsub.f32 %v4672_v47, %v4680_v46  ;;  %v4718_v47 = vperm.slane %v7453_v35, 2 }
 0xcf8   : > { %v4684_v57 = vmul.f32 %v7525_v0, %v7525_v0 }
 0xcfa   : > { %v4686_v36 = vsel %vm956_vm1, %v4684_v57, 0.0 }
 0xcfb   : > { %4687 = vadd.xlane.f32.xlu0 %v4686_v36  ;;  %v4679_v39 = vpop.xlane.xlu0 %4678  ;;  %v4796_v26 = vpop.permute.xlu2 %4795 }
 0xcfc   : > { %v4681_v52 = vmul.f32 %v4679_v39, %v6534_v41  ;;  %v4814_v59 = vsel %vm4654_vm6, %v4813_v54, %v4796_v26 }
 0xcfd   : > { %v4816_v10 = vsel %vm4815_vm7, %v4814_v59, %v4800_v15 }
 0xcfe   : > { %v7531_v8 = vsub.f32 %v4673_v58, %v4681_v52  ;;  %v4818_v23 = vsel %vm4817_vm4, %v4816_v10, %v4804_v2 }
 0xd00   : > { %v4685_v22 = vmul.f32 %v7531_v8, %v7531_v8 }
 0xd02   : > { %v4689_v31 = vsel %vm956_vm1, %v4685_v22, 0.0 }
 0xd03   : > { %4690 = vadd.xlane.f32.xlu2 %v4689_v31 }
 0xd0e   : > { %v4912_v40 = vpop.permute.xlu0 %4911 }
 0xd0f   : > { %4807 = vrot.lane.b32.xlu0 %v4781_v48, %s5732_s13 }
 0xd1b   : > { %4915 = vrot.lane.b32.xlu2 %v4885_v38, %s5743_s22 }
 0xd6e   : > { %v4688_v43 = vpop.xlane.xlu0 %4687 }
 0xd6f   : > { %v4692_v50 = vmul.f32 %v4688_v43, %v6534_v41 }
 0xd71   : > { %v4694_v9 = vadd.f32 1e-05, %v4692_v50 }
 0xd73   : > { %5698 = vrsqrt.f32 %v4694_v9  ;;  %vm4702_vm10 = vweird.f32 %v4694_v9 }
 0xd76   : > { %v4691_v19 = vpop.xlane.xlu2 %4690 }
 0xd77   : > { %v4693_v44 = vmul.f32 %v4691_v19, %v6534_v41  ;;  %v4924_v41 = vsel %vm4812_vm2, %v4923_v61, %v4904_v45 }
 0xd78   : > { %v4925_v34 = vsel %vm4654_vm6, %v4924_v41, %v4908_v17 }
 0xd79   : > { %v5699_v32 = vpop.eup %5698  ;;  %v4695_v38 = vadd.f32 1e-05, %v4693_v44  ;;  %v4926_v62 = vsel %vm4815_vm7, %v4925_v34, %v4912_v40 }
 0xd7a   : > { %v4697_v49 = vmul.f32 %v5699_v32, %v4694_v9  ;;  %vm4703_vm9 = vweird.f32 %v5699_v32 }
 0xd7b   : > { %5700 = vrsqrt.f32 %v4695_v38  ;;  %vm4704_vm11 = vmor %vm4702_vm10, %vm4703_vm9  ;;  %vm4712_vm13 = vweird.f32 %v4695_v38 }
 0xd7c   : > { %v4698_v4 = vmul.f32 %v5699_v32, %v4697_v49 }
 0xd7e   : > { %v4699_v1 = vmul.f32 0.5, %v4698_v4  ;;  %v4916_v18 = vpop.permute.xlu2 %4915 }
 0xd7f   : > { %v4927_v11 = vsel %vm4817_vm4, %v4926_v62, %v4916_v18 }
 0xd80   : > { %v4700_v33 = vsub.f32 1.5, %v4699_v1  ;;  %v4928_v6 = vsel %vm4819_vm8, %v4927_v11, %v4920_v3 }
 0xd81   : > { %v5701_v7 = vpop.eup %5700  ;;  %5390 = vst [vmem:[%s5943_s2 + $0x4] sm:$0xf] %v4928_v6  ;;  %v4808_v29 = vpop.permute.xlu0 %4807 }
 0xd82   : > { %v4701_v42 = vmul.f32 %v5699_v32, %v4700_v33  ;;  %v4707_v24 = vmul.f32 %v5701_v7, %v4695_v38  ;;  %v4820_v28 = vsel %vm4819_vm8, %v4818_v23, %v4808_v29  ;;  %vm4713_vm12 = vweird.f32 %v5701_v7 }
 0xd83   : > { %4821 = vst [vmem:[%s5943_s2] sm:$0xf] %v4820_v28  ;;  %vm4714_vm14 = vmor %vm4712_vm13, %vm4713_vm12  ;;  %s7650_s2 = sld [smem:[#allocation22_spill]] (!%p5391_p6) }
 0xd84   : > { %v4705_v63 = vsel %vm4704_vm11, %v5699_v32, %v4701_v42  ;;  %v4708_v21 = vmul.f32 %v5701_v7, %v4707_v24 }
 0xd85   : > { %v4716_v58 = vmul.f32 %v4705_v63, %v7525_v0 }
 0xd86   : > { %v4709_v56 = vmul.f32 0.5, %v4708_v21 }
 0xd87   : > { %v4719_v51 = vmul.f32 %v4718_v47, %v4716_v58 }
 0xd88   : > { %v4710_v27 = vsub.f32 1.5, %v4709_v56 }
 0xd89   : > { %v4722_v45 = vadd.f32 %v4721_v60, %v4719_v51 }
 0xd8a   : > { %v4711_v5 = vmul.f32 %v5701_v7, %v4710_v27 }
 0xd8b   : > { %4724 = vst.msk [vmem:[#allocation2] sm:$0xff] %vm956_vm1, %v4722_v45 }
 0xd8c   : > { %v4715_v46 = vsel %vm4714_vm14, %v5701_v7, %v4711_v5 }
 0xd8d   : > { %v4717_v35 = vmul.f32 %v4715_v46, %v7531_v8 }
 0xd8f   : > { %v4720_v57 = vmul.f32 %v4718_v47, %v4717_v35  ;;  %4934 = sbr.rel (%p5391_p6) target bundleno = 3478 (0xd96), region = 100 }
 0xd91   : > { %v4723_v36 = vadd.f32 %v4721_v60, %v4720_v57 }
 0xd93   : > { %4725 = vst.msk [vmem:[#allocation2 + $0x8] sm:$0xff] %vm956_vm1, %v4723_v36 }
 0xd94   : > { %4935 = vst.msk [vmem:[%s7650_s2] sm:$0xff] %vm956_vm1, %v4722_v45 }
 0xd95   : > { %4936 = vst.msk [vmem:[%s7650_s2 + $0x8] sm:$0xff] %vm956_vm1, %v4723_v36 }
 0xd96 PF: > { %s7651_s24 = sld [smem:[#allocation5_spill]] }
 0xd97   : > { %s7652_s0 = sld [smem:[#allocation4_spill]] }
 0xd98   : > { %s7653_s30 = sld [smem:[#allocation6_spill]] }
 0xd9c   : > { %s30_s20 = sadd.s32 1, %s7651_s24  }
 0xd9d   : > { %p27_p7 = scmp.ge.s32.totalorder %s30_s20, 4  }
 0xd9f   :  { %29 = sbr.rel (!%p27_p7) target bundleno = 18 (0x12), region = 199 }

</bundles_post_ra>
